<compile_context>
chip_gen: v7x
topology: tpu7x:2x2x1
jax: 0.10.0
libtpu: 0.0.40
codegen_flags: <defaults>
</compile_context>

<pallas_src>
import functools
import math

import numpy as np

import jax
import jax.numpy as jnp
from jax.experimental import pallas as pl
from jax.experimental.pallas import tpu as pltpu


# ----------------------------- config (synthetic) ----------------------------
class Config:
    model = 32          # d_model
    d_ff = 64
    heads = 4
    d_q = 8
    d_k = 8
    d_v = 8
    word_count = 50
    layers = 2


config = Config()


# ------------------------------- fused kernel --------------------------------
def _decoder_stack_kernel(
    dec_ref, enc_ref,
    rep_s_ref, msk_s_ref, seg_s_ref, rep_c_ref, msk_c_ref, seg_c_ref,
    sa_wqkv, sa_bqkv, sa_wo, sa_bo, sa_g, sa_b,
    ca_wq, ca_bq, ca_wkv, ca_bkv, ca_wo, ca_bo, ca_g, ca_b,
    ff_w1, ff_b1, ff_w2, ff_b2, ff_g, ff_b,
    out_ref,
    *, n_layers, H, dq, dk, dv, eps):
    """One grid step == one batch element through the WHOLE decoder stack."""
    f32 = jnp.float32
    x = dec_ref[...]            # (Lq, D)  running decoder state
    enc = enc_ref[...]          # (Le, D)  encoder outputs for this batch elem
    n_q, n_k = H * dq, H * dk

    # Tiny host-built constants (layer- and grid-invariant).
    rep_s, msk_s, seg_s = rep_s_ref[...], msk_s_ref[...], seg_s_ref[...]
    rep_c, msk_c, seg_c = rep_c_ref[...], msk_c_ref[...], seg_c_ref[...]

    def layernorm(y, g, b):
        # Single-pass stats: var = E[y^2] - E[y]^2  (halves the XLU reductions).
        mean = jnp.mean(y, axis=-1, keepdims=True)
        var = jnp.mean(y * y, axis=-1, keepdims=True) - mean * mean
        return (y - mean) * jax.lax.rsqrt(var + eps) * g + b

    def attend(q, k, v, rep, msk, seg):
        """All-heads attention with 2-D matmuls only.

        q:(Lq,H*dq)  k,v:(Lk,H*d)  rep:(H*Lk,Lk)  msk:(H*Lk,H*d)  seg:(H*Lk,H)
        """
        # Block-diagonal K / V: row r holds k[r % Lk] restricted to head r//Lk.
        kbd = jnp.dot(rep, k, preferred_element_type=f32) * msk     # (H*Lk, H*dk)
        vbd = jnp.dot(rep, v, preferred_element_type=f32) * msk     # (H*Lk, H*dv)
        # scores[a, h*Lk + j] = <q_h[a, :], k_h[j, :]>   (1/sqrt(d_k) folded in Wq)
        s = jax.lax.dot_general(q, kbd, (((1,), (1,)), ((), ())),
                                preferred_element_type=f32)         # (Lq, H*Lk)
        # Subtracting the per-row global max is the same constant within each
        # head block -> per-head softmax unchanged, numerically safe.
        s = s - jnp.max(s, axis=-1, keepdims=True)
        e = jnp.exp(s)
        den = jnp.dot(e, seg, preferred_element_type=f32)           # (Lq, H)
        den = jax.lax.dot_general(den, seg, (((1,), (1,)), ((), ())),
                                  preferred_element_type=f32)       # (Lq, H*Lk)
        p = e * pl.reciprocal(den, approx=True)
        # Context comes out already in head-concatenated column order (Lq, H*dv).
        return jnp.dot(p, vbd, preferred_element_type=f32)

    for i in range(n_layers):   # unrolled; all layers' weights are VMEM-resident
        # ---- masked self-attention (mask is a no-op in the reference) ----
        qkv = jnp.dot(x, sa_wqkv[i], preferred_element_type=f32) + sa_bqkv[i]
        ctx = attend(qkv[:, :n_q], qkv[:, n_q:n_q + n_k], qkv[:, n_q + n_k:],
                     rep_s, msk_s, seg_s)
        o = jnp.dot(ctx, sa_wo[i], preferred_element_type=f32) + sa_bo[i]
        x = layernorm(o + x, sa_g[i], sa_b[i])

        # ---- encoder-decoder cross attention ----
        q = jnp.dot(x, ca_wq[i], preferred_element_type=f32) + ca_bq[i]
        kv = jnp.dot(enc, ca_wkv[i], preferred_element_type=f32) + ca_bkv[i]
        ctx = attend(q, kv[:, :n_k], kv[:, n_k:], rep_c, msk_c, seg_c)
        o = jnp.dot(ctx, ca_wo[i], preferred_element_type=f32) + ca_bo[i]
        x = layernorm(o + x, ca_g[i], ca_b[i])

        # ---- position-wise FFN (1x1 conv -> ReLU -> 1x1 conv -> LN) ----
        h = jnp.maximum(
            jnp.dot(x, ff_w1[i], preferred_element_type=f32) + ff_b1[i], 0.0)
        y = jnp.dot(h, ff_w2[i], preferred_element_type=f32) + ff_b2[i]
        x = layernorm(y + x, ff_g[i], ff_b[i])

    out_ref[...] = x.astype(out_ref.dtype)


# ----------------------- host-built attention constants ----------------------
def _attn_consts(Lk, H, d):
    """rep:(H*Lk,Lk) replicates rows; msk:(H*Lk,H*d) block-diag; seg:(H*Lk,H)."""
    r = np.arange(H * Lk)[:, None]
    rep = (r % Lk == np.arange(Lk)[None, :]).astype(np.float32)
    msk = ((r // Lk) == (np.arange(H * d)[None, :] // d)).astype(np.float32)
    seg = ((r // Lk) == np.arange(H)[None, :]).astype(np.float32)
    return jnp.asarray(rep), jnp.asarray(msk), jnp.asarray(seg)


# ------------------------------- model wrapper --------------------------------
@jax.jit
def decoder_forward(params, enc_inputs, enc_outputs, dec_inputs):
    # TODO(synk): embedding lookup (gather) stays in plain-JAX glue, not a kernel.
    del enc_inputs  # pad / subsequent masks are no-ops in the reference forward.
    dec_emb = jnp.take(params["embed"], dec_inputs, axis=0)       # (B, Ld, D)
    B, Ld, D = dec_emb.shape
    Le = enc_outputs.shape[1]
    H, dq, dk, dv = config.heads, config.d_q, config.d_k, config.d_v
    sa, ca, ff = params["self_attn"], params["enc_attn"], params["ffn"]
    n_layers = sa["wqkv"].shape[0]

    consts = list(_attn_consts(Ld, H, dk)) + list(_attn_consts(Le, H, dk))

    kernel = functools.partial(
        _decoder_stack_kernel,
        n_layers=n_layers, H=H, dq=dq, dk=dk, dv=dv, eps=1e-5)

    def batch_spec(seq_len):
        # One batch element per grid step; leading batch dim squeezed away.
        return pl.BlockSpec((pl.Squeezed(), seq_len, D), lambda b: (b, 0, 0))

    def full_spec(arr):
        # Full-extent (unblocked) block; same block for every grid step, so it
        # is DMA'd once and stays resident in VMEM.
        nd = arr.ndim
        return pl.BlockSpec(arr.shape, lambda b, _nd=nd: (0,) * _nd)

    weights = [
        sa["wqkv"], sa["bqkv"], sa["wo"], sa["bo"], sa["g"], sa["b"],
        ca["wq"], ca["bq"], ca["wkv"], ca["bkv"], ca["wo"], ca["bo"],
        ca["g"], ca["b"],
        ff["w1"], ff["b1"], ff["w2"], ff["b2"], ff["g"], ff["b"],
    ]

    out = pl.pallas_call(
        kernel,
        out_shape=jax.ShapeDtypeStruct((B, Ld, D), jnp.float32),
        grid=(B,),
        in_specs=([batch_spec(Ld), batch_spec(Le)]
                  + [full_spec(c) for c in consts]
                  + [full_spec(w) for w in weights]),
        out_specs=pl.BlockSpec((pl.Squeezed(), Ld, D), lambda b: (b, 0, 0)),
        compiler_params=pltpu.CompilerParams(
            # Batch elements are fully independent -> "parallel" lets v7x use
            # its second TensorCore.  Weights/consts are ~100 KB total, so no
            # vmem_limit_bytes is needed at this config; set it explicitly if
            # layers / d_model / B*Le are scaled up.
            dimension_semantics=("parallel",)),
    )(dec_emb, enc_outputs, *consts, *weights)

    return out


# ------------------------------ parameter init --------------------------------
def init_params(key):
    D, H = config.model, config.heads
    dq, dk, dv, dff = config.d_q, config.d_k, config.d_v, config.d_ff
    assert dq == dk == dv, "head dims must match (as in the reference module)"
    scale = 1.0 / math.sqrt(dk)

    def dense(k, fan_in, fan_out):
        kw, kb = jax.random.split(k)
        w = jax.random.normal(kw, (fan_in, fan_out), jnp.float32) * 0.05
        b = jax.random.normal(kb, (fan_out,), jnp.float32) * 0.01
        return w, b

    def self_attn_params(k):
        ks = jax.random.split(k, 4)
        wq, bq = dense(ks[0], D, H * dq)
        wk, bk = dense(ks[1], D, H * dk)
        wv, bv = dense(ks[2], D, H * dv)
        wo, bo = dense(ks[3], H * dv, D)
        wq, bq = wq * scale, bq * scale      # fold 1/sqrt(d_k) into Q projection
        return dict(
            wqkv=jnp.concatenate([wq, wk, wv], axis=1),         # (D, H*(dq+dk+dv))
            bqkv=jnp.concatenate([bq, bk, bv]).reshape(1, -1),
            wo=wo, bo=bo.reshape(1, D),
            g=jnp.ones((1, D), jnp.float32), b=jnp.zeros((1, D), jnp.float32))

    def cross_attn_params(k):
        ks = jax.random.split(k, 4)
        wq, bq = dense(ks[0], D, H * dq)
        wk, bk = dense(ks[1], D, H * dk)
        wv, bv = dense(ks[2], D, H * dv)
        wo, bo = dense(ks[3], H * dv, D)
        wq, bq = wq * scale, bq * scale
        return dict(
            wq=wq, bq=bq.reshape(1, -1),
            wkv=jnp.concatenate([wk, wv], axis=1),              # (D, H*(dk+dv))
            bkv=jnp.concatenate([bk, bv]).reshape(1, -1),
            wo=wo, bo=bo.reshape(1, D),
            g=jnp.ones((1, D), jnp.float32), b=jnp.zeros((1, D), jnp.float32))

    def ffn_params(k):
        k1, k2 = jax.random.split(k)
        w1, b1 = dense(k1, D, dff)
        w2, b2 = dense(k2, dff, D)
        return dict(w1=w1, b1=b1.reshape(1, dff), w2=w2, b2=b2.reshape(1, D),
                    g=jnp.ones((1, D), jnp.float32),
                    b=jnp.zeros((1, D), jnp.float32))

    def stack_layers(dicts):
        return jax.tree_util.tree_map(lambda *xs: jnp.stack(xs, axis=0), *dicts)

    keys = jax.random.split(key, 1 + config.layers)
    embed = jax.random.normal(keys[0], (config.word_count, D), jnp.float32) * 0.05
    sa_l, ca_l, ff_l = [], [], []
    for i in range(config.layers):
        ks = jax.random.split(keys[1 + i], 3)
        sa_l.append(self_attn_params(ks[0]))
        ca_l.append(cross_attn_params(ks[1]))
        ff_l.append(ffn_params(ks[2]))
    return dict(embed=embed,
                self_attn=stack_layers(sa_l),
                enc_attn=stack_layers(ca_l),
                ffn=stack_layers(ff_l))


# ----------------------------------- main -------------------------------------
if __name__ == "__main__":
    B, enc_len, dec_len = 2, 10, 8

    root = jax.random.PRNGKey(0)
    k_par, k_enc_tok, k_dec_tok, k_enc_out = jax.random.split(root, 4)

    params = init_params(k_par)
    enc_inputs = jax.random.randint(k_enc_tok, (B, enc_len), 0, config.word_count,
                                    dtype=jnp.int32)
    dec_inputs = jax.random.randint(k_dec_tok, (B, dec_len), 0, config.word_count,
                                    dtype=jnp.int32)
    enc_outputs = jax.random.normal(k_enc_out, (B, enc_len, config.model),
                                    jnp.float32)

    out = decoder_forward(params, enc_inputs, enc_outputs, dec_inputs)
    out = jax.block_until_ready(out)
    assert out.shape == (B, dec_len, config.model)
    assert bool(jnp.all(jnp.isfinite(out)))
    print("KERNEL_OK")
</pallas_src>

<mosaic_0001>
module attributes {stable_mosaic.version = 11 : i64} {
  func.func @_decoder_stack_kernel(%arg0: i32, %arg1: memref<1x8x32xf32, #tpu.memory_space<vmem>>, %arg2: memref<1x10x32xf32, #tpu.memory_space<vmem>>, %arg3: memref<32x8xf32, #tpu.memory_space<vmem>>, %arg4: memref<32x32xf32, #tpu.memory_space<vmem>>, %arg5: memref<32x4xf32, #tpu.memory_space<vmem>>, %arg6: memref<40x10xf32, #tpu.memory_space<vmem>>, %arg7: memref<40x32xf32, #tpu.memory_space<vmem>>, %arg8: memref<40x4xf32, #tpu.memory_space<vmem>>, %arg9: memref<2x32x96xf32, #tpu.memory_space<vmem>>, %arg10: memref<2x1x96xf32, #tpu.memory_space<vmem>>, %arg11: memref<2x32x32xf32, #tpu.memory_space<vmem>>, %arg12: memref<2x1x32xf32, #tpu.memory_space<vmem>>, %arg13: memref<2x1x32xf32, #tpu.memory_space<vmem>>, %arg14: memref<2x1x32xf32, #tpu.memory_space<vmem>>, %arg15: memref<2x32x32xf32, #tpu.memory_space<vmem>>, %arg16: memref<2x1x32xf32, #tpu.memory_space<vmem>>, %arg17: memref<2x32x64xf32, #tpu.memory_space<vmem>>, %arg18: memref<2x1x64xf32, #tpu.memory_space<vmem>>, %arg19: memref<2x32x32xf32, #tpu.memory_space<vmem>>, %arg20: memref<2x1x32xf32, #tpu.memory_space<vmem>>, %arg21: memref<2x1x32xf32, #tpu.memory_space<vmem>>, %arg22: memref<2x1x32xf32, #tpu.memory_space<vmem>>, %arg23: memref<2x32x64xf32, #tpu.memory_space<vmem>>, %arg24: memref<2x1x64xf32, #tpu.memory_space<vmem>>, %arg25: memref<2x64x32xf32, #tpu.memory_space<vmem>>, %arg26: memref<2x1x32xf32, #tpu.memory_space<vmem>>, %arg27: memref<2x1x32xf32, #tpu.memory_space<vmem>>, %arg28: memref<2x1x32xf32, #tpu.memory_space<vmem>>, %arg29: memref<1x8x32xf32, #tpu.memory_space<vmem>>) attributes {dimension_semantics = [#tpu.dimension_semantics<parallel>], iteration_bounds = array<i64: 2>, scalar_prefetch = 0 : i64, scratch_operands = 0 : i64, tpu.core_type = #tpu.core_type<tc>, window_params = [{transform_indices = @transform_0, window_bounds = array<i64: 1, 8, 32>}, {transform_indices = @transform_1, window_bounds = array<i64: 1, 10, 32>}, {pipeline_mode = #tpu.pipeline_mode<synchronous>, transform_indices = @transform_2, window_bounds = array<i64: 32, 8>}, {pipeline_mode = #tpu.pipeline_mode<synchronous>, transform_indices = @transform_3, window_bounds = array<i64: 32, 32>}, {pipeline_mode = #tpu.pipeline_mode<synchronous>, transform_indices = @transform_4, window_bounds = array<i64: 32, 4>}, {pipeline_mode = #tpu.pipeline_mode<synchronous>, transform_indices = @transform_5, window_bounds = array<i64: 40, 10>}, {pipeline_mode = #tpu.pipeline_mode<synchronous>, transform_indices = @transform_6, window_bounds = array<i64: 40, 32>}, {pipeline_mode = #tpu.pipeline_mode<synchronous>, transform_indices = @transform_7, window_bounds = array<i64: 40, 4>}, {pipeline_mode = #tpu.pipeline_mode<synchronous>, transform_indices = @transform_8, window_bounds = array<i64: 2, 32, 96>}, {pipeline_mode = #tpu.pipeline_mode<synchronous>, transform_indices = @transform_9, window_bounds = array<i64: 2, 1, 96>}, {pipeline_mode = #tpu.pipeline_mode<synchronous>, transform_indices = @transform_10, window_bounds = array<i64: 2, 32, 32>}, {pipeline_mode = #tpu.pipeline_mode<synchronous>, transform_indices = @transform_11, window_bounds = array<i64: 2, 1, 32>}, {pipeline_mode = #tpu.pipeline_mode<synchronous>, transform_indices = @transform_12, window_bounds = array<i64: 2, 1, 32>}, {pipeline_mode = #tpu.pipeline_mode<synchronous>, transform_indices = @transform_13, window_bounds = array<i64: 2, 1, 32>}, {pipeline_mode = #tpu.pipeline_mode<synchronous>, transform_indices = @transform_14, window_bounds = array<i64: 2, 32, 32>}, {pipeline_mode = #tpu.pipeline_mode<synchronous>, transform_indices = @transform_15, window_bounds = array<i64: 2, 1, 32>}, {pipeline_mode = #tpu.pipeline_mode<synchronous>, transform_indices = @transform_16, window_bounds = array<i64: 2, 32, 64>}, {pipeline_mode = #tpu.pipeline_mode<synchronous>, transform_indices = @transform_17, window_bounds = array<i64: 2, 1, 64>}, {pipeline_mode = #tpu.pipeline_mode<synchronous>, transform_indices = @transform_18, window_bounds = array<i64: 2, 32, 32>}, {pipeline_mode = #tpu.pipeline_mode<synchronous>, transform_indices = @transform_19, window_bounds = array<i64: 2, 1, 32>}, {pipeline_mode = #tpu.pipeline_mode<synchronous>, transform_indices = @transform_20, window_bounds = array<i64: 2, 1, 32>}, {pipeline_mode = #tpu.pipeline_mode<synchronous>, transform_indices = @transform_21, window_bounds = array<i64: 2, 1, 32>}, {pipeline_mode = #tpu.pipeline_mode<synchronous>, transform_indices = @transform_22, window_bounds = array<i64: 2, 32, 64>}, {pipeline_mode = #tpu.pipeline_mode<synchronous>, transform_indices = @transform_23, window_bounds = array<i64: 2, 1, 64>}, {pipeline_mode = #tpu.pipeline_mode<synchronous>, transform_indices = @transform_24, window_bounds = array<i64: 2, 64, 32>}, {pipeline_mode = #tpu.pipeline_mode<synchronous>, transform_indices = @transform_25, window_bounds = array<i64: 2, 1, 32>}, {pipeline_mode = #tpu.pipeline_mode<synchronous>, transform_indices = @transform_26, window_bounds = array<i64: 2, 1, 32>}, {pipeline_mode = #tpu.pipeline_mode<synchronous>, transform_indices = @transform_27, window_bounds = array<i64: 2, 1, 32>}, {transform_indices = @transform_28, window_bounds = array<i64: 1, 8, 32>}]} {
    %c0 = arith.constant 0 : index
    %c0_0 = arith.constant 0 : index
    %c0_1 = arith.constant 0 : index
    %0 = vector.load %arg1[%c0, %c0_0, %c0_1] : memref<1x8x32xf32, #tpu.memory_space<vmem>>, vector<1x8x32xf32>
    %1 = vector.shape_cast %0 : vector<1x8x32xf32> to vector<8x32xf32>
    %c0_2 = arith.constant 0 : index
    %c0_3 = arith.constant 0 : index
    %c0_4 = arith.constant 0 : index
    %2 = vector.load %arg2[%c0_2, %c0_3, %c0_4] : memref<1x10x32xf32, #tpu.memory_space<vmem>>, vector<1x10x32xf32>
    %3 = vector.shape_cast %2 : vector<1x10x32xf32> to vector<10x32xf32>
    %c0_5 = arith.constant 0 : index
    %c0_6 = arith.constant 0 : index
    %4 = vector.load %arg3[%c0_5, %c0_6] : memref<32x8xf32, #tpu.memory_space<vmem>>, vector<32x8xf32>
    %c0_7 = arith.constant 0 : index
    %c0_8 = arith.constant 0 : index
    %5 = vector.load %arg4[%c0_7, %c0_8] : memref<32x32xf32, #tpu.memory_space<vmem>>, vector<32x32xf32>
    %c0_9 = arith.constant 0 : index
    %c0_10 = arith.constant 0 : index
    %6 = vector.load %arg5[%c0_9, %c0_10] : memref<32x4xf32, #tpu.memory_space<vmem>>, vector<32x4xf32>
    %c0_11 = arith.constant 0 : index
    %c0_12 = arith.constant 0 : index
    %7 = vector.load %arg6[%c0_11, %c0_12] : memref<40x10xf32, #tpu.memory_space<vmem>>, vector<40x10xf32>
    %c0_13 = arith.constant 0 : index
    %c0_14 = arith.constant 0 : index
    %8 = vector.load %arg7[%c0_13, %c0_14] : memref<40x32xf32, #tpu.memory_space<vmem>>, vector<40x32xf32>
    %c0_15 = arith.constant 0 : index
    %c0_16 = arith.constant 0 : index
    %9 = vector.load %arg8[%c0_15, %c0_16] : memref<40x4xf32, #tpu.memory_space<vmem>>, vector<40x4xf32>
    %c0_17 = arith.constant 0 : index
    %c0_18 = arith.constant 0 : index
    %c0_19 = arith.constant 0 : index
    %10 = vector.load %arg9[%c0_17, %c0_18, %c0_19] : memref<2x32x96xf32, #tpu.memory_space<vmem>>, vector<1x32x96xf32>
    %11 = vector.shape_cast %10 : vector<1x32x96xf32> to vector<32x96xf32>
    %cst = arith.constant dense<0.000000e+00> : vector<8x96xf32>
    %12 = tpu.matmul %1, %11, %cst {dimension_numbers = #tpu.dot_dimension_numbers<[1], [0], [0], [1], [0, 0, 1, 1], [], []>} : vector<8x32xf32>, vector<32x96xf32>, vector<8x96xf32> -> vector<8x96xf32>
    %c0_20 = arith.constant 0 : index
    %c0_21 = arith.constant 0 : index
    %c0_22 = arith.constant 0 : index
    %13 = vector.load %arg10[%c0_20, %c0_21, %c0_22] : memref<2x1x96xf32, #tpu.memory_space<vmem>>, vector<1x1x96xf32>
    %14 = vector.shape_cast %13 : vector<1x1x96xf32> to vector<1x96xf32>
    %15 = vector.broadcast %14 : vector<1x96xf32> to vector<8x96xf32>
    %16 = arith.addf %12, %15 : vector<8x96xf32>
    %17 = vector.extract_strided_slice %16 {offsets = [0, 0], sizes = [8, 32], strides = [1, 1]} : vector<8x96xf32> to vector<8x32xf32>
    %18 = vector.extract_strided_slice %16 {offsets = [0, 32], sizes = [8, 32], strides = [1, 1]} : vector<8x96xf32> to vector<8x32xf32>
    %19 = vector.extract_strided_slice %16 {offsets = [0, 64], sizes = [8, 32], strides = [1, 1]} : vector<8x96xf32> to vector<8x32xf32>
    %cst_23 = arith.constant dense<0.000000e+00> : vector<32x32xf32>
    %20 = tpu.matmul %4, %18, %cst_23 {dimension_numbers = #tpu.dot_dimension_numbers<[1], [0], [0], [1], [0, 0, 1, 1], [], []>} : vector<32x8xf32>, vector<8x32xf32>, vector<32x32xf32> -> vector<32x32xf32>
    %21 = arith.mulf %20, %5 : vector<32x32xf32>
    %cst_24 = arith.constant dense<0.000000e+00> : vector<32x32xf32>
    %22 = tpu.matmul %4, %19, %cst_24 {dimension_numbers = #tpu.dot_dimension_numbers<[1], [0], [0], [1], [0, 0, 1, 1], [], []>} : vector<32x8xf32>, vector<8x32xf32>, vector<32x32xf32> -> vector<32x32xf32>
    %23 = arith.mulf %22, %5 : vector<32x32xf32>
    %cst_25 = arith.constant dense<0.000000e+00> : vector<8x32xf32>
    %24 = tpu.matmul %17, %21, %cst_25 {dimension_numbers = #tpu.dot_dimension_numbers<[1], [1], [0], [0], [0, 0, 1, 0], [], []>} : vector<8x32xf32>, vector<32x32xf32>, vector<8x32xf32> -> vector<8x32xf32>
    %cst_26 = arith.constant dense<0xFF800000> : vector<8xf32>
    %25 = vector.multi_reduction <maximumf>, %24, %cst_26 [1] : vector<8x32xf32> to vector<8xf32>
    %26 = vector.shape_cast %25 : vector<8xf32> to vector<8x1xf32>
    %27 = vector.broadcast %26 : vector<8x1xf32> to vector<8x32xf32>
    %28 = arith.subf %24, %27 : vector<8x32xf32>
    %29 = math.exp %28 : vector<8x32xf32>
    %cst_27 = arith.constant dense<0.000000e+00> : vector<8x4xf32>
    %30 = tpu.matmul %29, %6, %cst_27 {dimension_numbers = #tpu.dot_dimension_numbers<[1], [0], [0], [1], [0, 0, 1, 1], [], []>} : vector<8x32xf32>, vector<32x4xf32>, vector<8x4xf32> -> vector<8x4xf32>
    %cst_28 = arith.constant dense<0.000000e+00> : vector<8x32xf32>
    %31 = tpu.matmul %30, %6, %cst_28 {dimension_numbers = #tpu.dot_dimension_numbers<[1], [1], [0], [0], [0, 0, 1, 0], [], []>} : vector<8x4xf32>, vector<32x4xf32>, vector<8x32xf32> -> vector<8x32xf32>
    %32 = tpu.reciprocal %31 {approx = true} : vector<8x32xf32> -> vector<8x32xf32>
    %33 = arith.mulf %29, %32 : vector<8x32xf32>
    %cst_29 = arith.constant dense<0.000000e+00> : vector<8x32xf32>
    %34 = tpu.matmul %33, %23, %cst_29 {dimension_numbers = #tpu.dot_dimension_numbers<[1], [0], [0], [1], [0, 0, 1, 1], [], []>} : vector<8x32xf32>, vector<32x32xf32>, vector<8x32xf32> -> vector<8x32xf32>
    %c0_30 = arith.constant 0 : index
    %c0_31 = arith.constant 0 : index
    %c0_32 = arith.constant 0 : index
    %35 = vector.load %arg11[%c0_30, %c0_31, %c0_32] : memref<2x32x32xf32, #tpu.memory_space<vmem>>, vector<1x32x32xf32>
    %36 = vector.shape_cast %35 : vector<1x32x32xf32> to vector<32x32xf32>
    %cst_33 = arith.constant dense<0.000000e+00> : vector<8x32xf32>
    %37 = tpu.matmul %34, %36, %cst_33 {dimension_numbers = #tpu.dot_dimension_numbers<[1], [0], [0], [1], [0, 0, 1, 1], [], []>} : vector<8x32xf32>, vector<32x32xf32>, vector<8x32xf32> -> vector<8x32xf32>
    %c0_34 = arith.constant 0 : index
    %c0_35 = arith.constant 0 : index
    %c0_36 = arith.constant 0 : index
    %38 = vector.load %arg12[%c0_34, %c0_35, %c0_36] : memref<2x1x32xf32, #tpu.memory_space<vmem>>, vector<1x1x32xf32>
    %39 = vector.shape_cast %38 : vector<1x1x32xf32> to vector<1x32xf32>
    %40 = vector.broadcast %39 : vector<1x32xf32> to vector<8x32xf32>
    %41 = arith.addf %37, %40 : vector<8x32xf32>
    %42 = arith.addf %41, %1 : vector<8x32xf32>
    %c0_37 = arith.constant 0 : index
    %c0_38 = arith.constant 0 : index
    %c0_39 = arith.constant 0 : index
    %43 = vector.load %arg13[%c0_37, %c0_38, %c0_39] : memref<2x1x32xf32, #tpu.memory_space<vmem>>, vector<1x1x32xf32>
    %44 = vector.shape_cast %43 : vector<1x1x32xf32> to vector<1x32xf32>
    %c0_40 = arith.constant 0 : index
    %c0_41 = arith.constant 0 : index
    %c0_42 = arith.constant 0 : index
    %45 = vector.load %arg14[%c0_40, %c0_41, %c0_42] : memref<2x1x32xf32, #tpu.memory_space<vmem>>, vector<1x1x32xf32>
    %46 = vector.shape_cast %45 : vector<1x1x32xf32> to vector<1x32xf32>
    %cst_43 = arith.constant dense<0.000000e+00> : vector<8xf32>
    %47 = vector.multi_reduction <add>, %42, %cst_43 [1] : vector<8x32xf32> to vector<8xf32>
    %48 = vector.shape_cast %47 : vector<8xf32> to vector<8x1xf32>
    %cst_44 = arith.constant 3.200000e+01 : f32
    %49 = vector.broadcast %cst_44 : f32 to vector<8x1xf32>
    %50 = arith.divf %48, %49 : vector<8x1xf32>
    %51 = arith.mulf %42, %42 : vector<8x32xf32>
    %cst_45 = arith.constant dense<0.000000e+00> : vector<8xf32>
    %52 = vector.multi_reduction <add>, %51, %cst_45 [1] : vector<8x32xf32> to vector<8xf32>
    %53 = vector.shape_cast %52 : vector<8xf32> to vector<8x1xf32>
    %cst_46 = arith.constant 3.200000e+01 : f32
    %54 = vector.broadcast %cst_46 : f32 to vector<8x1xf32>
    %55 = arith.divf %53, %54 : vector<8x1xf32>
    %56 = arith.mulf %50, %50 : vector<8x1xf32>
    %57 = arith.subf %55, %56 : vector<8x1xf32>
    %58 = vector.broadcast %50 : vector<8x1xf32> to vector<8x32xf32>
    %59 = arith.subf %42, %58 : vector<8x32xf32>
    %cst_47 = arith.constant 9.99999974E-6 : f32
    %60 = vector.broadcast %cst_47 : f32 to vector<8x1xf32>
    %61 = arith.addf %57, %60 : vector<8x1xf32>
    %62 = math.rsqrt %61 : vector<8x1xf32>
    %63 = vector.broadcast %62 : vector<8x1xf32> to vector<8x32xf32>
    %64 = arith.mulf %59, %63 : vector<8x32xf32>
    %65 = vector.broadcast %44 : vector<1x32xf32> to vector<8x32xf32>
    %66 = arith.mulf %64, %65 : vector<8x32xf32>
    %67 = vector.broadcast %46 : vector<1x32xf32> to vector<8x32xf32>
    %68 = arith.addf %66, %67 : vector<8x32xf32>
    %c0_48 = arith.constant 0 : index
    %c0_49 = arith.constant 0 : index
    %c0_50 = arith.constant 0 : index
    %69 = vector.load %arg15[%c0_48, %c0_49, %c0_50] : memref<2x32x32xf32, #tpu.memory_space<vmem>>, vector<1x32x32xf32>
    %70 = vector.shape_cast %69 : vector<1x32x32xf32> to vector<32x32xf32>
    %cst_51 = arith.constant dense<0.000000e+00> : vector<8x32xf32>
    %71 = tpu.matmul %68, %70, %cst_51 {dimension_numbers = #tpu.dot_dimension_numbers<[1], [0], [0], [1], [0, 0, 1, 1], [], []>} : vector<8x32xf32>, vector<32x32xf32>, vector<8x32xf32> -> vector<8x32xf32>
    %c0_52 = arith.constant 0 : index
    %c0_53 = arith.constant 0 : index
    %c0_54 = arith.constant 0 : index
    %72 = vector.load %arg16[%c0_52, %c0_53, %c0_54] : memref<2x1x32xf32, #tpu.memory_space<vmem>>, vector<1x1x32xf32>
    %73 = vector.shape_cast %72 : vector<1x1x32xf32> to vector<1x32xf32>
    %74 = vector.broadcast %73 : vector<1x32xf32> to vector<8x32xf32>
    %75 = arith.addf %71, %74 : vector<8x32xf32>
    %c0_55 = arith.constant 0 : index
    %c0_56 = arith.constant 0 : index
    %c0_57 = arith.constant 0 : index
    %76 = vector.load %arg17[%c0_55, %c0_56, %c0_57] : memref<2x32x64xf32, #tpu.memory_space<vmem>>, vector<1x32x64xf32>
    %77 = vector.shape_cast %76 : vector<1x32x64xf32> to vector<32x64xf32>
    %cst_58 = arith.constant dense<0.000000e+00> : vector<10x64xf32>
    %78 = tpu.matmul %3, %77, %cst_58 {dimension_numbers = #tpu.dot_dimension_numbers<[1], [0], [0], [1], [0, 0, 1, 1], [], []>} : vector<10x32xf32>, vector<32x64xf32>, vector<10x64xf32> -> vector<10x64xf32>
    %c0_59 = arith.constant 0 : index
    %c0_60 = arith.constant 0 : index
    %c0_61 = arith.constant 0 : index
    %79 = vector.load %arg18[%c0_59, %c0_60, %c0_61] : memref<2x1x64xf32, #tpu.memory_space<vmem>>, vector<1x1x64xf32>
    %80 = vector.shape_cast %79 : vector<1x1x64xf32> to vector<1x64xf32>
    %81 = vector.broadcast %80 : vector<1x64xf32> to vector<10x64xf32>
    %82 = arith.addf %78, %81 : vector<10x64xf32>
    %83 = vector.extract_strided_slice %82 {offsets = [0, 0], sizes = [10, 32], strides = [1, 1]} : vector<10x64xf32> to vector<10x32xf32>
    %84 = vector.extract_strided_slice %82 {offsets = [0, 32], sizes = [10, 32], strides = [1, 1]} : vector<10x64xf32> to vector<10x32xf32>
    %cst_62 = arith.constant dense<0.000000e+00> : vector<40x32xf32>
    %85 = tpu.matmul %7, %83, %cst_62 {dimension_numbers = #tpu.dot_dimension_numbers<[1], [0], [0], [1], [0, 0, 1, 1], [], []>} : vector<40x10xf32>, vector<10x32xf32>, vector<40x32xf32> -> vector<40x32xf32>
    %86 = arith.mulf %85, %8 : vector<40x32xf32>
    %cst_63 = arith.constant dense<0.000000e+00> : vector<40x32xf32>
    %87 = tpu.matmul %7, %84, %cst_63 {dimension_numbers = #tpu.dot_dimension_numbers<[1], [0], [0], [1], [0, 0, 1, 1], [], []>} : vector<40x10xf32>, vector<10x32xf32>, vector<40x32xf32> -> vector<40x32xf32>
    %88 = arith.mulf %87, %8 : vector<40x32xf32>
    %cst_64 = arith.constant dense<0.000000e+00> : vector<8x40xf32>
    %89 = tpu.matmul %75, %86, %cst_64 {dimension_numbers = #tpu.dot_dimension_numbers<[1], [1], [0], [0], [0, 0, 1, 0], [], []>} : vector<8x32xf32>, vector<40x32xf32>, vector<8x40xf32> -> vector<8x40xf32>
    %cst_65 = arith.constant dense<0xFF800000> : vector<8xf32>
    %90 = vector.multi_reduction <maximumf>, %89, %cst_65 [1] : vector<8x40xf32> to vector<8xf32>
    %91 = vector.shape_cast %90 : vector<8xf32> to vector<8x1xf32>
    %92 = vector.broadcast %91 : vector<8x1xf32> to vector<8x40xf32>
    %93 = arith.subf %89, %92 : vector<8x40xf32>
    %94 = math.exp %93 : vector<8x40xf32>
    %cst_66 = arith.constant dense<0.000000e+00> : vector<8x4xf32>
    %95 = tpu.matmul %94, %9, %cst_66 {dimension_numbers = #tpu.dot_dimension_numbers<[1], [0], [0], [1], [0, 0, 1, 1], [], []>} : vector<8x40xf32>, vector<40x4xf32>, vector<8x4xf32> -> vector<8x4xf32>
    %cst_67 = arith.constant dense<0.000000e+00> : vector<8x40xf32>
    %96 = tpu.matmul %95, %9, %cst_67 {dimension_numbers = #tpu.dot_dimension_numbers<[1], [1], [0], [0], [0, 0, 1, 0], [], []>} : vector<8x4xf32>, vector<40x4xf32>, vector<8x40xf32> -> vector<8x40xf32>
    %97 = tpu.reciprocal %96 {approx = true} : vector<8x40xf32> -> vector<8x40xf32>
    %98 = arith.mulf %94, %97 : vector<8x40xf32>
    %cst_68 = arith.constant dense<0.000000e+00> : vector<8x32xf32>
    %99 = tpu.matmul %98, %88, %cst_68 {dimension_numbers = #tpu.dot_dimension_numbers<[1], [0], [0], [1], [0, 0, 1, 1], [], []>} : vector<8x40xf32>, vector<40x32xf32>, vector<8x32xf32> -> vector<8x32xf32>
    %c0_69 = arith.constant 0 : index
    %c0_70 = arith.constant 0 : index
    %c0_71 = arith.constant 0 : index
    %100 = vector.load %arg19[%c0_69, %c0_70, %c0_71] : memref<2x32x32xf32, #tpu.memory_space<vmem>>, vector<1x32x32xf32>
    %101 = vector.shape_cast %100 : vector<1x32x32xf32> to vector<32x32xf32>
    %cst_72 = arith.constant dense<0.000000e+00> : vector<8x32xf32>
    %102 = tpu.matmul %99, %101, %cst_72 {dimension_numbers = #tpu.dot_dimension_numbers<[1], [0], [0], [1], [0, 0, 1, 1], [], []>} : vector<8x32xf32>, vector<32x32xf32>, vector<8x32xf32> -> vector<8x32xf32>
    %c0_73 = arith.constant 0 : index
    %c0_74 = arith.constant 0 : index
    %c0_75 = arith.constant 0 : index
    %103 = vector.load %arg20[%c0_73, %c0_74, %c0_75] : memref<2x1x32xf32, #tpu.memory_space<vmem>>, vector<1x1x32xf32>
    %104 = vector.shape_cast %103 : vector<1x1x32xf32> to vector<1x32xf32>
    %105 = vector.broadcast %104 : vector<1x32xf32> to vector<8x32xf32>
    %106 = arith.addf %102, %105 : vector<8x32xf32>
    %107 = arith.addf %106, %68 : vector<8x32xf32>
    %c0_76 = arith.constant 0 : index
    %c0_77 = arith.constant 0 : index
    %c0_78 = arith.constant 0 : index
    %108 = vector.load %arg21[%c0_76, %c0_77, %c0_78] : memref<2x1x32xf32, #tpu.memory_space<vmem>>, vector<1x1x32xf32>
    %109 = vector.shape_cast %108 : vector<1x1x32xf32> to vector<1x32xf32>
    %c0_79 = arith.constant 0 : index
    %c0_80 = arith.constant 0 : index
    %c0_81 = arith.constant 0 : index
    %110 = vector.load %arg22[%c0_79, %c0_80, %c0_81] : memref<2x1x32xf32, #tpu.memory_space<vmem>>, vector<1x1x32xf32>
    %111 = vector.shape_cast %110 : vector<1x1x32xf32> to vector<1x32xf32>
    %cst_82 = arith.constant dense<0.000000e+00> : vector<8xf32>
    %112 = vector.multi_reduction <add>, %107, %cst_82 [1] : vector<8x32xf32> to vector<8xf32>
    %113 = vector.shape_cast %112 : vector<8xf32> to vector<8x1xf32>
    %cst_83 = arith.constant 3.200000e+01 : f32
    %114 = vector.broadcast %cst_83 : f32 to vector<8x1xf32>
    %115 = arith.divf %113, %114 : vector<8x1xf32>
    %116 = arith.mulf %107, %107 : vector<8x32xf32>
    %cst_84 = arith.constant dense<0.000000e+00> : vector<8xf32>
    %117 = vector.multi_reduction <add>, %116, %cst_84 [1] : vector<8x32xf32> to vector<8xf32>
    %118 = vector.shape_cast %117 : vector<8xf32> to vector<8x1xf32>
    %cst_85 = arith.constant 3.200000e+01 : f32
    %119 = vector.broadcast %cst_85 : f32 to vector<8x1xf32>
    %120 = arith.divf %118, %119 : vector<8x1xf32>
    %121 = arith.mulf %115, %115 : vector<8x1xf32>
    %122 = arith.subf %120, %121 : vector<8x1xf32>
    %123 = vector.broadcast %115 : vector<8x1xf32> to vector<8x32xf32>
    %124 = arith.subf %107, %123 : vector<8x32xf32>
    %cst_86 = arith.constant 9.99999974E-6 : f32
    %125 = vector.broadcast %cst_86 : f32 to vector<8x1xf32>
    %126 = arith.addf %122, %125 : vector<8x1xf32>
    %127 = math.rsqrt %126 : vector<8x1xf32>
    %128 = vector.broadcast %127 : vector<8x1xf32> to vector<8x32xf32>
    %129 = arith.mulf %124, %128 : vector<8x32xf32>
    %130 = vector.broadcast %109 : vector<1x32xf32> to vector<8x32xf32>
    %131 = arith.mulf %129, %130 : vector<8x32xf32>
    %132 = vector.broadcast %111 : vector<1x32xf32> to vector<8x32xf32>
    %133 = arith.addf %131, %132 : vector<8x32xf32>
    %c0_87 = arith.constant 0 : index
    %c0_88 = arith.constant 0 : index
    %c0_89 = arith.constant 0 : index
    %134 = vector.load %arg23[%c0_87, %c0_88, %c0_89] : memref<2x32x64xf32, #tpu.memory_space<vmem>>, vector<1x32x64xf32>
    %135 = vector.shape_cast %134 : vector<1x32x64xf32> to vector<32x64xf32>
    %cst_90 = arith.constant dense<0.000000e+00> : vector<8x64xf32>
    %136 = tpu.matmul %133, %135, %cst_90 {dimension_numbers = #tpu.dot_dimension_numbers<[1], [0], [0], [1], [0, 0, 1, 1], [], []>} : vector<8x32xf32>, vector<32x64xf32>, vector<8x64xf32> -> vector<8x64xf32>
    %c0_91 = arith.constant 0 : index
    %c0_92 = arith.constant 0 : index
    %c0_93 = arith.constant 0 : index
    %137 = vector.load %arg24[%c0_91, %c0_92, %c0_93] : memref<2x1x64xf32, #tpu.memory_space<vmem>>, vector<1x1x64xf32>
    %138 = vector.shape_cast %137 : vector<1x1x64xf32> to vector<1x64xf32>
    %139 = vector.broadcast %138 : vector<1x64xf32> to vector<8x64xf32>
    %140 = arith.addf %136, %139 : vector<8x64xf32>
    %cst_94 = arith.constant 0.000000e+00 : f32
    %141 = vector.broadcast %cst_94 : f32 to vector<8x64xf32>
    %142 = arith.maximumf %140, %141 : vector<8x64xf32>
    %c0_95 = arith.constant 0 : index
    %c0_96 = arith.constant 0 : index
    %c0_97 = arith.constant 0 : index
    %143 = vector.load %arg25[%c0_95, %c0_96, %c0_97] : memref<2x64x32xf32, #tpu.memory_space<vmem>>, vector<1x64x32xf32>
    %144 = vector.shape_cast %143 : vector<1x64x32xf32> to vector<64x32xf32>
    %cst_98 = arith.constant dense<0.000000e+00> : vector<8x32xf32>
    %145 = tpu.matmul %142, %144, %cst_98 {dimension_numbers = #tpu.dot_dimension_numbers<[1], [0], [0], [1], [0, 0, 1, 1], [], []>} : vector<8x64xf32>, vector<64x32xf32>, vector<8x32xf32> -> vector<8x32xf32>
    %c0_99 = arith.constant 0 : index
    %c0_100 = arith.constant 0 : index
    %c0_101 = arith.constant 0 : index
    %146 = vector.load %arg26[%c0_99, %c0_100, %c0_101] : memref<2x1x32xf32, #tpu.memory_space<vmem>>, vector<1x1x32xf32>
    %147 = vector.shape_cast %146 : vector<1x1x32xf32> to vector<1x32xf32>
    %148 = vector.broadcast %147 : vector<1x32xf32> to vector<8x32xf32>
    %149 = arith.addf %145, %148 : vector<8x32xf32>
    %150 = arith.addf %149, %133 : vector<8x32xf32>
    %c0_102 = arith.constant 0 : index
    %c0_103 = arith.constant 0 : index
    %c0_104 = arith.constant 0 : index
    %151 = vector.load %arg27[%c0_102, %c0_103, %c0_104] : memref<2x1x32xf32, #tpu.memory_space<vmem>>, vector<1x1x32xf32>
    %152 = vector.shape_cast %151 : vector<1x1x32xf32> to vector<1x32xf32>
    %c0_105 = arith.constant 0 : index
    %c0_106 = arith.constant 0 : index
    %c0_107 = arith.constant 0 : index
    %153 = vector.load %arg28[%c0_105, %c0_106, %c0_107] : memref<2x1x32xf32, #tpu.memory_space<vmem>>, vector<1x1x32xf32>
    %154 = vector.shape_cast %153 : vector<1x1x32xf32> to vector<1x32xf32>
    %cst_108 = arith.constant dense<0.000000e+00> : vector<8xf32>
    %155 = vector.multi_reduction <add>, %150, %cst_108 [1] : vector<8x32xf32> to vector<8xf32>
    %156 = vector.shape_cast %155 : vector<8xf32> to vector<8x1xf32>
    %cst_109 = arith.constant 3.200000e+01 : f32
    %157 = vector.broadcast %cst_109 : f32 to vector<8x1xf32>
    %158 = arith.divf %156, %157 : vector<8x1xf32>
    %159 = arith.mulf %150, %150 : vector<8x32xf32>
    %cst_110 = arith.constant dense<0.000000e+00> : vector<8xf32>
    %160 = vector.multi_reduction <add>, %159, %cst_110 [1] : vector<8x32xf32> to vector<8xf32>
    %161 = vector.shape_cast %160 : vector<8xf32> to vector<8x1xf32>
    %cst_111 = arith.constant 3.200000e+01 : f32
    %162 = vector.broadcast %cst_111 : f32 to vector<8x1xf32>
    %163 = arith.divf %161, %162 : vector<8x1xf32>
    %164 = arith.mulf %158, %158 : vector<8x1xf32>
    %165 = arith.subf %163, %164 : vector<8x1xf32>
    %166 = vector.broadcast %158 : vector<8x1xf32> to vector<8x32xf32>
    %167 = arith.subf %150, %166 : vector<8x32xf32>
    %cst_112 = arith.constant 9.99999974E-6 : f32
    %168 = vector.broadcast %cst_112 : f32 to vector<8x1xf32>
    %169 = arith.addf %165, %168 : vector<8x1xf32>
    %170 = math.rsqrt %169 : vector<8x1xf32>
    %171 = vector.broadcast %170 : vector<8x1xf32> to vector<8x32xf32>
    %172 = arith.mulf %167, %171 : vector<8x32xf32>
    %173 = vector.broadcast %152 : vector<1x32xf32> to vector<8x32xf32>
    %174 = arith.mulf %172, %173 : vector<8x32xf32>
    %175 = vector.broadcast %154 : vector<1x32xf32> to vector<8x32xf32>
    %176 = arith.addf %174, %175 : vector<8x32xf32>
    %c1 = arith.constant 1 : index
    %c0_113 = arith.constant 0 : index
    %c0_114 = arith.constant 0 : index
    %177 = vector.load %arg9[%c1, %c0_113, %c0_114] : memref<2x32x96xf32, #tpu.memory_space<vmem>>, vector<1x32x96xf32>
    %178 = vector.shape_cast %177 : vector<1x32x96xf32> to vector<32x96xf32>
    %cst_115 = arith.constant dense<0.000000e+00> : vector<8x96xf32>
    %179 = tpu.matmul %176, %178, %cst_115 {dimension_numbers = #tpu.dot_dimension_numbers<[1], [0], [0], [1], [0, 0, 1, 1], [], []>} : vector<8x32xf32>, vector<32x96xf32>, vector<8x96xf32> -> vector<8x96xf32>
    %c1_116 = arith.constant 1 : index
    %c0_117 = arith.constant 0 : index
    %c0_118 = arith.constant 0 : index
    %180 = vector.load %arg10[%c1_116, %c0_117, %c0_118] : memref<2x1x96xf32, #tpu.memory_space<vmem>>, vector<1x1x96xf32>
    %181 = vector.shape_cast %180 : vector<1x1x96xf32> to vector<1x96xf32>
    %182 = vector.broadcast %181 : vector<1x96xf32> to vector<8x96xf32>
    %183 = arith.addf %179, %182 : vector<8x96xf32>
    %184 = vector.extract_strided_slice %183 {offsets = [0, 0], sizes = [8, 32], strides = [1, 1]} : vector<8x96xf32> to vector<8x32xf32>
    %185 = vector.extract_strided_slice %183 {offsets = [0, 32], sizes = [8, 32], strides = [1, 1]} : vector<8x96xf32> to vector<8x32xf32>
    %186 = vector.extract_strided_slice %183 {offsets = [0, 64], sizes = [8, 32], strides = [1, 1]} : vector<8x96xf32> to vector<8x32xf32>
    %cst_119 = arith.constant dense<0.000000e+00> : vector<32x32xf32>
    %187 = tpu.matmul %4, %185, %cst_119 {dimension_numbers = #tpu.dot_dimension_numbers<[1], [0], [0], [1], [0, 0, 1, 1], [], []>} : vector<32x8xf32>, vector<8x32xf32>, vector<32x32xf32> -> vector<32x32xf32>
    %188 = arith.mulf %187, %5 : vector<32x32xf32>
    %cst_120 = arith.constant dense<0.000000e+00> : vector<32x32xf32>
    %189 = tpu.matmul %4, %186, %cst_120 {dimension_numbers = #tpu.dot_dimension_numbers<[1], [0], [0], [1], [0, 0, 1, 1], [], []>} : vector<32x8xf32>, vector<8x32xf32>, vector<32x32xf32> -> vector<32x32xf32>
    %190 = arith.mulf %189, %5 : vector<32x32xf32>
    %cst_121 = arith.constant dense<0.000000e+00> : vector<8x32xf32>
    %191 = tpu.matmul %184, %188, %cst_121 {dimension_numbers = #tpu.dot_dimension_numbers<[1], [1], [0], [0], [0, 0, 1, 0], [], []>} : vector<8x32xf32>, vector<32x32xf32>, vector<8x32xf32> -> vector<8x32xf32>
    %cst_122 = arith.constant dense<0xFF800000> : vector<8xf32>
    %192 = vector.multi_reduction <maximumf>, %191, %cst_122 [1] : vector<8x32xf32> to vector<8xf32>
    %193 = vector.shape_cast %192 : vector<8xf32> to vector<8x1xf32>
    %194 = vector.broadcast %193 : vector<8x1xf32> to vector<8x32xf32>
    %195 = arith.subf %191, %194 : vector<8x32xf32>
    %196 = math.exp %195 : vector<8x32xf32>
    %cst_123 = arith.constant dense<0.000000e+00> : vector<8x4xf32>
    %197 = tpu.matmul %196, %6, %cst_123 {dimension_numbers = #tpu.dot_dimension_numbers<[1], [0], [0], [1], [0, 0, 1, 1], [], []>} : vector<8x32xf32>, vector<32x4xf32>, vector<8x4xf32> -> vector<8x4xf32>
    %cst_124 = arith.constant dense<0.000000e+00> : vector<8x32xf32>
    %198 = tpu.matmul %197, %6, %cst_124 {dimension_numbers = #tpu.dot_dimension_numbers<[1], [1], [0], [0], [0, 0, 1, 0], [], []>} : vector<8x4xf32>, vector<32x4xf32>, vector<8x32xf32> -> vector<8x32xf32>
    %199 = tpu.reciprocal %198 {approx = true} : vector<8x32xf32> -> vector<8x32xf32>
    %200 = arith.mulf %196, %199 : vector<8x32xf32>
    %cst_125 = arith.constant dense<0.000000e+00> : vector<8x32xf32>
    %201 = tpu.matmul %200, %190, %cst_125 {dimension_numbers = #tpu.dot_dimension_numbers<[1], [0], [0], [1], [0, 0, 1, 1], [], []>} : vector<8x32xf32>, vector<32x32xf32>, vector<8x32xf32> -> vector<8x32xf32>
    %c1_126 = arith.constant 1 : index
    %c0_127 = arith.constant 0 : index
    %c0_128 = arith.constant 0 : index
    %202 = vector.load %arg11[%c1_126, %c0_127, %c0_128] : memref<2x32x32xf32, #tpu.memory_space<vmem>>, vector<1x32x32xf32>
    %203 = vector.shape_cast %202 : vector<1x32x32xf32> to vector<32x32xf32>
    %cst_129 = arith.constant dense<0.000000e+00> : vector<8x32xf32>
    %204 = tpu.matmul %201, %203, %cst_129 {dimension_numbers = #tpu.dot_dimension_numbers<[1], [0], [0], [1], [0, 0, 1, 1], [], []>} : vector<8x32xf32>, vector<32x32xf32>, vector<8x32xf32> -> vector<8x32xf32>
    %c1_130 = arith.constant 1 : index
    %c0_131 = arith.constant 0 : index
    %c0_132 = arith.constant 0 : index
    %205 = vector.load %arg12[%c1_130, %c0_131, %c0_132] : memref<2x1x32xf32, #tpu.memory_space<vmem>>, vector<1x1x32xf32>
    %206 = vector.shape_cast %205 : vector<1x1x32xf32> to vector<1x32xf32>
    %207 = vector.broadcast %206 : vector<1x32xf32> to vector<8x32xf32>
    %208 = arith.addf %204, %207 : vector<8x32xf32>
    %209 = arith.addf %208, %176 : vector<8x32xf32>
    %c1_133 = arith.constant 1 : index
    %c0_134 = arith.constant 0 : index
    %c0_135 = arith.constant 0 : index
    %210 = vector.load %arg13[%c1_133, %c0_134, %c0_135] : memref<2x1x32xf32, #tpu.memory_space<vmem>>, vector<1x1x32xf32>
    %211 = vector.shape_cast %210 : vector<1x1x32xf32> to vector<1x32xf32>
    %c1_136 = arith.constant 1 : index
    %c0_137 = arith.constant 0 : index
    %c0_138 = arith.constant 0 : index
    %212 = vector.load %arg14[%c1_136, %c0_137, %c0_138] : memref<2x1x32xf32, #tpu.memory_space<vmem>>, vector<1x1x32xf32>
    %213 = vector.shape_cast %212 : vector<1x1x32xf32> to vector<1x32xf32>
    %cst_139 = arith.constant dense<0.000000e+00> : vector<8xf32>
    %214 = vector.multi_reduction <add>, %209, %cst_139 [1] : vector<8x32xf32> to vector<8xf32>
    %215 = vector.shape_cast %214 : vector<8xf32> to vector<8x1xf32>
    %cst_140 = arith.constant 3.200000e+01 : f32
    %216 = vector.broadcast %cst_140 : f32 to vector<8x1xf32>
    %217 = arith.divf %215, %216 : vector<8x1xf32>
    %218 = arith.mulf %209, %209 : vector<8x32xf32>
    %cst_141 = arith.constant dense<0.000000e+00> : vector<8xf32>
    %219 = vector.multi_reduction <add>, %218, %cst_141 [1] : vector<8x32xf32> to vector<8xf32>
    %220 = vector.shape_cast %219 : vector<8xf32> to vector<8x1xf32>
    %cst_142 = arith.constant 3.200000e+01 : f32
    %221 = vector.broadcast %cst_142 : f32 to vector<8x1xf32>
    %222 = arith.divf %220, %221 : vector<8x1xf32>
    %223 = arith.mulf %217, %217 : vector<8x1xf32>
    %224 = arith.subf %222, %223 : vector<8x1xf32>
    %225 = vector.broadcast %217 : vector<8x1xf32> to vector<8x32xf32>
    %226 = arith.subf %209, %225 : vector<8x32xf32>
    %cst_143 = arith.constant 9.99999974E-6 : f32
    %227 = vector.broadcast %cst_143 : f32 to vector<8x1xf32>
    %228 = arith.addf %224, %227 : vector<8x1xf32>
    %229 = math.rsqrt %228 : vector<8x1xf32>
    %230 = vector.broadcast %229 : vector<8x1xf32> to vector<8x32xf32>
    %231 = arith.mulf %226, %230 : vector<8x32xf32>
    %232 = vector.broadcast %211 : vector<1x32xf32> to vector<8x32xf32>
    %233 = arith.mulf %231, %232 : vector<8x32xf32>
    %234 = vector.broadcast %213 : vector<1x32xf32> to vector<8x32xf32>
    %235 = arith.addf %233, %234 : vector<8x32xf32>
    %c1_144 = arith.constant 1 : index
    %c0_145 = arith.constant 0 : index
    %c0_146 = arith.constant 0 : index
    %236 = vector.load %arg15[%c1_144, %c0_145, %c0_146] : memref<2x32x32xf32, #tpu.memory_space<vmem>>, vector<1x32x32xf32>
    %237 = vector.shape_cast %236 : vector<1x32x32xf32> to vector<32x32xf32>
    %cst_147 = arith.constant dense<0.000000e+00> : vector<8x32xf32>
    %238 = tpu.matmul %235, %237, %cst_147 {dimension_numbers = #tpu.dot_dimension_numbers<[1], [0], [0], [1], [0, 0, 1, 1], [], []>} : vector<8x32xf32>, vector<32x32xf32>, vector<8x32xf32> -> vector<8x32xf32>
    %c1_148 = arith.constant 1 : index
    %c0_149 = arith.constant 0 : index
    %c0_150 = arith.constant 0 : index
    %239 = vector.load %arg16[%c1_148, %c0_149, %c0_150] : memref<2x1x32xf32, #tpu.memory_space<vmem>>, vector<1x1x32xf32>
    %240 = vector.shape_cast %239 : vector<1x1x32xf32> to vector<1x32xf32>
    %241 = vector.broadcast %240 : vector<1x32xf32> to vector<8x32xf32>
    %242 = arith.addf %238, %241 : vector<8x32xf32>
    %c1_151 = arith.constant 1 : index
    %c0_152 = arith.constant 0 : index
    %c0_153 = arith.constant 0 : index
    %243 = vector.load %arg17[%c1_151, %c0_152, %c0_153] : memref<2x32x64xf32, #tpu.memory_space<vmem>>, vector<1x32x64xf32>
    %244 = vector.shape_cast %243 : vector<1x32x64xf32> to vector<32x64xf32>
    %cst_154 = arith.constant dense<0.000000e+00> : vector<10x64xf32>
    %245 = tpu.matmul %3, %244, %cst_154 {dimension_numbers = #tpu.dot_dimension_numbers<[1], [0], [0], [1], [0, 0, 1, 1], [], []>} : vector<10x32xf32>, vector<32x64xf32>, vector<10x64xf32> -> vector<10x64xf32>
    %c1_155 = arith.constant 1 : index
    %c0_156 = arith.constant 0 : index
    %c0_157 = arith.constant 0 : index
    %246 = vector.load %arg18[%c1_155, %c0_156, %c0_157] : memref<2x1x64xf32, #tpu.memory_space<vmem>>, vector<1x1x64xf32>
    %247 = vector.shape_cast %246 : vector<1x1x64xf32> to vector<1x64xf32>
    %248 = vector.broadcast %247 : vector<1x64xf32> to vector<10x64xf32>
    %249 = arith.addf %245, %248 : vector<10x64xf32>
    %250 = vector.extract_strided_slice %249 {offsets = [0, 0], sizes = [10, 32], strides = [1, 1]} : vector<10x64xf32> to vector<10x32xf32>
    %251 = vector.extract_strided_slice %249 {offsets = [0, 32], sizes = [10, 32], strides = [1, 1]} : vector<10x64xf32> to vector<10x32xf32>
    %cst_158 = arith.constant dense<0.000000e+00> : vector<40x32xf32>
    %252 = tpu.matmul %7, %250, %cst_158 {dimension_numbers = #tpu.dot_dimension_numbers<[1], [0], [0], [1], [0, 0, 1, 1], [], []>} : vector<40x10xf32>, vector<10x32xf32>, vector<40x32xf32> -> vector<40x32xf32>
    %253 = arith.mulf %252, %8 : vector<40x32xf32>
    %cst_159 = arith.constant dense<0.000000e+00> : vector<40x32xf32>
    %254 = tpu.matmul %7, %251, %cst_159 {dimension_numbers = #tpu.dot_dimension_numbers<[1], [0], [0], [1], [0, 0, 1, 1], [], []>} : vector<40x10xf32>, vector<10x32xf32>, vector<40x32xf32> -> vector<40x32xf32>
    %255 = arith.mulf %254, %8 : vector<40x32xf32>
    %cst_160 = arith.constant dense<0.000000e+00> : vector<8x40xf32>
    %256 = tpu.matmul %242, %253, %cst_160 {dimension_numbers = #tpu.dot_dimension_numbers<[1], [1], [0], [0], [0, 0, 1, 0], [], []>} : vector<8x32xf32>, vector<40x32xf32>, vector<8x40xf32> -> vector<8x40xf32>
    %cst_161 = arith.constant dense<0xFF800000> : vector<8xf32>
    %257 = vector.multi_reduction <maximumf>, %256, %cst_161 [1] : vector<8x40xf32> to vector<8xf32>
    %258 = vector.shape_cast %257 : vector<8xf32> to vector<8x1xf32>
    %259 = vector.broadcast %258 : vector<8x1xf32> to vector<8x40xf32>
    %260 = arith.subf %256, %259 : vector<8x40xf32>
    %261 = math.exp %260 : vector<8x40xf32>
    %cst_162 = arith.constant dense<0.000000e+00> : vector<8x4xf32>
    %262 = tpu.matmul %261, %9, %cst_162 {dimension_numbers = #tpu.dot_dimension_numbers<[1], [0], [0], [1], [0, 0, 1, 1], [], []>} : vector<8x40xf32>, vector<40x4xf32>, vector<8x4xf32> -> vector<8x4xf32>
    %cst_163 = arith.constant dense<0.000000e+00> : vector<8x40xf32>
    %263 = tpu.matmul %262, %9, %cst_163 {dimension_numbers = #tpu.dot_dimension_numbers<[1], [1], [0], [0], [0, 0, 1, 0], [], []>} : vector<8x4xf32>, vector<40x4xf32>, vector<8x40xf32> -> vector<8x40xf32>
    %264 = tpu.reciprocal %263 {approx = true} : vector<8x40xf32> -> vector<8x40xf32>
    %265 = arith.mulf %261, %264 : vector<8x40xf32>
    %cst_164 = arith.constant dense<0.000000e+00> : vector<8x32xf32>
    %266 = tpu.matmul %265, %255, %cst_164 {dimension_numbers = #tpu.dot_dimension_numbers<[1], [0], [0], [1], [0, 0, 1, 1], [], []>} : vector<8x40xf32>, vector<40x32xf32>, vector<8x32xf32> -> vector<8x32xf32>
    %c1_165 = arith.constant 1 : index
    %c0_166 = arith.constant 0 : index
    %c0_167 = arith.constant 0 : index
    %267 = vector.load %arg19[%c1_165, %c0_166, %c0_167] : memref<2x32x32xf32, #tpu.memory_space<vmem>>, vector<1x32x32xf32>
    %268 = vector.shape_cast %267 : vector<1x32x32xf32> to vector<32x32xf32>
    %cst_168 = arith.constant dense<0.000000e+00> : vector<8x32xf32>
    %269 = tpu.matmul %266, %268, %cst_168 {dimension_numbers = #tpu.dot_dimension_numbers<[1], [0], [0], [1], [0, 0, 1, 1], [], []>} : vector<8x32xf32>, vector<32x32xf32>, vector<8x32xf32> -> vector<8x32xf32>
    %c1_169 = arith.constant 1 : index
    %c0_170 = arith.constant 0 : index
    %c0_171 = arith.constant 0 : index
    %270 = vector.load %arg20[%c1_169, %c0_170, %c0_171] : memref<2x1x32xf32, #tpu.memory_space<vmem>>, vector<1x1x32xf32>
    %271 = vector.shape_cast %270 : vector<1x1x32xf32> to vector<1x32xf32>
    %272 = vector.broadcast %271 : vector<1x32xf32> to vector<8x32xf32>
    %273 = arith.addf %269, %272 : vector<8x32xf32>
    %274 = arith.addf %273, %235 : vector<8x32xf32>
    %c1_172 = arith.constant 1 : index
    %c0_173 = arith.constant 0 : index
    %c0_174 = arith.constant 0 : index
    %275 = vector.load %arg21[%c1_172, %c0_173, %c0_174] : memref<2x1x32xf32, #tpu.memory_space<vmem>>, vector<1x1x32xf32>
    %276 = vector.shape_cast %275 : vector<1x1x32xf32> to vector<1x32xf32>
    %c1_175 = arith.constant 1 : index
    %c0_176 = arith.constant 0 : index
    %c0_177 = arith.constant 0 : index
    %277 = vector.load %arg22[%c1_175, %c0_176, %c0_177] : memref<2x1x32xf32, #tpu.memory_space<vmem>>, vector<1x1x32xf32>
    %278 = vector.shape_cast %277 : vector<1x1x32xf32> to vector<1x32xf32>
    %cst_178 = arith.constant dense<0.000000e+00> : vector<8xf32>
    %279 = vector.multi_reduction <add>, %274, %cst_178 [1] : vector<8x32xf32> to vector<8xf32>
    %280 = vector.shape_cast %279 : vector<8xf32> to vector<8x1xf32>
    %cst_179 = arith.constant 3.200000e+01 : f32
    %281 = vector.broadcast %cst_179 : f32 to vector<8x1xf32>
    %282 = arith.divf %280, %281 : vector<8x1xf32>
    %283 = arith.mulf %274, %274 : vector<8x32xf32>
    %cst_180 = arith.constant dense<0.000000e+00> : vector<8xf32>
    %284 = vector.multi_reduction <add>, %283, %cst_180 [1] : vector<8x32xf32> to vector<8xf32>
    %285 = vector.shape_cast %284 : vector<8xf32> to vector<8x1xf32>
    %cst_181 = arith.constant 3.200000e+01 : f32
    %286 = vector.broadcast %cst_181 : f32 to vector<8x1xf32>
    %287 = arith.divf %285, %286 : vector<8x1xf32>
    %288 = arith.mulf %282, %282 : vector<8x1xf32>
    %289 = arith.subf %287, %288 : vector<8x1xf32>
    %290 = vector.broadcast %282 : vector<8x1xf32> to vector<8x32xf32>
    %291 = arith.subf %274, %290 : vector<8x32xf32>
    %cst_182 = arith.constant 9.99999974E-6 : f32
    %292 = vector.broadcast %cst_182 : f32 to vector<8x1xf32>
    %293 = arith.addf %289, %292 : vector<8x1xf32>
    %294 = math.rsqrt %293 : vector<8x1xf32>
    %295 = vector.broadcast %294 : vector<8x1xf32> to vector<8x32xf32>
    %296 = arith.mulf %291, %295 : vector<8x32xf32>
    %297 = vector.broadcast %276 : vector<1x32xf32> to vector<8x32xf32>
    %298 = arith.mulf %296, %297 : vector<8x32xf32>
    %299 = vector.broadcast %278 : vector<1x32xf32> to vector<8x32xf32>
    %300 = arith.addf %298, %299 : vector<8x32xf32>
    %c1_183 = arith.constant 1 : index
    %c0_184 = arith.constant 0 : index
    %c0_185 = arith.constant 0 : index
    %301 = vector.load %arg23[%c1_183, %c0_184, %c0_185] : memref<2x32x64xf32, #tpu.memory_space<vmem>>, vector<1x32x64xf32>
    %302 = vector.shape_cast %301 : vector<1x32x64xf32> to vector<32x64xf32>
    %cst_186 = arith.constant dense<0.000000e+00> : vector<8x64xf32>
    %303 = tpu.matmul %300, %302, %cst_186 {dimension_numbers = #tpu.dot_dimension_numbers<[1], [0], [0], [1], [0, 0, 1, 1], [], []>} : vector<8x32xf32>, vector<32x64xf32>, vector<8x64xf32> -> vector<8x64xf32>
    %c1_187 = arith.constant 1 : index
    %c0_188 = arith.constant 0 : index
    %c0_189 = arith.constant 0 : index
    %304 = vector.load %arg24[%c1_187, %c0_188, %c0_189] : memref<2x1x64xf32, #tpu.memory_space<vmem>>, vector<1x1x64xf32>
    %305 = vector.shape_cast %304 : vector<1x1x64xf32> to vector<1x64xf32>
    %306 = vector.broadcast %305 : vector<1x64xf32> to vector<8x64xf32>
    %307 = arith.addf %303, %306 : vector<8x64xf32>
    %cst_190 = arith.constant 0.000000e+00 : f32
    %308 = vector.broadcast %cst_190 : f32 to vector<8x64xf32>
    %309 = arith.maximumf %307, %308 : vector<8x64xf32>
    %c1_191 = arith.constant 1 : index
    %c0_192 = arith.constant 0 : index
    %c0_193 = arith.constant 0 : index
    %310 = vector.load %arg25[%c1_191, %c0_192, %c0_193] : memref<2x64x32xf32, #tpu.memory_space<vmem>>, vector<1x64x32xf32>
    %311 = vector.shape_cast %310 : vector<1x64x32xf32> to vector<64x32xf32>
    %cst_194 = arith.constant dense<0.000000e+00> : vector<8x32xf32>
    %312 = tpu.matmul %309, %311, %cst_194 {dimension_numbers = #tpu.dot_dimension_numbers<[1], [0], [0], [1], [0, 0, 1, 1], [], []>} : vector<8x64xf32>, vector<64x32xf32>, vector<8x32xf32> -> vector<8x32xf32>
    %c1_195 = arith.constant 1 : index
    %c0_196 = arith.constant 0 : index
    %c0_197 = arith.constant 0 : index
    %313 = vector.load %arg26[%c1_195, %c0_196, %c0_197] : memref<2x1x32xf32, #tpu.memory_space<vmem>>, vector<1x1x32xf32>
    %314 = vector.shape_cast %313 : vector<1x1x32xf32> to vector<1x32xf32>
    %315 = vector.broadcast %314 : vector<1x32xf32> to vector<8x32xf32>
    %316 = arith.addf %312, %315 : vector<8x32xf32>
    %317 = arith.addf %316, %300 : vector<8x32xf32>
    %c1_198 = arith.constant 1 : index
    %c0_199 = arith.constant 0 : index
    %c0_200 = arith.constant 0 : index
    %318 = vector.load %arg27[%c1_198, %c0_199, %c0_200] : memref<2x1x32xf32, #tpu.memory_space<vmem>>, vector<1x1x32xf32>
    %319 = vector.shape_cast %318 : vector<1x1x32xf32> to vector<1x32xf32>
    %c1_201 = arith.constant 1 : index
    %c0_202 = arith.constant 0 : index
    %c0_203 = arith.constant 0 : index
    %320 = vector.load %arg28[%c1_201, %c0_202, %c0_203] : memref<2x1x32xf32, #tpu.memory_space<vmem>>, vector<1x1x32xf32>
    %321 = vector.shape_cast %320 : vector<1x1x32xf32> to vector<1x32xf32>
    %cst_204 = arith.constant dense<0.000000e+00> : vector<8xf32>
    %322 = vector.multi_reduction <add>, %317, %cst_204 [1] : vector<8x32xf32> to vector<8xf32>
    %323 = vector.shape_cast %322 : vector<8xf32> to vector<8x1xf32>
    %cst_205 = arith.constant 3.200000e+01 : f32
    %324 = vector.broadcast %cst_205 : f32 to vector<8x1xf32>
    %325 = arith.divf %323, %324 : vector<8x1xf32>
    %326 = arith.mulf %317, %317 : vector<8x32xf32>
    %cst_206 = arith.constant dense<0.000000e+00> : vector<8xf32>
    %327 = vector.multi_reduction <add>, %326, %cst_206 [1] : vector<8x32xf32> to vector<8xf32>
    %328 = vector.shape_cast %327 : vector<8xf32> to vector<8x1xf32>
    %cst_207 = arith.constant 3.200000e+01 : f32
    %329 = vector.broadcast %cst_207 : f32 to vector<8x1xf32>
    %330 = arith.divf %328, %329 : vector<8x1xf32>
    %331 = arith.mulf %325, %325 : vector<8x1xf32>
    %332 = arith.subf %330, %331 : vector<8x1xf32>
    %333 = vector.broadcast %325 : vector<8x1xf32> to vector<8x32xf32>
    %334 = arith.subf %317, %333 : vector<8x32xf32>
    %cst_208 = arith.constant 9.99999974E-6 : f32
    %335 = vector.broadcast %cst_208 : f32 to vector<8x1xf32>
    %336 = arith.addf %332, %335 : vector<8x1xf32>
    %337 = math.rsqrt %336 : vector<8x1xf32>
    %338 = vector.broadcast %337 : vector<8x1xf32> to vector<8x32xf32>
    %339 = arith.mulf %334, %338 : vector<8x32xf32>
    %340 = vector.broadcast %319 : vector<1x32xf32> to vector<8x32xf32>
    %341 = arith.mulf %339, %340 : vector<8x32xf32>
    %342 = vector.broadcast %321 : vector<1x32xf32> to vector<8x32xf32>
    %343 = arith.addf %341, %342 : vector<8x32xf32>
    %c0_209 = arith.constant 0 : index
    %c0_210 = arith.constant 0 : index
    %c0_211 = arith.constant 0 : index
    %344 = vector.load %arg29[%c0_209, %c0_210, %c0_211] : memref<1x8x32xf32, #tpu.memory_space<vmem>>, vector<1x8x32xf32>
    %345 = vector.shape_cast %344 : vector<1x8x32xf32> to vector<8x32xf32>
    %346 = vector.shape_cast %343 : vector<8x32xf32> to vector<1x8x32xf32>
    tpu.vector_store %arg29[%c0_209, %c0_210, %c0_211], %346 {strides = array<i32>} : memref<1x8x32xf32, #tpu.memory_space<vmem>>, vector<1x8x32xf32>,
    return
  }
  func.func @transform_0(%arg0: i32) -> (i32, i32, i32) {
    %c0_i32 = arith.constant 0 : i32
    %c0_i32_0 = arith.constant 0 : i32
    %c0_i32_1 = arith.constant 0 : i32
    return %arg0, %c0_i32, %c0_i32_0 : i32, i32, i32
  }
  func.func @transform_1(%arg0: i32) -> (i32, i32, i32) {
    %c0_i32 = arith.constant 0 : i32
    %c0_i32_0 = arith.constant 0 : i32
    %c0_i32_1 = arith.constant 0 : i32
    return %arg0, %c0_i32, %c0_i32_0 : i32, i32, i32
  }
  func.func @transform_2(%arg0: i32) -> (i32, i32) {
    %c0_i32 = arith.constant 0 : i32
    %c0_i32_0 = arith.constant 0 : i32
    %c0_i32_1 = arith.constant 0 : i32
    return %c0_i32, %c0_i32_0 : i32, i32
  }
  func.func @transform_3(%arg0: i32) -> (i32, i32) {
    %c0_i32 = arith.constant 0 : i32
    %c0_i32_0 = arith.constant 0 : i32
    %c0_i32_1 = arith.constant 0 : i32
    return %c0_i32, %c0_i32_0 : i32, i32
  }
  func.func @transform_4(%arg0: i32) -> (i32, i32) {
    %c0_i32 = arith.constant 0 : i32
    %c0_i32_0 = arith.constant 0 : i32
    %c0_i32_1 = arith.constant 0 : i32
    return %c0_i32, %c0_i32_0 : i32, i32
  }
  func.func @transform_5(%arg0: i32) -> (i32, i32) {
    %c0_i32 = arith.constant 0 : i32
    %c0_i32_0 = arith.constant 0 : i32
    %c0_i32_1 = arith.constant 0 : i32
    return %c0_i32, %c0_i32_0 : i32, i32
  }
  func.func @transform_6(%arg0: i32) -> (i32, i32) {
    %c0_i32 = arith.constant 0 : i32
    %c0_i32_0 = arith.constant 0 : i32
    %c0_i32_1 = arith.constant 0 : i32
    return %c0_i32, %c0_i32_0 : i32, i32
  }
  func.func @transform_7(%arg0: i32) -> (i32, i32) {
    %c0_i32 = arith.constant 0 : i32
    %c0_i32_0 = arith.constant 0 : i32
    %c0_i32_1 = arith.constant 0 : i32
    return %c0_i32, %c0_i32_0 : i32, i32
  }
  func.func @transform_8(%arg0: i32) -> (i32, i32, i32) {
    %c0_i32 = arith.constant 0 : i32
    %c0_i32_0 = arith.constant 0 : i32
    %c0_i32_1 = arith.constant 0 : i32
    %c0_i32_2 = arith.constant 0 : i32
    return %c0_i32, %c0_i32_0, %c0_i32_1 : i32, i32, i32
  }
  func.func @transform_9(%arg0: i32) -> (i32, i32, i32) {
    %c0_i32 = arith.constant 0 : i32
    %c0_i32_0 = arith.constant 0 : i32
    %c0_i32_1 = arith.constant 0 : i32
    %c0_i32_2 = arith.constant 0 : i32
    return %c0_i32, %c0_i32_0, %c0_i32_1 : i32, i32, i32
  }
  func.func @transform_10(%arg0: i32) -> (i32, i32, i32) {
    %c0_i32 = arith.constant 0 : i32
    %c0_i32_0 = arith.constant 0 : i32
    %c0_i32_1 = arith.constant 0 : i32
    %c0_i32_2 = arith.constant 0 : i32
    return %c0_i32, %c0_i32_0, %c0_i32_1 : i32, i32, i32
  }
  func.func @transform_11(%arg0: i32) -> (i32, i32, i32) {
    %c0_i32 = arith.constant 0 : i32
    %c0_i32_0 = arith.constant 0 : i32
    %c0_i32_1 = arith.constant 0 : i32
    %c0_i32_2 = arith.constant 0 : i32
    return %c0_i32, %c0_i32_0, %c0_i32_1 : i32, i32, i32
  }
  func.func @transform_12(%arg0: i32) -> (i32, i32, i32) {
    %c0_i32 = arith.constant 0 : i32
    %c0_i32_0 = arith.constant 0 : i32
    %c0_i32_1 = arith.constant 0 : i32
    %c0_i32_2 = arith.constant 0 : i32
    return %c0_i32, %c0_i32_0, %c0_i32_1 : i32, i32, i32
  }
  func.func @transform_13(%arg0: i32) -> (i32, i32, i32) {
    %c0_i32 = arith.constant 0 : i32
    %c0_i32_0 = arith.constant 0 : i32
    %c0_i32_1 = arith.constant 0 : i32
    %c0_i32_2 = arith.constant 0 : i32
    return %c0_i32, %c0_i32_0, %c0_i32_1 : i32, i32, i32
  }
  func.func @transform_14(%arg0: i32) -> (i32, i32, i32) {
    %c0_i32 = arith.constant 0 : i32
    %c0_i32_0 = arith.constant 0 : i32
    %c0_i32_1 = arith.constant 0 : i32
    %c0_i32_2 = arith.constant 0 : i32
    return %c0_i32, %c0_i32_0, %c0_i32_1 : i32, i32, i32
  }
  func.func @transform_15(%arg0: i32) -> (i32, i32, i32) {
    %c0_i32 = arith.constant 0 : i32
    %c0_i32_0 = arith.constant 0 : i32
    %c0_i32_1 = arith.constant 0 : i32
    %c0_i32_2 = arith.constant 0 : i32
    return %c0_i32, %c0_i32_0, %c0_i32_1 : i32, i32, i32
  }
  func.func @transform_16(%arg0: i32) -> (i32, i32, i32) {
    %c0_i32 = arith.constant 0 : i32
    %c0_i32_0 = arith.constant 0 : i32
    %c0_i32_1 = arith.constant 0 : i32
    %c0_i32_2 = arith.constant 0 : i32
    return %c0_i32, %c0_i32_0, %c0_i32_1 : i32, i32, i32
  }
  func.func @transform_17(%arg0: i32) -> (i32, i32, i32) {
    %c0_i32 = arith.constant 0 : i32
    %c0_i32_0 = arith.constant 0 : i32
    %c0_i32_1 = arith.constant 0 : i32
    %c0_i32_2 = arith.constant 0 : i32
    return %c0_i32, %c0_i32_0, %c0_i32_1 : i32, i32, i32
  }
  func.func @transform_18(%arg0: i32) -> (i32, i32, i32) {
    %c0_i32 = arith.constant 0 : i32
    %c0_i32_0 = arith.constant 0 : i32
    %c0_i32_1 = arith.constant 0 : i32
    %c0_i32_2 = arith.constant 0 : i32
    return %c0_i32, %c0_i32_0, %c0_i32_1 : i32, i32, i32
  }
  func.func @transform_19(%arg0: i32) -> (i32, i32, i32) {
    %c0_i32 = arith.constant 0 : i32
    %c0_i32_0 = arith.constant 0 : i32
    %c0_i32_1 = arith.constant 0 : i32
    %c0_i32_2 = arith.constant 0 : i32
    return %c0_i32, %c0_i32_0, %c0_i32_1 : i32, i32, i32
  }
  func.func @transform_20(%arg0: i32) -> (i32, i32, i32) {
    %c0_i32 = arith.constant 0 : i32
    %c0_i32_0 = arith.constant 0 : i32
    %c0_i32_1 = arith.constant 0 : i32
    %c0_i32_2 = arith.constant 0 : i32
    return %c0_i32, %c0_i32_0, %c0_i32_1 : i32, i32, i32
  }
  func.func @transform_21(%arg0: i32) -> (i32, i32, i32) {
    %c0_i32 = arith.constant 0 : i32
    %c0_i32_0 = arith.constant 0 : i32
    %c0_i32_1 = arith.constant 0 : i32
    %c0_i32_2 = arith.constant 0 : i32
    return %c0_i32, %c0_i32_0, %c0_i32_1 : i32, i32, i32
  }
  func.func @transform_22(%arg0: i32) -> (i32, i32, i32) {
    %c0_i32 = arith.constant 0 : i32
    %c0_i32_0 = arith.constant 0 : i32
    %c0_i32_1 = arith.constant 0 : i32
    %c0_i32_2 = arith.constant 0 : i32
    return %c0_i32, %c0_i32_0, %c0_i32_1 : i32, i32, i32
  }
  func.func @transform_23(%arg0: i32) -> (i32, i32, i32) {
    %c0_i32 = arith.constant 0 : i32
    %c0_i32_0 = arith.constant 0 : i32
    %c0_i32_1 = arith.constant 0 : i32
    %c0_i32_2 = arith.constant 0 : i32
    return %c0_i32, %c0_i32_0, %c0_i32_1 : i32, i32, i32
  }
  func.func @transform_24(%arg0: i32) -> (i32, i32, i32) {
    %c0_i32 = arith.constant 0 : i32
    %c0_i32_0 = arith.constant 0 : i32
    %c0_i32_1 = arith.constant 0 : i32
    %c0_i32_2 = arith.constant 0 : i32
    return %c0_i32, %c0_i32_0, %c0_i32_1 : i32, i32, i32
  }
  func.func @transform_25(%arg0: i32) -> (i32, i32, i32) {
    %c0_i32 = arith.constant 0 : i32
    %c0_i32_0 = arith.constant 0 : i32
    %c0_i32_1 = arith.constant 0 : i32
    %c0_i32_2 = arith.constant 0 : i32
    return %c0_i32, %c0_i32_0, %c0_i32_1 : i32, i32, i32
  }
  func.func @transform_26(%arg0: i32) -> (i32, i32, i32) {
    %c0_i32 = arith.constant 0 : i32
    %c0_i32_0 = arith.constant 0 : i32
    %c0_i32_1 = arith.constant 0 : i32
    %c0_i32_2 = arith.constant 0 : i32
    return %c0_i32, %c0_i32_0, %c0_i32_1 : i32, i32, i32
  }
  func.func @transform_27(%arg0: i32) -> (i32, i32, i32) {
    %c0_i32 = arith.constant 0 : i32
    %c0_i32_0 = arith.constant 0 : i32
    %c0_i32_1 = arith.constant 0 : i32
    %c0_i32_2 = arith.constant 0 : i32
    return %c0_i32, %c0_i32_0, %c0_i32_1 : i32, i32, i32
  }
  func.func @transform_28(%arg0: i32) -> (i32, i32, i32) {
    %c0_i32 = arith.constant 0 : i32
    %c0_i32_0 = arith.constant 0 : i32
    %c0_i32_1 = arith.constant 0 : i32
    return %arg0, %c0_i32, %c0_i32_0 : i32, i32, i32
  }
}

</mosaic_0001>

<bundles_post_ra>
// kernel: decoder_forward.1
= control target key start
LH: loop header
LB: loop body
LE: loop exit
PB: predicated region body
PF: predicated region fallthrough
CT: control target
= control target key end

     0   :  { %s8020_s0 = inlined_call_operand.vmem [shape: f32[2,8,32], index: 0, kind: input, shape index: {}]   ;;  %s8021_s1 = inlined_call_operand.vmem [shape: f32[2,10,32], index: 1, kind: input, shape index: {}]   ;;  %s8022_s2 = inlined_call_operand.hbm [shape: f32[32,8], index: 2, kind: input, shape index: {}]   ;;  %s8023_s3 = inlined_call_operand.hbm [shape: f32[32,32], index: 3, kind: input, shape index: {}]   ;;  %s8024_s4 = inlined_call_operand.vmem [shape: f32[32,4], index: 4, kind: input, shape index: {}]   ;;  %s8025_s5 = inlined_call_operand.vmem [shape: f32[40,10], index: 5, kind: input, shape index: {}]   ;;  %s8026_s6 = inlined_call_operand.vmem [shape: f32[40,32], index: 6, kind: input, shape index: {}]   ;;  %s8027_s7 = inlined_call_operand.vmem [shape: f32[40,4], index: 7, kind: input, shape index: {}]   ;;  %s8028_s8 = inlined_call_operand.vmem [shape: f32[2,32,96], index: 8, kind: input, shape index: {}]   ;;  %s8029_s9 = inlined_call_operand.vmem [shape: f32[2,1,96], index: 9, kind: input, shape index: {}]   ;;  %s8030_s10 = inlined_call_operand.vmem [shape: f32[2,32,32], index: 10, kind: input, shape index: {}]   ;;  %s8031_s11 = inlined_call_operand.hbm [shape: f32[2,1,32], index: 11, kind: input, shape index: {}]   ;;  %s8032_s12 = inlined_call_operand.hbm [shape: f32[2,1,32], index: 12, kind: input, shape index: {}]   ;;  %s8033_s13 = inlined_call_operand.hbm [shape: f32[2,1,32], index: 13, kind: input, shape index: {}]   ;;  %s8034_s14 = inlined_call_operand.vmem [shape: f32[2,32,32], index: 14, kind: input, shape index: {}]   ;;  %s8035_s15 = inlined_call_operand.hbm [shape: f32[2,1,32], index: 15, kind: input, shape index: {}]   ;;  %s8036_s16 = inlined_call_operand.vmem [shape: f32[2,32,64], index: 16, kind: input, shape index: {}]   ;;  %s8037_s17 = inlined_call_operand.hbm [shape: f32[2,1,64], index: 17, kind: input, shape index: {}]   ;;  %s8038_s18 = inlined_call_operand.vmem [shape: f32[2,32,32], index: 18, kind: input, shape index: {}]   ;;  %s8039_s19 = inlined_call_operand.hbm [shape: f32[2,1,32], index: 19, kind: input, shape index: {}]   ;;  %s8040_s20 = inlined_call_operand.hbm [shape: f32[2,1,32], index: 20, kind: input, shape index: {}]   ;;  %s8041_s21 = inlined_call_operand.hbm [shape: f32[2,1,32], index: 21, kind: input, shape index: {}]   ;;  %s8042_s22 = inlined_call_operand.vmem [shape: f32[2,32,64], index: 22, kind: input, shape index: {}]   ;;  %s8043_s23 = inlined_call_operand.hbm [shape: f32[2,1,64], index: 23, kind: input, shape index: {}]   ;;  %s8044_s24 = inlined_call_operand.vmem [shape: f32[2,64,32], index: 24, kind: input, shape index: {}]   ;;  %s8045_s25 = inlined_call_operand.hbm [shape: f32[2,1,32], index: 25, kind: input, shape index: {}]   ;;  %s8046_s26 = inlined_call_operand.hbm [shape: f32[2,1,32], index: 26, kind: input, shape index: {}]   ;;  %s8047_s27 = inlined_call_operand.hbm [shape: f32[2,1,32], index: 27, kind: input, shape index: {}]   ;;  %s8048_s28 = inlined_call_operand.hbm [shape: f32[2,8,32], index: 28, kind: output, shape index: {}]  }
   0x1   :  { %8096 = sst [smem:[#allocation44_spill]] %s8020_s0 }
   0x2   :  { %8097 = sst [smem:[#allocation45_spill]] %s8021_s1 }
   0x3   :  { %8098 = sst [smem:[#allocation46_spill]] %s8022_s2 }
   0x4   :  { %8099 = sst [smem:[#allocation47_spill]] %s8023_s3 }
   0x5   :  { %8100 = sst [smem:[#allocation48_spill]] %s8024_s4 }
   0x6   :  { %8101 = sst [smem:[#allocation49_spill]] %s8025_s5 }
   0x7   :  { %8102 = sst [smem:[#allocation50_spill]] %s8026_s6 }
   0x8   :  { %8103 = sst [smem:[#allocation51_spill]] %s8027_s7 }
   0x9   :  { %8104 = sst [smem:[#allocation52_spill]] %s8028_s8 }
   0xa   :  { %8105 = sst [smem:[#allocation53_spill]] %s8029_s9 }
   0xb   :  { %8106 = sst [smem:[#allocation54_spill]] %s8030_s10 }
   0xc   :  { %8107 = sst [smem:[#allocation55_spill]] %s8031_s11 }
   0xd   :  { %8108 = sst [smem:[#allocation56_spill]] %s8032_s12 }
   0xe   :  { %8109 = sst [smem:[#allocation57_spill]] %s8033_s13 }
   0xf   :  { %8110 = sst [smem:[#allocation58_spill]] %s8034_s14 }
  0x10   :  { %8111 = sst [smem:[#allocation59_spill]] %s8035_s15 }
  0x11   :  { %8112 = sst [smem:[#allocation60_spill]] %s8036_s16 }
  0x12   :  { %8113 = sst [smem:[#allocation61_spill]] %s8038_s18 }
  0x13   :  { %8114 = sst [smem:[#allocation62_spill]] %s8042_s22 }
  0x14   :  { %8115 = sst [smem:[#allocation63_spill]] %s8044_s24 }
  0x15   :  { %8116 = sst [smem:[#allocation64_spill]] %s8048_s28 }
  0x16   :  { %33 = vsyncpa [#allocation3], 0 }
  0x17   :  { %34 = vsyncpa [#allocation6], 0 }
  0x18   :  { %35 = vsyncpa [#allocation9], 0 }
  0x19   :  { %36 = vsyncpa [#allocation12], 0 }
  0x1a   :  { %37 = vsyncpa [#allocation15], 0 }
  0x1b   :  { %38 = vsyncpa [#allocation18], 0 }
  0x1c   :  { %39 = vsyncpa [#allocation21], 0 }
  0x1d   :  { %40 = vsyncpa [#allocation24], 0 }
  0x1e   :  { %41 = vsyncpa [#allocation4], 0 }
  0x1f   :  { %43 = vsyncpa [#allocation4 + $0x1], 0  ;;  %s6819_s8 = smov 0   ;;  %s6821_s5 = smov 0  }
  0x20   :  { %s6823_s9 = smov 0   ;;  %s6825_s30 = smov 0  }
  0x21 LB: > { %8117 = sst [smem:[#allocation35_spill]] %s6635_s8  ;;  %s6840_s3 = sadd.s32 4294967295, %s6647_s30   ;;  %s6647_s30 = sphi %s6825_s30, %s8194_s30   ;;  %s6643_s9 = sphi %s6823_s9, %s8197_s9   ;;  %s6639_s5 = sphi %s6821_s5, %s8196_s5   ;;  %s6635_s8 = sphi %s6819_s8, %s8195_s8  }
  0x22   : > { %8118 = sst [smem:[#allocation36_spill]] %s6639_s5  ;;  %s4811_s6 = sadd.s32 4294967294, %s6647_s30  }
  0x23   : > { %8119 = sst [smem:[#allocation37_spill]] %s6643_s9  ;;  %s6844_s10 = sadd.s32 1, %s6647_s30  }
  0x24   : > { %8120 = sst [smem:[#allocation38_spill]] %s6647_s30  ;;  %s654_s0 = sadd.s32 1, %s6643_s9 }
  0x25   : > { %8121 = sst [smem:[#allocation39_spill]] %s6840_s3  ;;  %s651_s11 = ssub.s32 %s6647_s30, %s6844_s10 }
  0x26   : > { %8122 = sst [smem:[#allocation40_spill]] %s6844_s10  ;;  %p664_p0 = scmp.ne.s32.totalorder %s6643_s9, %s6639_s5 }
  0x27   : > { %p652_p1 = scmp.eq.s32.totalorder %s651_s11, 0  ;;  %p665_p2 = scmp.eq.s32.totalorder %s6840_s3, 1 }
  0x28   : > { %p670_p3 = scmp.ne.s32.totalorder %s6639_s5, %s6635_s8  ;;  %p671_p4 = scmp.eq.s32.totalorder %s4811_s6, 1 }
  0x29   : > { %s6855_s29 = scalar_select %p652_p1, %s6643_s9, %s654_s0  }
  0x2a   : > { %p6857_p5 = por %p665_p2, %p664_p0  ;;  %p6861_p6 = por %p671_p4, %p670_p3 }
  0x2b   : > { %8123 = sst [smem:[#allocation41_spill]] %s6855_s29  ;;  %p4812_p7 = scmp.ge.s32.totalorder %s6647_s30, 1 }
  0x2c   : > { %s8124_s2 = scalar_select %p6857_p5, 1, 0 }
  0x2d   : > { %s8126_s7 = scalar_select %p6861_p6, 1, 0 }
  0x2e   : > { %8125 = sst [smem:[#allocation42_spill]] %s8124_s2  ;;  %p678_p8 = scmp.lt.s32.totalorder %s6647_s30, 3 }
  0x2f   : > { %8127 = sst [smem:[#allocation43_spill]] %s8126_s7  ;;  %p8069_p9 = scmp.eq.s32.totalorder %s6840_s3, 0 }
  0x30   : > { %p6868_p10 = pnand %p4812_p7, %p678_p8  ;;  %s6649_s1 = smov [#allocation5]  }
  0x31   : > { %s703_s4 = sshll.u32 %s6649_s1, 4  ;;  %s6650_s0 = smov [#allocation8]   ;;  %s704_s4 = int_to_ptr.vmem [resolvable:$true] %s703_s4 }
  0x32   : > { %s8128_s12 = scalar_select %p6868_p10, 1, 0 }
  0x33   : > { %p5991_p11 = pneg %p6868_p10  ;;  %s750_s11 = sshll.u32 %s6650_s0, 4  ;;  %s751_s11 = int_to_ptr.vmem [resolvable:$true] %s750_s11 }
  0x34   : > { %s8130_s10 = sld [smem:[#allocation47_spill]] }
  0x35   : > { %p6876_p12 = pnand %p8069_p9, %p5991_p11 }
  0x37   : > { %p6888_p0 = pneg %p6876_p12 }
  0x3a   : > { %s6161_s7 = scalar_lea.hbm %s8130_s10, 512 }
  0x3b   : > { %p6162_p13 = scmp.ne.s32.totalorder %s8130_s10, %s6161_s7  ;;  %p6168_p3 = scmp.lt.u32.totalorder %s6161_s7, %s8130_s10 }
  0x3d   : > { %p6164_p1 = pnand %p6888_p0, %p6162_p13 }
  0x3f   : > { %p6165_p2 = pneg %p6164_p1 }
  0x41   : > { %p6170_p4 = pnand %p6168_p3, %p6165_p2 }
  0x43   : > { %6173 = shalt.err (!%p6170_p4)
}
  0x44   : > { %s6174_s9 = scalar_lea.vmem %s704_s4, 512  ;;  %p6182_p9 = scmp.lt.s32.totalorder %s704_s4, %s704_s4 }
  0x45   : > { %p6175_p7 = scmp.ne.s32.totalorder %s704_s4, %s6174_s9  ;;  %p6183_p6 = scmp.lt.s32.totalorder %s6174_s9, %s6174_s9 }
  0x47   : > { %p6177_p8 = pnand %p6175_p7, %p6888_p0  ;;  %p6184_p5 = por %p6183_p6, %p6182_p9 }
  0x49   : > { %p6178_p11 = pneg %p6177_p8 }
  0x4b   : > { %p6185_p10 = pnand %p6184_p5, %p6178_p11 }
  0x4d   : > { %6188 = shalt.err (!%p6185_p10)
}
  0x4e   : > { %s8080_s8 = smov 128   ;;  %s6652_s30 = smov 8  }
  0x4f   : > { %5997 = dma.hbm_to_vmem [thread:$0]  (!%p6876_p12), %s8130_s10, 512, %s704_s4, [#allocation6], %s8080_s8, %s8080_s8, %s6652_s30  }
  0x50   : > { %s6653_s2 = smov [#allocation11]   ;;  %s8132_s5 = sld [smem:[#allocation56_spill]] }
  0x51   : > { %s779_s7 = sshll.u32 %s6653_s2, 4  ;;  %s780_s7 = int_to_ptr.vmem [resolvable:$true] %s779_s7 }
  0x56   : > { %s8133_s24 = smov %s8132_s5  ;;  %s6189_s22 = scalar_lea.hbm %s8132_s5, 32 }
  0x57   : > { %p6190_p5 = scmp.ne.s32.totalorder %s8133_s24, %s6189_s22  ;;  %p6196_p10 = scmp.lt.u32.totalorder %s6189_s22, %s8133_s24 }
  0x59   : > { %p6192_p6 = pnand %p6190_p5, %p6888_p0 }
  0x5b   : > { %p6193_p9 = pneg %p6192_p6 }
  0x5d   : > { %p6198_p13 = pnand %p6196_p10, %p6193_p9 }
  0x5f   : > { %6201 = shalt.err (!%p6198_p13)
}
  0x60   : > { %s6202_s4 = scalar_lea.vmem %s751_s11, 32  ;;  %p6210_p4 = scmp.lt.s32.totalorder %s751_s11, %s751_s11 }
  0x61   : > { %p6203_p1 = scmp.ne.s32.totalorder %s751_s11, %s6202_s4  ;;  %p6211_p7 = scmp.lt.s32.totalorder %s6202_s4, %s6202_s4 }
  0x63   : > { %p6205_p2 = pnand %p6203_p1, %p6888_p0  ;;  %p6212_p8 = por %p6211_p7, %p6210_p4 }
  0x65   : > { %p6206_p3 = pneg %p6205_p2 }
  0x67   : > { %p6213_p11 = pnand %p6212_p8, %p6206_p3 }
  0x69   : > { %6216 = shalt.err (!%p6213_p11)
}
  0x6a   : > { %s8081_s14 = smov 16   ;;  %s8083_s18 = smov 1  }
  0x6b   : > { %6003 = dma.hbm_to_vmem [thread:$0]  (!%p6876_p12), %s8133_s24, 32, %s751_s11, [#allocation9], %s8081_s14, %s8081_s14, %s8083_s18  }
  0x6c   : > { %s8134_s15 = sld [smem:[#allocation59_spill]] }
  0x72   : > { %s6217_s28 = scalar_lea.hbm %s8134_s15, 32 }
  0x73   : > { %p6218_p5 = scmp.ne.s32.totalorder %s8134_s15, %s6217_s28  ;;  %p6224_p10 = scmp.lt.u32.totalorder %s6217_s28, %s8134_s15 }
  0x75   : > { %p6220_p6 = pnand %p6218_p5, %p6888_p0 }
  0x77   : > { %p6221_p9 = pneg %p6220_p6 }
  0x79   : > { %p6226_p13 = pnand %p6224_p10, %p6221_p9 }
  0x7b   : > { %6229 = shalt.err (!%p6226_p13)
}
  0x7c   : > { %s6230_s4 = scalar_lea.vmem %s780_s7, 32  ;;  %p6238_p4 = scmp.lt.s32.totalorder %s780_s7, %s780_s7 }
  0x7d   : > { %p6231_p1 = scmp.ne.s32.totalorder %s780_s7, %s6230_s4  ;;  %p6239_p7 = scmp.lt.s32.totalorder %s6230_s4, %s6230_s4 }
  0x7f   : > { %p6233_p2 = pnand %p6231_p1, %p6888_p0  ;;  %p6240_p8 = por %p6239_p7, %p6238_p4 }
  0x81   : > { %p6234_p3 = pneg %p6233_p2 }
  0x83   : > { %p6241_p11 = pnand %p6240_p8, %p6234_p3 }
  0x85   : > { %6244 = shalt.err (!%p6241_p11)
}
  0x86   : > { %6009 = dma.hbm_to_vmem [thread:$0]  (!%p6876_p12), %s8134_s15, 32, %s780_s7, [#allocation12], %s8081_s14, %s8081_s14, %s8083_s18  }
  0x87   : > { %s6656_s22 = smov [#allocation14]   ;;  %s6657_s3 = smov [#allocation17]  }
  0x88   : > { %s811_s5 = sshll.u32 %s6656_s22, 4  ;;  %s837_s28 = sshll.u32 %s6657_s3, 4  ;;  %s812_s5 = int_to_ptr.vmem [resolvable:$true] %s811_s5  ;;  %s838_s28 = int_to_ptr.vmem [resolvable:$true] %s837_s28 }
  0x89   : > { %s6245_s0 = scalar_lea.hbm %s8039_s19, 32 }
  0x8a   : > { %p6246_p5 = scmp.ne.s32.totalorder %s8039_s19, %s6245_s0  ;;  %p6252_p10 = scmp.lt.u32.totalorder %s6245_s0, %s8039_s19 }
  0x8c   : > { %p6248_p6 = pnand %p6246_p5, %p6888_p0 }
  0x8e   : > { %p6249_p9 = pneg %p6248_p6 }
  0x90   : > { %p6254_p13 = pnand %p6252_p10, %p6249_p9 }
  0x92   : > { %6257 = shalt.err (!%p6254_p13)
}
  0x93   : > { %s6258_s7 = scalar_lea.vmem %s812_s5, 32  ;;  %p6266_p4 = scmp.lt.s32.totalorder %s812_s5, %s812_s5 }
  0x94   : > { %p6259_p1 = scmp.ne.s32.totalorder %s812_s5, %s6258_s7  ;;  %p6267_p7 = scmp.lt.s32.totalorder %s6258_s7, %s6258_s7 }
  0x96   : > { %p6261_p2 = pnand %p6259_p1, %p6888_p0  ;;  %p6268_p8 = por %p6267_p7, %p6266_p4 }
  0x98   : > { %p6262_p3 = pneg %p6261_p2 }
  0x9a   : > { %p6269_p11 = pnand %p6268_p8, %p6262_p3 }
  0x9c   : > { %6272 = shalt.err (!%p6269_p11)
}
  0x9d   : > { %6015 = dma.hbm_to_vmem [thread:$0]  (!%p6876_p12), %s8039_s19, 32, %s812_s5, [#allocation15], %s8081_s14, %s8081_s14, %s8083_s18  }
  0x9e   : > { %s6273_s29 = scalar_lea.hbm %s8041_s21, 32 }
  0x9f   : > { %p6274_p5 = scmp.ne.s32.totalorder %s8041_s21, %s6273_s29  ;;  %p6280_p10 = scmp.lt.u32.totalorder %s6273_s29, %s8041_s21 }
  0xa1   : > { %p6276_p6 = pnand %p6274_p5, %p6888_p0 }
  0xa3   : > { %p6277_p9 = pneg %p6276_p6 }
  0xa5   : > { %p6282_p13 = pnand %p6280_p10, %p6277_p9 }
  0xa7   : > { %6285 = shalt.err (!%p6282_p13)
}
  0xa8   : > { %s6286_s11 = scalar_lea.vmem %s838_s28, 32  ;;  %p6294_p4 = scmp.lt.s32.totalorder %s838_s28, %s838_s28 }
  0xa9   : > { %p6287_p1 = scmp.ne.s32.totalorder %s838_s28, %s6286_s11  ;;  %p6295_p7 = scmp.lt.s32.totalorder %s6286_s11, %s6286_s11 }
  0xab   : > { %p6289_p2 = pnand %p6287_p1, %p6888_p0  ;;  %p6296_p8 = por %p6295_p7, %p6294_p4 }
  0xad   : > { %p6290_p3 = pneg %p6289_p2 }
  0xaf   : > { %p6297_p11 = pnand %p6296_p8, %p6290_p3 }
  0xb1   : > { %6300 = shalt.err (!%p6297_p11)
}
  0xb2   : > { %6021 = dma.hbm_to_vmem [thread:$0]  (!%p6876_p12), %s8041_s21, 32, %s838_s28, [#allocation18], %s8081_s14, %s8081_s14, %s8083_s18  }
  0xb3   : > { %s6658_s8 = smov [#allocation20]   ;;  %s6659_s22 = smov [#allocation2]  }
  0xb4   : > { %s869_s16 = sshll.u32 %s6658_s8, 4  ;;  %s690_s3 = sshll.u32 %s6659_s22, 4  ;;  %s870_s16 = int_to_ptr.vmem [resolvable:$true] %s869_s16  ;;  %s691_s3 = int_to_ptr.vmem [resolvable:$true] %s690_s3 }
  0xb5   : > { %s6301_s0 = scalar_lea.hbm %s8045_s25, 32 }
  0xb6   : > { %p6302_p5 = scmp.ne.s32.totalorder %s8045_s25, %s6301_s0  ;;  %p6308_p10 = scmp.lt.u32.totalorder %s6301_s0, %s8045_s25 }
  0xb8   : > { %p6304_p6 = pnand %p6302_p5, %p6888_p0 }
  0xba   : > { %p6305_p9 = pneg %p6304_p6 }
  0xbc   : > { %p6310_p13 = pnand %p6308_p10, %p6305_p9 }
  0xbe   : > { %6313 = shalt.err (!%p6310_p13)
}
  0xbf   : > { %s6314_s28 = scalar_lea.vmem %s870_s16, 32  ;;  %p6322_p4 = scmp.lt.s32.totalorder %s870_s16, %s870_s16 }
  0xc0   : > { %p6315_p1 = scmp.ne.s32.totalorder %s870_s16, %s6314_s28  ;;  %p6323_p7 = scmp.lt.s32.totalorder %s6314_s28, %s6314_s28 }
  0xc2   : > { %p6317_p2 = pnand %p6315_p1, %p6888_p0  ;;  %p6324_p8 = por %p6323_p7, %p6322_p4 }
  0xc4   : > { %p6318_p3 = pneg %p6317_p2 }
  0xc6   : > { %p6325_p11 = pnand %p6324_p8, %p6318_p3 }
  0xc8   : > { %6328 = shalt.err (!%p6325_p11)
}
  0xc9   : > { %6027 = dma.hbm_to_vmem [thread:$0]  (!%p6876_p12), %s8045_s25, 32, %s870_s16, [#allocation21], %s8081_s14, %s8081_s14, %s8083_s18  }
  0xca   : > { %s8135_s2 = sld [smem:[#allocation46_spill]] }
  0xd0   : > { %s6329_s0 = scalar_lea.hbm %s8135_s2, 512 }
  0xd1   : > { %p6330_p5 = scmp.ne.s32.totalorder %s8135_s2, %s6329_s0  ;;  %p6336_p10 = scmp.lt.u32.totalorder %s6329_s0, %s8135_s2 }
  0xd3   : > { %p6332_p6 = pnand %p6330_p5, %p6888_p0 }
  0xd5   : > { %p6333_p9 = pneg %p6332_p6 }
  0xd7   : > { %p6338_p13 = pnand %p6336_p10, %p6333_p9 }
  0xd9   : > { %6341 = shalt.err (!%p6338_p13)
}
  0xda   : > { %s6342_s28 = scalar_lea.vmem %s691_s3, 512  ;;  %p6350_p4 = scmp.lt.s32.totalorder %s691_s3, %s691_s3 }
  0xdb   : > { %p6343_p1 = scmp.ne.s32.totalorder %s691_s3, %s6342_s28  ;;  %p6351_p7 = scmp.lt.s32.totalorder %s6342_s28, %s6342_s28 }
  0xdd   : > { %p6345_p2 = pnand %p6343_p1, %p6888_p0  ;;  %p6352_p8 = por %p6351_p7, %p6350_p4 }
  0xdf   : > { %p6346_p3 = pneg %p6345_p2 }
  0xe1   : > { %p6353_p11 = pnand %p6352_p8, %p6346_p3 }
  0xe3   : > { %6356 = shalt.err (!%p6353_p11)
}
  0xe4   : > { %s8136_s16 = smov 128   ;;  %s6660_s22 = smov [#allocation7]  }
  0xe5   : > { %5994 = dma.hbm_to_vmem [thread:$0]  (!%p6876_p12), %s8135_s2, 512, %s691_s3, [#allocation3], %s8136_s16, %s8136_s16, %s6652_s30  }
  0xe6   : > { %s737_s29 = sshll.u32 %s6660_s22, 4  ;;  %s6661_s0 = smov [#allocation10]   ;;  %s738_s29 = int_to_ptr.vmem [resolvable:$true] %s737_s29 }
  0xe7   : > { %s763_s9 = sshll.u32 %s6661_s0, 4  ;;  %s8137_s5 = sld [smem:[#allocation55_spill]]  ;;  %s764_s9 = int_to_ptr.vmem [resolvable:$true] %s763_s9 }
  0xed   : > { %s8138_s28 = smov %s8137_s5  ;;  %s6357_s14 = scalar_lea.hbm %s8137_s5, 32 }
  0xee   : > { %p6358_p5 = scmp.ne.s32.totalorder %s8138_s28, %s6357_s14  ;;  %p6364_p10 = scmp.lt.u32.totalorder %s6357_s14, %s8138_s28 }
  0xf0   : > { %p6360_p6 = pnand %p6358_p5, %p6888_p0 }
  0xf2   : > { %p6361_p9 = pneg %p6360_p6 }
  0xf4   : > { %p6366_p13 = pnand %p6364_p10, %p6361_p9 }
  0xf6   : > { %6369 = shalt.err (!%p6366_p13)
}
  0xf7   : > { %s6370_s30 = scalar_lea.vmem %s738_s29, 32  ;;  %p6378_p4 = scmp.lt.s32.totalorder %s738_s29, %s738_s29 }
  0xf8   : > { %p6371_p1 = scmp.ne.s32.totalorder %s738_s29, %s6370_s30  ;;  %p6379_p7 = scmp.lt.s32.totalorder %s6370_s30, %s6370_s30 }
  0xfa   : > { %p6373_p2 = pnand %p6371_p1, %p6888_p0  ;;  %p6380_p8 = por %p6379_p7, %p6378_p4 }
  0xfc   : > { %p6374_p3 = pneg %p6373_p2 }
  0xfe   : > { %p6381_p11 = pnand %p6380_p8, %p6374_p3 }
 0x100   : > { %6384 = shalt.err (!%p6381_p11)
}
 0x101   : > { %s8139_s10 = smov 1   ;;  %s8140_s18 = smov 16  }
 0x102   : > { %6000 = dma.hbm_to_vmem [thread:$0]  (!%p6876_p12), %s8138_s28, 32, %s738_s29, [#allocation6], %s8140_s18, %s8140_s18, %s8139_s10  }
 0x103   : > { %s8141_s13 = sld [smem:[#allocation57_spill]] }
 0x109   : > { %s6385_s8 = scalar_lea.hbm %s8141_s13, 32 }
 0x10a   : > { %p6386_p5 = scmp.ne.s32.totalorder %s8141_s13, %s6385_s8  ;;  %p6392_p10 = scmp.lt.u32.totalorder %s6385_s8, %s8141_s13 }
 0x10c   : > { %p6388_p6 = pnand %p6386_p5, %p6888_p0 }
 0x10e   : > { %p6389_p9 = pneg %p6388_p6 }
 0x110   : > { %p6394_p13 = pnand %p6392_p10, %p6389_p9 }
 0x112   : > { %6397 = shalt.err (!%p6394_p13)
}
 0x113   : > { %s6398_s5 = scalar_lea.vmem %s764_s9, 32  ;;  %p6406_p4 = scmp.lt.s32.totalorder %s764_s9, %s764_s9 }
 0x114   : > { %p6399_p1 = scmp.ne.s32.totalorder %s764_s9, %s6398_s5  ;;  %p6407_p7 = scmp.lt.s32.totalorder %s6398_s5, %s6398_s5 }
 0x116   : > { %p6401_p2 = pnand %p6399_p1, %p6888_p0  ;;  %p6408_p8 = por %p6407_p7, %p6406_p4 }
 0x118   : > { %p6402_p3 = pneg %p6401_p2 }
 0x11a   : > { %p6409_p11 = pnand %p6408_p8, %p6402_p3 }
 0x11c   : > { %6412 = shalt.err (!%p6409_p11)
}
 0x11d   : > { %6006 = dma.hbm_to_vmem [thread:$0]  (!%p6876_p12), %s8141_s13, 32, %s764_s9, [#allocation9], %s8140_s18, %s8140_s18, %s8139_s10  }
 0x11e   : > { %s6662_s30 = smov [#allocation13]   ;;  %s6663_s14 = smov [#allocation16]  }
 0x11f   : > { %s795_s15 = sshll.u32 %s6662_s30, 4  ;;  %s824_s3 = sshll.u32 %s6663_s14, 4  ;;  %s796_s15 = int_to_ptr.vmem [resolvable:$true] %s795_s15  ;;  %s825_s3 = int_to_ptr.vmem [resolvable:$true] %s824_s3 }
 0x120   : > { %s6413_s22 = scalar_lea.hbm %s8037_s17, 32 }
 0x121   : > { %p6414_p5 = scmp.ne.s32.totalorder %s8037_s17, %s6413_s22  ;;  %p6420_p10 = scmp.lt.u32.totalorder %s6413_s22, %s8037_s17 }
 0x123   : > { %p6416_p6 = pnand %p6414_p5, %p6888_p0 }
 0x125   : > { %p6417_p9 = pneg %p6416_p6 }
 0x127   : > { %p6422_p13 = pnand %p6420_p10, %p6417_p9 }
 0x129   : > { %6425 = shalt.err (!%p6422_p13)
}
 0x12a   : > { %s6426_s9 = scalar_lea.vmem %s796_s15, 32  ;;  %p6434_p4 = scmp.lt.s32.totalorder %s796_s15, %s796_s15 }
 0x12b   : > { %p6427_p1 = scmp.ne.s32.totalorder %s796_s15, %s6426_s9  ;;  %p6435_p7 = scmp.lt.s32.totalorder %s6426_s9, %s6426_s9 }
 0x12d   : > { %p6429_p2 = pnand %p6427_p1, %p6888_p0  ;;  %p6436_p8 = por %p6435_p7, %p6434_p4 }
 0x12f   : > { %p6430_p3 = pneg %p6429_p2 }
 0x131   : > { %p6437_p11 = pnand %p6436_p8, %p6430_p3 }
 0x133   : > { %6440 = shalt.err (!%p6437_p11)
}
 0x134   : > { %6012 = dma.hbm_to_vmem [thread:$0]  (!%p6876_p12), %s8037_s17, 32, %s796_s15, [#allocation12], %s8140_s18, %s8140_s18, %s8139_s10  }
 0x135   : > { %s6441_s16 = scalar_lea.hbm %s8040_s20, 32 }
 0x136   : > { %p6442_p5 = scmp.ne.s32.totalorder %s8040_s20, %s6441_s16  ;;  %p6448_p10 = scmp.lt.u32.totalorder %s6441_s16, %s8040_s20 }
 0x138   : > { %p6444_p6 = pnand %p6442_p5, %p6888_p0 }
 0x13a   : > { %p6445_p9 = pneg %p6444_p6 }
 0x13c   : > { %p6450_p13 = pnand %p6448_p10, %p6445_p9 }
 0x13e   : > { %6453 = shalt.err (!%p6450_p13)
}
 0x13f   : > { %s6454_s11 = scalar_lea.vmem %s825_s3, 32  ;;  %p6462_p4 = scmp.lt.s32.totalorder %s825_s3, %s825_s3 }
 0x140   : > { %p6455_p1 = scmp.ne.s32.totalorder %s825_s3, %s6454_s11  ;;  %p6463_p7 = scmp.lt.s32.totalorder %s6454_s11, %s6454_s11 }
 0x142   : > { %p6457_p2 = pnand %p6455_p1, %p6888_p0  ;;  %p6464_p8 = por %p6463_p7, %p6462_p4 }
 0x144   : > { %p6458_p3 = pneg %p6457_p2 }
 0x146   : > { %p6465_p11 = pnand %p6464_p8, %p6458_p3 }
 0x148   : > { %6468 = shalt.err (!%p6465_p11)
}
 0x149   : > { %6018 = dma.hbm_to_vmem [thread:$0]  (!%p6876_p12), %s8040_s20, 32, %s825_s3, [#allocation15], %s8140_s18, %s8140_s18, %s8139_s10  }
 0x14a   : > { %s6664_s9 = smov [#allocation19]   ;;  %s6665_s7 = smov [#allocation22]  }
 0x14b   : > { %s853_s29 = sshll.u32 %s6664_s9, 4  ;;  %s882_s30 = sshll.u32 %s6665_s7, 4  ;;  %s854_s29 = int_to_ptr.vmem [resolvable:$true] %s853_s29  ;;  %s883_s30 = int_to_ptr.vmem [resolvable:$true] %s882_s30 }
 0x14c   : > { %s6469_s8 = scalar_lea.hbm %s8043_s23, 32 }
 0x14d   : > { %p6470_p5 = scmp.ne.s32.totalorder %s8043_s23, %s6469_s8  ;;  %p6476_p10 = scmp.lt.u32.totalorder %s6469_s8, %s8043_s23 }
 0x14f   : > { %p6472_p6 = pnand %p6470_p5, %p6888_p0 }
 0x151   : > { %p6473_p9 = pneg %p6472_p6 }
 0x153   : > { %p6478_p13 = pnand %p6476_p10, %p6473_p9 }
 0x155   : > { %6481 = shalt.err (!%p6478_p13)
}
 0x156   : > { %s6482_s3 = scalar_lea.vmem %s854_s29, 32  ;;  %p6490_p4 = scmp.lt.s32.totalorder %s854_s29, %s854_s29 }
 0x157   : > { %p6483_p1 = scmp.ne.s32.totalorder %s854_s29, %s6482_s3  ;;  %p6491_p7 = scmp.lt.s32.totalorder %s6482_s3, %s6482_s3 }
 0x159   : > { %p6485_p2 = pnand %p6483_p1, %p6888_p0  ;;  %p6492_p8 = por %p6491_p7, %p6490_p4 }
 0x15b   : > { %p6486_p3 = pneg %p6485_p2 }
 0x15d   : > { %p6493_p11 = pnand %p6492_p8, %p6486_p3 }
 0x15f   : > { %6496 = shalt.err (!%p6493_p11)
}
 0x160   : > { %6024 = dma.hbm_to_vmem [thread:$0]  (!%p6876_p12), %s8043_s23, 32, %s854_s29, [#allocation18], %s8140_s18, %s8140_s18, %s8139_s10  }
 0x161   : > { %s6497_s14 = scalar_lea.hbm %s8046_s26, 32 }
 0x162   : > { %p6498_p5 = scmp.ne.s32.totalorder %s8046_s26, %s6497_s14  ;;  %p6504_p10 = scmp.lt.u32.totalorder %s6497_s14, %s8046_s26 }
 0x164   : > { %p6500_p6 = pnand %p6498_p5, %p6888_p0 }
 0x166   : > { %p6501_p9 = pneg %p6500_p6 }
 0x168   : > { %p6506_p13 = pnand %p6504_p10, %p6501_p9 }
 0x16a   : > { %6509 = shalt.err (!%p6506_p13)
}
 0x16b   : > { %s6510_s4 = scalar_lea.vmem %s883_s30, 32  ;;  %p6518_p4 = scmp.lt.s32.totalorder %s883_s30, %s883_s30 }
 0x16c   : > { %p6511_p1 = scmp.ne.s32.totalorder %s883_s30, %s6510_s4  ;;  %p6519_p7 = scmp.lt.s32.totalorder %s6510_s4, %s6510_s4 }
 0x16e   : > { %p6513_p2 = pnand %p6511_p1, %p6888_p0  ;;  %p6520_p8 = por %p6519_p7, %p6518_p4 }
 0x170   : > { %p6514_p3 = pneg %p6513_p2 }
 0x172   : > { %p6521_p11 = pnand %p6520_p8, %p6514_p3 }
 0x174   : > { %6524 = shalt.err (!%p6521_p11)
}
 0x175   : > { %6030 = dma.hbm_to_vmem [thread:$0]  (!%p6876_p12), %s8046_s26, 32, %s883_s30, [#allocation21], %s8140_s18, %s8140_s18, %s8139_s10  }
 0x176   : > { %s6666_s3 = smov [#allocation23]   ;;  %s6525_s7 = scalar_lea.hbm %s8047_s27, 32 }
 0x177   : > { %s895_s15 = sshll.u32 %s6666_s3, 4  ;;  %p6526_p5 = scmp.ne.s32.totalorder %s8047_s27, %s6525_s7  ;;  %s896_s15 = int_to_ptr.vmem [resolvable:$true] %s895_s15 }
 0x178   : > { %p6532_p10 = scmp.lt.u32.totalorder %s6525_s7, %s8047_s27 }
 0x179   : > { %p6528_p6 = pnand %p6526_p5, %p6888_p0 }
 0x17b   : > { %p6529_p9 = pneg %p6528_p6 }
 0x17d   : > { %p6534_p13 = pnand %p6532_p10, %p6529_p9 }
 0x17f   : > { %6537 = shalt.err (!%p6534_p13)
}
 0x180   : > { %s6538_s30 = scalar_lea.vmem %s896_s15, 32  ;;  %p6546_p4 = scmp.lt.s32.totalorder %s896_s15, %s896_s15 }
 0x181   : > { %p6539_p1 = scmp.ne.s32.totalorder %s896_s15, %s6538_s30  ;;  %p6547_p7 = scmp.lt.s32.totalorder %s6538_s30, %s6538_s30 }
 0x183   : > { %p6541_p2 = pnand %p6539_p1, %p6888_p0  ;;  %p6548_p8 = por %p6547_p7, %p6546_p4 }
 0x185   : > { %p6542_p3 = pneg %p6541_p2 }
 0x187   : > { %p6549_p11 = pnand %p6548_p8, %p6542_p3 }
 0x189   : > { %6552 = shalt.err (!%p6549_p11)
}
 0x18a   : > { %6033 = dma.hbm_to_vmem [thread:$0]  (!%p6876_p12), %s8047_s27, 32, %s896_s15, [#allocation24], %s8140_s18, %s8140_s18, %s8139_s10  }
 0x18b   : > { %p8142_p5 = scmp.ne.s32.totalorder %s8128_s12, 0 }
 0x18c   : > { %s8143_s1 = sld [smem:[#allocation39_spill]] (!%p8142_p5) }
 0x18d   : > { %926 = sbr.rel (%p8142_p5) target bundleno = 8902 (0x22c6), region = 132 }
 0x192   : > { %p8144_p0 = scmp.eq.s32.totalorder (!%p8142_p5), %s8143_s1, 0 }
 0x194   : > { %6598 = dma.done.wait (%p8144_p0), [#allocation3], 512   ;;  %p8145_p6 = pmov %p8144_p0 }
 0x195   : > { %p8146_p9 = pmov %p8144_p0 }
 0x196   : > { %6600 = vsyncadd (%p8145_p6), [#allocation3], 4294966784 }
 0x197   : > { %6602 = dma.done.wait (%p8146_p9), [#allocation6], 544   ;;  %p8147_p10 = pmov %p8144_p0 }
 0x198   : > { %p8148_p13 = pmov %p8144_p0 }
 0x199   : > { %6604 = vsyncadd (%p8147_p10), [#allocation6], 4294966752 }
 0x19a   : > { %6606 = dma.done.wait (%p8148_p13), [#allocation9], 64   ;;  %p8149_p12 = pmov %p8144_p0 }
 0x19b   : > { %p8150_p1 = pmov %p8144_p0 }
 0x19c   : > { %6608 = vsyncadd (%p8149_p12), [#allocation9], 4294967232 }
 0x19d   : > { %6610 = dma.done.wait (%p8150_p1), [#allocation12], 64   ;;  %p8151_p2 = pmov %p8144_p0 }
 0x19e   : > { %p8152_p3 = pmov %p8144_p0 }
 0x19f   : > { %6612 = vsyncadd (%p8151_p2), [#allocation12], 4294967232 }
 0x1a0   : > { %6614 = dma.done.wait (%p8152_p3), [#allocation15], 64   ;;  %p8153_p4 = pmov %p8144_p0 }
 0x1a1   : > { %p8154_p7 = pmov %p8144_p0 }
 0x1a2   : > { %6616 = vsyncadd (%p8153_p4), [#allocation15], 4294967232 }
 0x1a3   : > { %6618 = dma.done.wait (%p8154_p7), [#allocation18], 64   ;;  %p8155_p8 = pmov %p8144_p0 }
 0x1a4   : > { %p8156_p11 = pmov %p8144_p0 }
 0x1a5   : > { %6620 = vsyncadd (%p8155_p8), [#allocation18], 4294967232 }
 0x1a6   : > { %6622 = dma.done.wait (%p8156_p11), [#allocation21], 64   ;;  %p8157_p5 = pmov %p8144_p0 }
 0x1a8   : > { %6624 = vsyncadd (%p8157_p5), [#allocation21], 4294967232 }
 0x1a9   : > { %6626 = dma.done.wait (%p8144_p0), [#allocation24], 32   ;;  %p8158_p6 = pmov %p8144_p0 }
 0x1aa   : > { %p1056_p9 = scmp.lt.s32.totalorder %s8143_s1, 1  ;;  %v6667_v0 = vmov 0.0|0.0   ;;  %vm6668_vm0 = vmmov 0   ;;  %v6669_v1 = vmov 0.0   ;;  %s8159_s18 = sld [smem:[#allocation52_spill]]  ;;  %vm1106_vm1 = vcmask 261120  }
 0x1ab   : > { %6628 = vsyncadd (%p8158_p6), [#allocation24], 4294967264  ;;  %5705 = vmatprep.subr.bf16.mxu0 %v6667_v0  ;;  %5243 = vmatprep.mubr.msk.f32.mxu0 %vm6668_vm0, %v6669_v1  ;;  %s8160_s8 = sld [smem:[#allocation44_spill]]  ;;  %v7242_v9 = vld [vmem:[#allocation2] sm:$0xff]  ;;  %vm1184_vm2 = vcmask 64512   ;;  %s8161_s4 = sld [smem:[#allocation53_spill]] }
 0x1ac   : > { %s7219_s12 = scalar_select %p1056_p9, %s8143_s1, 1  ;;  %5256 = vmatprep.mubr.msk.f32.mxu1 %vm1184_vm2, %v7242_v9  ;;  %v7253_v16 = vld [vmem:[#allocation2 + $0x8] sm:$0xff]  ;;  %v7255_v17 = vld [vmem:[#allocation2 + $0x10] sm:$0xff]  ;;  %v7262_v18 = vld [vmem:[#allocation2 + $0x18] sm:$0xff]  ;;  %vm1541_vm4 = vcmask 31744   ;;  %vm2011_vm6 = vcmask 1041408  }
 0x1ad   : > { %s8086_s6 = smov 64   ;;  %s8087_s10 = smov 96   ;;  %v7277_v19 = vld [vmem:[#allocation5 + $0x8] sm:$0xff]  ;;  %v7279_v20 = vld [vmem:[#allocation5] sm:$0xff]  ;;  %v7283_v25 = vld [vmem:[#allocation5 + $0x18] sm:$0xff]  ;;  %vm6672_vm7 = vmmov 1  }
 0x1ae   : > { %s4844_s7 = sshll.u32 %s7219_s12, 3  ;;  %vm7287_vm3 = vmpackc.low %vm1106_vm1, %vm1106_vm1  ;;  %v7291_v27 = vld [vmem:[#allocation5 + $0x10] sm:$0xff]  ;;  %s8164_s3 = sld [smem:[#allocation48_spill]]  ;;  %vm1995_vm9 = vcmask 80896   ;;  %vm2301_vm10 = vcmask 326656   ;;  %vm2760_vm11 = vcmask 523264  }
 0x1af   : > { %vm7333_vm5 = vmpackc.low %vm1541_vm4, %vm1541_vm4  ;;  %s8167_s30 = sld [smem:[#allocation54_spill]]  ;;  %s5018_s11 = sshll.u32 %s7219_s12, 4 }
 0x1b0   : > { %v1095_v2 = vld [vmem:[%s8159_s18] sm:$0xff]  ;;  %v1096_v3 = vld [vmem:[%s8159_s18 + $0x8] sm:$0xff]  ;;  %v1097_v4 = vld [vmem:[%s8159_s18 + $0x10] sm:$0xff]  ;;  %s8171_s2 = sld [smem:[#allocation45_spill]]  ;;  %s8173_s15 = smov 96  }
 0x1b1   : > { %v5706_v5 = vpack.c.bf16 %v1096_v3, %v1095_v2  ;;  %v1098_v6 = vld [vmem:[%s8159_s18 + $0x18] sm:$0xff]  ;;  %s1059_s22 = scalar_lea.vmem %s8160_s8, %s4844_s7  ;;  %v4847_v10 = vld [vmem:[%s8161_s4] ss:$0 sm:$0xff]  ;;  %s8169_s8 = sld [smem:[#allocation60_spill]]  ;;  %vm7413_vm8 = vmpackc.low %vm2011_vm6, %vm6672_vm7 }
 0x1b2   : > { %v5709_v7 = vpack.c.bf16 %v1098_v6, %v1097_v4  ;;  %v7238_v8 = vld [vmem:[%s1059_s22] sm:$0xff]  ;;  %s8176_s7 = sld [smem:[#allocation49_spill]]  ;;  %s8177_s9 = sld [smem:[#allocation50_spill]] }
 0x1b3   : > { %5707 = vmatpush3.bf16.msra.mxu0 %v5706_v5  ;;  %s8181_s16 = sld [smem:[#allocation62_spill]]  ;;  %s8185_s12 = sld [smem:[#allocation36_spill]] }
 0x1b4   : > { %5708 = vmatprep.subr.bf16.mxu0 %v6667_v0  ;;  %v1076_v37 = vld [vmem:[%s8164_s3] sm:$0xff]  ;;  %v1077_v38 = vld [vmem:[%s8164_s3 + $0x8] sm:$0xff]  ;;  %v1078_v39 = vld [vmem:[%s8164_s3 + $0x10] sm:$0xff]  ;;  %s8186_s13 = sld [smem:[#allocation42_spill]] }
 0x1b5   : > { %v7314_v40 = vpack.c.bf16 %v1077_v38, %v1076_v37  ;;  %v1079_v41 = vld [vmem:[%s8164_s3 + $0x18] sm:$0xff]  ;;  %s8168_s0 = smov %s8167_s30  ;;  %v1702_v62 = vld [vmem:[%s8167_s30] sm:$0xff]  ;;  %s8187_s5 = sld [smem:[#allocation64_spill]] }
 0x1b6   : > { %v7320_v42 = vpack.c.bf16 %v1079_v41, %v1078_v39  ;;  %v1703_v63 = vld [vmem:[%s8168_s0 + $0x8] sm:$0xff]  ;;  %v1704_v5 = vld [vmem:[%s8168_s0 + $0x10] sm:$0xff]  ;;  %v1705_v6 = vld [vmem:[%s8168_s0 + $0x18] sm:$0xff]  ;;  %s1064_s14 = scalar_lea.vmem %s8171_s2, %s5018_s11  ;;  %s8179_s2 = sld [smem:[#allocation51_spill]] }
 0x1b7   : > { %5710 = vmatpush3.bf16.msra.mxu0 %v5709_v7  ;;  %v5740_v3 = vpack.c.bf16 %v1703_v63, %v1702_v62  ;;  %v5743_v7 = vpack.c.bf16 %v1705_v6, %v1704_v5  ;;  %s8170_s22 = smov %s8169_s8  ;;  %v4872_v6 = vld [vmem:[#allocation10] ss:$0 sm:$0xff]  ;;  %s8184_s11 = smov 64  }
 0x1ba   : > { %5244 = vmatmul.mubr.msk.f32.vlgmr.msra.gmra.mrb[0].mxu0 %vm1106_vm1, %v7238_v8  ;;  %p8189_p13 = scmp.ne.s32.totalorder %s8186_s13, 0 }
 0x1bb   : > { %5248 = vmatprep.mubr.msk.f32.mxu0 %vm1184_vm2, %v7242_v9 }
 0x28d   : > { %v1176_v11 = vpop.f32.mrb[0].mxu0 }
 0x28e   : > { %v1177_v12 = vadd.f32 %v4847_v10, %v1176_v11  ;;  %v5245_v13 = vpop.f32.mrb[1].mxu0  ;;  %v1903_v10 = vld [vmem:[%s8169_s8] sm:$0xff]  ;;  %v1904_v11 = vld [vmem:[%s8170_s22 + $0x8] sm:$0xff]  ;;  %s8182_s8 = sld [smem:[#allocation63_spill]] }
 0x28f   : > { %v1905_v13 = vld [vmem:[%s8170_s22 + $0x10] sm:$0xff] }
 0x290   : > { %1286 = vrot.lane.b32.xlu1 %v1177_v12, %s8086_s6  ;;  %1181 = vrot.lane.b32.xlu0 %v1177_v12, %s8087_s10  ;;  %s8172_s6 = sld [smem:[#allocation58_spill]]  ;;  %s8180_s10 = sld [smem:[#allocation61_spill]] }
 0x294   : > { %s8183_s3 = smov %s8182_s8 }
 0x296   : > { %v1820_v37 = vld [vmem:[%s8172_s6 + $0x8] sm:$0xff]  ;;  %v1822_v39 = vld [vmem:[%s8172_s6 + $0x18] sm:$0xff] }
 0x302   : > { %v1287_v14 = vpop.permute.xlu1 %1286  ;;  %v1182_v15 = vpop.permute.xlu0 %1181 }
 0x303   : > { %5246 = vmatprep.subr.mxu0 %v1182_v15  ;;  %5254 = vmatprep.subr.mxu1 %v1287_v14 }
 0x304   : > { %5247 = vmatpush3.msra.mxu0 %v1182_v15  ;;  %5255 = vmatpush3.msra.mxu1 %v1287_v14  ;;  %v1906_v14 = vld [vmem:[%s8170_s22 + $0x18] sm:$0xff] }
 0x305   : > { %5249 = vmatmul.mubr.msk.f32.vlgmr.msra.gmra.mrb[2].mxu0 %vm1184_vm2, %v7253_v16  ;;  %5711 = vmatprep.subr.bf16.mxu0 %v6667_v0  ;;  %v5755_v15 = vpack.c.bf16 %v1906_v14, %v1905_v13  ;;  %v7463_v13 = vld [vmem:[%s8176_s7 + $0x18] sm:$0xff]  ;;  %v7476_v14 = vld [vmem:[%s8176_s7 + $0x20] sm:$0xff] }
 0x306   : > { %5251 = vmatprep.mubr.msk.f32.mxu0 %vm1184_vm2, %v7255_v17  ;;  %5257 = vmatmul.mubr.msk.f32.vlgmr.msra.gmra.mrb[0].mxu1 %vm1184_vm2, %v7253_v16 }
 0x307   : > { %5719 = vmatprep.subr.bf16.mxu1 %v6667_v0  ;;  %5259 = vmatprep.mubr.msk.f32.mxu1 %vm1184_vm2, %v7255_v17 }
 0x308   : > { %5721 = vmatpush3.bf16.msra.mxu1 %v7314_v40 }
 0x309   : > { %5252 = vmatmul.mubr.msk.f32.gmra.mrb[4].mxu0 %vm1184_vm2, %v7262_v18  ;;  %5722 = vmatprep.subr.bf16.mxu1 %v6667_v0 }
 0x30a   : > { %5270 = vmatprep.mubr.msk.f32.mxu0 %vm6668_vm0, %v6669_v1  ;;  %5260 = vmatmul.mubr.msk.f32.gmra.mrb[2].mxu1 %vm1184_vm2, %v7262_v18 }
 0x30b   : > { %5281 = vmatprep.mubr.msk.f32.mxu1 %vm6668_vm0, %v6669_v1 }
 0x30c   : > { %5724 = vmatpush3.bf16.msra.mxu1 %v7320_v42 }
 0x30d   : > { %5725 = vmatprep.subr.bf16.mxu1 %v6667_v0 }
 0x3d8   : > { %v5250_v21 = vpop.f32.mrb[2].mxu0 }
 0x3d9   : > { %v1283_v22 = vmul.f32 %v5250_v21, %v7277_v19  ;;  %v1263_v23 = vpop.f32.mrb[3].mxu0  ;;  %v5258_v43 = vpop.f32.mrb[0].mxu1  ;;  %v7383_v21 = vld [vmem:[%s1064_s14] sm:$0xff] }
 0x3da   : > { %v1282_v24 = vmul.f32 %v1263_v23, %v7279_v20  ;;  %v1375_v44 = vmul.f32 %v5258_v43, %v7277_v19  ;;  %v1355_v45 = vpop.f32.mrb[1].mxu1  ;;  %v4875_v43 = vld [vmem:[#allocation13] ss:$0 sm:$0xff] }
 0x3db   : > { %v1374_v46 = vmul.f32 %v1355_v45, %v7279_v20 }
 0x3dc   : > { %v5712_v28 = vpack.c.bf16 %v1283_v22, %v1282_v24  ;;  %v5253_v29 = vpop.f32.mrb[4].mxu0  ;;  %v7388_v24 = vld [vmem:[%s1064_s14 + $0x8] sm:$0x3]  ;;  %s8178_s14 = smov %s8177_s9 }
 0x3dd   : > { %v1285_v30 = vmul.f32 %v5253_v29, %v7283_v25  ;;  %v1273_v31 = vpop.f32.mrb[5].mxu0  ;;  %v5734_v47 = vpack.c.bf16 %v1375_v44, %v1374_v46  ;;  %v5261_v48 = vpop.f32.mrb[2].mxu1 }
 0x3de   : > { %5714 = vmatpush3.bf16.xpose.msk.msra.mxu0 %vm7287_vm3, %v5712_v28  ;;  %v1284_v32 = vmul.f32 %v1273_v31, %v7291_v27  ;;  %v1377_v49 = vmul.f32 %v5261_v48, %v7283_v25  ;;  %v1365_v50 = vpop.f32.mrb[3].mxu1  ;;  %v4869_v28 = vld [vmem:[#allocation7] ss:$0 sm:$0xff] }
 0x3df   : > { %5715 = vmatprep.subr.bf16.mxu0 %v6667_v0  ;;  %v1376_v51 = vmul.f32 %v1365_v50, %v7291_v27 }
 0x3e0   : > { %v5716_v33 = vpack.c.bf16 %v1285_v30, %v1284_v32 }
 0x3e1   : > { %v5737_v52 = vpack.c.bf16 %v1377_v49, %v1376_v51 }
 0x3e6   : > { %5718 = vmatpush3.bf16.xpose.msk.msra.mxu0 %vm7287_vm3, %v5716_v33 }
 0x3e7   : > { %5733 = vmatprep.subr.bf16.mxu0 %v6667_v0 }
 0x3ed   : > { %5271 = vmatmul.mubr.msk.f32.vlgmr.msra.gmra.mrb[6].mxu0 %vm1106_vm1, %v1177_v12  ;;  %v5751_v12 = vpack.c.bf16 %v1904_v11, %v1903_v10  ;;  %v7432_v10 = vld [vmem:[%s8176_s7 + $0x8] sm:$0xff] }
 0x3ee   : > { %5303 = vmatprep.mubr.msk.f32.mxu0 %vm6668_vm0, %v6669_v1  ;;  %5735 = vmatpush3.bf16.msra.mxu0 %v5734_v47 }
 0x3ef   : > { %5736 = vmatprep.subr.bf16.mxu0 %v6667_v0 }
 0x3f2   : > { %5738 = vmatpush3.bf16.msra.mxu0 %v5737_v52 }
 0x3f3   : > { %5739 = vmatprep.subr.bf16.mxu0 %v6667_v0 }
 0x4c0   : > { %v1458_v34 = vpop.f32.mrb[6].mxu0 }
 0x4c1   : > { %v5272_v35 = vpop.f32.mrb[7].mxu0  ;;  %v1462_v36 = vsel %vm1106_vm1, %v1458_v34, -inf }
 0x4c2   : > { %1463 = vmax.xlane.f32.xlu0 %v1462_v36  ;;  %v1819_v36 = vld [vmem:[%s8172_s6] sm:$0xff] }
 0x4c3   : > { %v5746_v38 = vpack.c.bf16 %v1820_v37, %v1819_v36 }
 0x54f   : > { %v1464_v53 = vpop.xlane.xlu0 %1463 }
 0x550   : > { %v1465_v54 = vsub.f32 %v1458_v34, %v1464_v53 }
 0x552   : > { %v1466_v55 = vmul.f32 1.442695, %v1465_v54 }
 0x554   : > { %6133 = vpow2.f32 %v1466_v55 }
 0x55e   : > { %v6134_v57 = vpop.eup %6133 }
 0x55f   : > { %5282 = vmatmul.mubr.msk.f32.vlgmr.msra.gmra.mrb[4].mxu1 %vm1106_vm1, %v6134_v57 }
 0x560   : > { %5728 = vmatpush3.bf16.xpose.msk.msra.mxu1 %vm7333_vm5, %v7314_v40  ;;  %5292 = vmatprep.mubr.msk.f32.mxu1 %vm6668_vm0, %v6669_v1 }
 0x561   : > { %5729 = vmatprep.subr.bf16.mxu1 %v6667_v0 }
 0x568   : > { %5732 = vmatpush3.bf16.xpose.msk.msra.mxu1 %vm7333_vm5, %v7320_v42 }
 0x569   : > { %5745 = vmatprep.subr.bf16.mxu1 %v6667_v0 }
 0x632   : > { %v1537_v58 = vpop.f32.mrb[4].mxu1 }
 0x633   : > { %v5283_v59 = vpop.f32.mrb[5].mxu1  ;;  %5293 = vmatmul.mubr.msk.f32.vlgmr.msra.gmra.mrb[6].mxu1 %vm1541_vm4, %v1537_v58 }
 0x634   : > { %5325 = vmatprep.mubr.msk.f32.mxu1 %vm6668_vm0, %v6669_v1  ;;  %5747 = vmatpush3.bf16.msra.mxu1 %v5746_v38  ;;  %v7511_v38 = vld [vmem:[%s8178_s14 + $0x10] sm:$0xff] }
 0x635   : > { %5748 = vmatprep.subr.bf16.mxu1 %v6667_v0 }
 0x706   : > { %v1623_v60 = vpop.f32.mrb[6].mxu1 }
 0x707   : > { %6135 = vrcp.f32 %v1623_v60  ;;  %v5294_v61 = vpop.f32.mrb[7].mxu1 }
 0x711   : > { %v6136_v2 = vpop.eup %6135 }
 0x712   : > { %v1628_v4 = vmul.f32 %v6136_v2, %v6134_v57 }
 0x714   : > { %5304 = vmatmul.mubr.msk.f32.vlgmr.msra.gmra.mrb[8].mxu0 %vm1106_vm1, %v1628_v4  ;;  %v7423_v4 = vld [vmem:[%s8176_s7] sm:$0xff] }
 0x715   : > { %5741 = vmatpush3.bf16.msra.mxu0 %v5740_v3  ;;  %5314 = vmatprep.mubr.msk.f32.mxu0 %vm6668_vm0, %v6669_v1  ;;  %v4871_v3 = vld [vmem:[#allocation8] ss:$0 sm:$0xff] }
 0x716   : > { %5742 = vmatprep.subr.bf16.mxu0 %v6667_v0 }
 0x719   : > { %5744 = vmatpush3.bf16.msra.mxu0 %v5743_v7 }
 0x71a   : > { %5752 = vmatprep.subr.bf16.mxu0 %v5751_v12 }
 0x7e7   : > { %v1698_v22 = vpop.f32.mrb[8].mxu0 }
 0x7e8   : > { %v5305_v23 = vpop.f32.mrb[9].mxu0  ;;  %5315 = vmatmul.mubr.msk.f32.vlgmr.msra.gmra.mrb[10].mxu0 %vm1106_vm1, %v1698_v22 }
 0x7e9   : > { %5754 = vmatpush3.bf16.msra.mxu0 %v5751_v12  ;;  %5336 = vmatprep.mubr.msk.f32.mxu0 %vm1106_vm1, %v7383_v21  ;;  %v7449_v12 = vld [vmem:[%s8176_s7 + $0x10] sm:$0xff] }
 0x7ea   : > { %5756 = vmatprep.subr.bf16.mxu0 %v5755_v15 }
 0x7ed   : > { %5758 = vmatpush3.bf16.msra.mxu0 %v5755_v15 }
 0x7ee   : > { %5763 = vmatprep.subr.bf16.mxu0 %v6667_v0 }
 0x7f0   : > { %5337 = vmatmul.mubr.msk.f32.vlgmr.msra.gmra.mrb[12].mxu0 %vm1106_vm1, %v7388_v24 }
 0x7f1   : > { %5362 = vmatprep.mubr.msk.f32.mxu0 %vm6668_vm0, %v6669_v1 }
 0x8bb   : > { %v1782_v29 = vpop.f32.mrb[10].mxu0 }
 0x8bc   : > { %v1783_v30 = vadd.f32 %v4869_v28, %v1782_v29  ;;  %v5316_v31 = vpop.f32.mrb[11].mxu0  ;;  %v7497_v29 = vld [vmem:[%s8177_s9] sm:$0xff] }
 0x8be   : > { %v1786_v32 = vadd.f32 %v1783_v30, %v7238_v8  ;;  %v1821_v8 = vld [vmem:[%s8172_s6 + $0x10] sm:$0xff]  ;;  %v7502_v30 = vld [vmem:[%s8178_s14 + $0x8] sm:$0xff] }
 0x8bf   : > { %v5749_v44 = vpack.c.bf16 %v1822_v39, %v1821_v8  ;;  %v7516_v8 = vld [vmem:[%s8178_s14 + $0x18] sm:$0xff] }
 0x8c0   : > { %v1789_v33 = vsel %vm1106_vm1, %v1786_v32, 0.0  ;;  %v1794_v34 = vmul.f32 %v1786_v32, %v1786_v32 }
 0x8c1   : > { %1790 = vadd.xlane.f32.xlu1 %v1789_v33  ;;  %5750 = vmatpush3.bf16.msra.mxu1 %v5749_v44 }
 0x8c2   : > { %v1795_v35 = vsel %vm1106_vm1, %v1794_v34, 0.0  ;;  %5759 = vmatprep.subr.bf16.mxu1 %v6667_v0 }
 0x8c3   : > { %1796 = vadd.xlane.f32.xlu0 %v1795_v35  ;;  %v5338_v41 = vpop.f32.mrb[12].mxu0 }
 0x8c4   : > { %v1992_v45 = vadd.f32 %v5338_v41, %v4875_v43  ;;  %v1986_v46 = vpop.f32.mrb[13].mxu0 }
 0x8c5   : > { %v1987_v47 = vadd.f32 %v4875_v43, %v1986_v46 }
 0x8c7   : > { %v6123_v48 = vpack.i.bf16 %v1992_v45, %v1987_v47  ;;  %v5760_v49 = vpack.c.bf16 %v1992_v45, %v1987_v47 }
 0x8d2   : > { %6124 = vrot.lane.b32.xlu1 %v6123_v48, %s8173_s15  ;;  %v7526_v48 = vld [vmem:[%s8178_s14 + $0x20] sm:$0xff] }
 0x94e   : > { %v1791_v50 = vpop.xlane.xlu1 %1790 }
 0x94f   : > { %v1793_v51 = vmul.f32 0.03125, %v1791_v50  ;;  %v4873_v50 = vld [vmem:[#allocation11] ss:$0 sm:$0xff] }
 0x950   : > { %v1797_v52 = vpop.xlane.xlu0 %1796 }
 0x951   : > { %v1799_v53 = vmul.f32 %v1793_v51, %v1793_v51  ;;  %v1798_v54 = vmul.f32 0.03125, %v1797_v52  ;;  %v1801_v63 = vsub.f32 %v1786_v32, %v1793_v51  ;;  %v1090_v52 = vld [vmem:[%s8179_s2] sm:$0xff] }
 0x952   : > { %v6125_v58 = vpop.permute.xlu1 %6124 }
 0x953   : > { %v1800_v55 = vsub.f32 %v1798_v54, %v1799_v53  ;;  %v6127_v59 = vunpack.i.h.bf16 %v6125_v58  ;;  %v6126_v60 = vunpack.i.l.bf16 %v6125_v58  ;;  %v1091_v53 = vld [vmem:[%s8179_s2 + $0x8] sm:$0xff] }
 0x954   : > { %v7541_v54 = vpack.c.bf16 %v1091_v53, %v1090_v52  ;;  %v2545_v52 = vld [vmem:[%s8180_s10 + $0x8] sm:$0xff] }
 0x955   : > { %v1802_v57 = vadd.f32 1e-05, %v1800_v55  ;;  %v5764_v61 = vpack.c.bf16 %v6127_v59, %v6126_v60  ;;  %v1092_v59 = vld [vmem:[%s8179_s2 + $0x10] sm:$0xff]  ;;  %v1093_v60 = vld [vmem:[%s8179_s2 + $0x18] sm:$0xff] }
 0x957   : > { %6137 = vrsqrt.f32 %v1802_v57  ;;  %5766 = vmatpush3.bf16.msk.msra.mxu0 %vm7413_vm8, %v5764_v61  ;;  %v7556_v61 = vpack.c.bf16 %v1093_v60, %v1092_v59  ;;  %v2547_v59 = vld [vmem:[%s8180_s10 + $0x18] sm:$0xff] }
 0x958   : > { %5775 = vmatprep.subr.bf16.mxu0 %v6667_v0 }
 0x95a   : > { %5363 = vmatmul.mubr.msk.f32.vlgmr.msra.gmra.mrb[14].mxu0 %vm1995_vm9, %v7423_v4 }
 0x95b   : > { %5365 = vmatprep.mubr.msk.f32.mxu0 %vm6668_vm0, %v6669_v1  ;;  %5777 = vmatpush3.bf16.msra.mxu0 %v7541_v54 }
 0x95c   : > { %5778 = vmatprep.subr.bf16.mxu0 %v6667_v0 }
 0x95e   : > { %5366 = vmatmul.mubr.msk.f32.gmra.mrb[16].mxu0 %vm1995_vm9, %v7432_v10 }
 0x95f   : > { %5368 = vmatprep.mubr.msk.f32.mxu0 %vm6668_vm0, %v6669_v1  ;;  %5780 = vmatpush3.bf16.msra.mxu0 %v7556_v61 }
 0x960   : > { %5398 = vmatprep.subr.mxu0 %v6669_v1 }
 0x961   : > { %v6138_v2 = vpop.eup %6137 }
 0x962   : > { %v1804_v5 = vmul.f32 %v6138_v2, %v1801_v63  ;;  %5369 = vmatmul.mubr.msk.f32.gmra.mrb[18].mxu0 %vm1995_vm9, %v7449_v12  ;;  %v7566_v63 = vld [vmem:[%s8179_s2 + $0x20] sm:$0xff] }
 0x963   : > { %5371 = vmatprep.mubr.msk.f32.mxu0 %vm6668_vm0, %v6669_v1  ;;  %5399 = vmatpush3.msra.mxu0 %v7566_v63 }
 0x964   : > { %v1811_v7 = vmul.f32 %v4871_v3, %v1804_v5  ;;  %5789 = vmatprep.subr.bf16.mxu0 %v6667_v0 }
 0x966   : > { %v7434_v11 = vadd.f32 %v4872_v6, %v1811_v7  ;;  %5372 = vmatmul.mubr.msk.f32.gmra.mrb[20].mxu0 %vm1995_vm9, %v7463_v13 }
 0x967   : > { %5374 = vmatprep.mubr.msk.f32.mxu0 %vm6668_vm0, %v6669_v1 }
 0x968   : > { %5326 = vmatmul.mubr.msk.f32.vlgmr.msra.gmra.mrb[8].mxu1 %vm1106_vm1, %v7434_v11 }
 0x969   : > { %5762 = vmatpush3.bf16.msk.msra.mxu1 %vm7413_vm8, %v5760_v49  ;;  %5343 = vmatprep.mubr.msk.f32.mxu1 %vm6668_vm0, %v6669_v1 }
 0x96a   : > { %5767 = vmatprep.subr.bf16.mxu1 %v6667_v0  ;;  %5375 = vmatmul.mubr.msk.f32.gmra.mrb[22].mxu0 %vm1995_vm9, %v7476_v14 }
 0x96b   : > { %5400 = vmatprep.mubr.msk.f32.mxu0 %vm6668_vm0, %v6669_v1 }
 0x96c   : > { %5344 = vmatmul.mubr.msk.f32.vlgmr.msra.gmra.mrb[10].mxu1 %vm1995_vm9, %v7423_v4 }
 0x96d   : > { %5346 = vmatprep.mubr.msk.f32.mxu1 %vm6668_vm0, %v6669_v1 }
 0x970   : > { %5347 = vmatmul.mubr.msk.f32.gmra.mrb[12].mxu1 %vm1995_vm9, %v7432_v10 }
 0x971   : > { %5349 = vmatprep.mubr.msk.f32.mxu1 %vm6668_vm0, %v6669_v1 }
 0x974   : > { %5350 = vmatmul.mubr.msk.f32.gmra.mrb[14].mxu1 %vm1995_vm9, %v7449_v12 }
 0x975   : > { %5352 = vmatprep.mubr.msk.f32.mxu1 %vm6668_vm0, %v6669_v1 }
 0x978   : > { %5353 = vmatmul.mubr.msk.f32.gmra.mrb[16].mxu1 %vm1995_vm9, %v7463_v13 }
 0x979   : > { %5355 = vmatprep.mubr.msk.f32.mxu1 %vm6668_vm0, %v6669_v1 }
 0x97c   : > { %5356 = vmatmul.mubr.msk.f32.gmra.mrb[18].mxu1 %vm1995_vm9, %v7476_v14 }
 0x97d   : > { %5387 = vmatprep.mubr.msk.f32.mxu1 %vm6668_vm0, %v6669_v1 }
 0xa2d   : > { %v2184_v2 = vpop.f32.mrb[14].mxu0 }
 0xa2e   : > { %v2208_v3 = vmul.f32 %v2184_v2, %v7497_v29  ;;  %v5364_v5 = vpop.f32.mrb[15].mxu0 }
 0xa2f   : > { %v4904_v5 = vld [vmem:[#allocation14] ss:$0 sm:$0xff] }
 0xa31   : > { %v2189_v6 = vpop.f32.mrb[16].mxu0 }
 0xa32   : > { %v2209_v7 = vmul.f32 %v2189_v6, %v7502_v30 }
 0xa3b   : > { %v1899_v15 = vpop.f32.mrb[8].mxu1 }
 0xa3c   : > { %v5327_v22 = vpop.f32.mrb[9].mxu1  ;;  %v1900_v51 = vadd.f32 %v4873_v50, %v1899_v15  ;;  %v5367_v15 = vpop.f32.mrb[17].mxu0 }
 0xa3d   : > { %v2194_v22 = vpop.f32.mrb[18].mxu0 }
 0xa3f   : > { %v2081_v23 = vpop.f32.mrb[10].mxu1 }
 0xa40   : > { %v5345_v28 = vpop.f32.mrb[11].mxu1  ;;  %v2105_v32 = vmul.f32 %v2081_v23, %v7497_v29  ;;  %v5790_v23 = vpack.c.bf16 %v2209_v7, %v2208_v3 }
 0xa41   : > { %v2210_v28 = vmul.f32 %v2194_v22, %v7511_v38 }
 0xa43   : > { %v2086_v31 = vpop.f32.mrb[12].mxu1 }
 0xa44   : > { %v2106_v33 = vmul.f32 %v2086_v31, %v7502_v30  ;;  %v5348_v34 = vpop.f32.mrb[13].mxu1  ;;  %v5370_v31 = vpop.f32.mrb[19].mxu0 }
 0xa46   : > { %v5768_v35 = vpack.c.bf16 %v2106_v33, %v2105_v32  ;;  %v2199_v32 = vpop.f32.mrb[20].mxu0 }
 0xa47   : > { %v2091_v36 = vpop.f32.mrb[14].mxu1  ;;  %v2211_v33 = vmul.f32 %v2199_v32, %v7516_v8  ;;  %v5373_v34 = vpop.f32.mrb[21].mxu0  ;;  %v2660_v32 = vld [vmem:[%s8181_s16] sm:$0xff] }
 0xa48   : > { %v5351_v37 = vpop.f32.mrb[15].mxu1  ;;  %5770 = vmatpush3.bf16.xpose.msk.msra.mxu1 %vm7287_vm3, %v5768_v35  ;;  %v2107_v41 = vmul.f32 %v2091_v36, %v7511_v38  ;;  %v2204_v35 = vpop.f32.mrb[22].mxu0 }
 0xa49   : > { %5771 = vmatprep.subr.bf16.mxu1 %v6667_v0  ;;  %v5793_v36 = vpack.c.bf16 %v2211_v33, %v2210_v28  ;;  %v5376_v37 = vpop.f32.mrb[23].mxu0  ;;  %v2661_v33 = vld [vmem:[%s8181_s16 + $0x8] sm:$0xff] }
 0xa4a   : > { %v5802_v34 = vpack.c.bf16 %v2661_v33, %v2660_v32  ;;  %v2745_v37 = vld [vmem:[%s8182_s8] sm:$0xff]  ;;  %s5015_s8 = sshll.u32 %s8143_s1, 7  ;;  %s6673_s1 = smov [#allocation25]  }
 0xa4b   : > { %v2096_v39 = vpop.f32.mrb[16].mxu1  ;;  %s7977_s9 = scalar_lea.hbm %s8187_s5, %s5015_s8 }
 0xa4c   : > { %v2108_v43 = vmul.f32 %v2096_v39, %v7516_v8  ;;  %v5354_v44 = vpop.f32.mrb[17].mxu1 }
 0xa4e   : > { %v5772_v45 = vpack.c.bf16 %v2108_v43, %v2107_v41 }
 0xa4f   : > { %v2101_v46 = vpop.f32.mrb[18].mxu1 }
 0xa50   : > { %5774 = vmatpush3.bf16.xpose.msk.msra.mxu1 %vm7287_vm3, %v5772_v45  ;;  %v5357_v47 = vpop.f32.mrb[19].mxu1  ;;  %v2109_v49 = vmul.f32 %v2101_v46, %v7526_v48  ;;  %v2212_v45 = vmul.f32 %v2204_v35, %v7526_v48  ;;  %v2663_v35 = vld [vmem:[%s8181_s16 + $0x18] sm:$0xff] }
 0xa51   : > { %5385 = vmatprep.subr.mxu1 %v6669_v1 }
 0xa58   : > { %5386 = vmatpush3.xpose.msk.msra.mxu1 %vm1106_vm1, %v2109_v49 }
 0xa59   : > { %5781 = vmatprep.subr.bf16.mxu1 %v6667_v0 }
 0xa5b   : > { %5388 = vmatmul.mubr.msk.f32.vlgmr.msra.gmra.mrb[20].mxu1 %vm1106_vm1, %v1900_v51  ;;  %v2544_v51 = vld [vmem:[%s8180_s10] sm:$0xff] }
 0xa5c   : > { %5413 = vmatprep.mubr.msk.f32.mxu1 %vm6668_vm0, %v6669_v1  ;;  %5784 = vmatpush3.bf16.xpose.msk.msra.mxu1 %vm7333_vm5, %v7541_v54 }
 0xa5d   : > { %5785 = vmatprep.subr.bf16.mxu1 %v6667_v0 }
 0xa64   : > { %5788 = vmatpush3.bf16.xpose.msk.msra.mxu1 %vm7333_vm5, %v7556_v61 }
 0xa65   : > { %5411 = vmatprep.subr.mxu1 %v6669_v1 }
 0xa6c   : > { %5412 = vmatpush3.xpose.msk.msra.mxu1 %vm1541_vm4, %v7566_v63 }
 0xa6d   : > { %5801 = vmatprep.subr.bf16.mxu1 %v6667_v0 }
 0xb2e   : > { %v2297_v55 = vpop.f32.mrb[20].mxu1 }
 0xb2f   : > { %v5389_v57 = vpop.f32.mrb[21].mxu1  ;;  %v2302_v58 = vsel %vm2301_vm10, %v2297_v55, -inf }
 0xb30   : > { %2303 = vmax.xlane.f32.xlu0 %v2302_v58  ;;  %v2546_v58 = vld [vmem:[%s8180_s10 + $0x10] sm:$0xff] }
 0xb31   : > { %v5799_v60 = vpack.c.bf16 %v2547_v59, %v2546_v58 }
 0xbbd   : > { %v2304_v39 = vpop.xlane.xlu0 %2303 }
 0xbbe   : > { %v2305_v41 = vsub.f32 %v2297_v55, %v2304_v39  ;;  %v5796_v55 = vpack.c.bf16 %v2545_v52, %v2544_v51  ;;  %v2746_v39 = vld [vmem:[%s8183_s3 + $0x8] sm:$0xff] }
 0xbc0   : > { %v2306_v43 = vmul.f32 1.442695, %v2305_v41  ;;  %v2747_v41 = vld [vmem:[%s8183_s3 + $0x10] sm:$0xff] }
 0xbc2   : > { %6139 = vpow2.f32 %v2306_v43  ;;  %v5808_v43 = vpack.c.bf16 %v2746_v39, %v2745_v37 }
 0xbcc   : > { %v6140_v44 = vpop.eup %6139 }
 0xbcd   : > { %5401 = vmatmul.mubr.msk.f32.vlgmr.msra.gmra.mrb[24].mxu0 %vm2301_vm10, %v6140_v44 }
 0xbce   : > { %5791 = vmatpush3.bf16.msra.mxu0 %v5790_v23  ;;  %5426 = vmatprep.mubr.msk.f32.mxu0 %vm6668_vm0, %v6669_v1 }
 0xbcf   : > { %5792 = vmatprep.subr.bf16.mxu0 %v6667_v0 }
 0xbd2   : > { %5794 = vmatpush3.bf16.msra.mxu0 %v5793_v36 }
 0xbd3   : > { %5424 = vmatprep.subr.mxu0 %v6669_v1 }
 0xbd6   : > { %5425 = vmatpush3.msra.mxu0 %v2212_v45 }
 0xbd7   : > { %5795 = vmatprep.subr.bf16.mxu0 %v6667_v0 }
 0xca0   : > { %v2377_v46 = vpop.f32.mrb[24].mxu0 }
 0xca1   : > { %v5402_v47 = vpop.f32.mrb[25].mxu0  ;;  %5414 = vmatmul.mubr.msk.f32.vlgmr.msra.gmra.mrb[22].mxu1 %vm1541_vm4, %v2377_v46  ;;  %v2749_v46 = vld [vmem:[%s8183_s3 + $0x20] sm:$0xff] }
 0xca2   : > { %5448 = vmatprep.mubr.msk.f32.mxu1 %vm6668_vm0, %v6669_v1  ;;  %5803 = vmatpush3.bf16.msra.mxu1 %v5802_v34  ;;  %v2750_v47 = vld [vmem:[%s8183_s3 + $0x28] sm:$0xff] }
 0xca3   : > { %5804 = vmatprep.subr.bf16.mxu1 %v6667_v0 }
 0xd74   : > { %v2465_v49 = vpop.f32.mrb[22].mxu1 }
 0xd75   : > { %6141 = vrcp.f32 %v2465_v49  ;;  %v5415_v50 = vpop.f32.mrb[23].mxu1  ;;  %v5814_v49 = vpack.c.bf16 %v2750_v47, %v2749_v46  ;;  %v4915_v46 = vld [vmem:[%s8159_s18 + $0x28] sm:$0xff] }
 0xd7f   : > { %v6142_v53 = vpop.eup %6141 }
 0xd80   : > { %v2470_v57 = vmul.f32 %v6142_v53, %v6140_v44  ;;  %v2748_v44 = vld [vmem:[%s8183_s3 + $0x18] sm:$0xff] }
 0xd81   : > { %v5811_v45 = vpack.c.bf16 %v2748_v44, %v2747_v41 }
 0xd82   : > { %5427 = vmatmul.mubr.msk.f32.vlgmr.msra.gmra.mrb[26].mxu0 %vm2301_vm10, %v2470_v57 }
 0xd83   : > { %5797 = vmatpush3.bf16.msra.mxu0 %v5796_v55  ;;  %5437 = vmatprep.mubr.msk.f32.mxu0 %vm6668_vm0, %v6669_v1 }
 0xd84   : > { %5798 = vmatprep.subr.bf16.mxu0 %v6667_v0 }
 0xd87   : > { %5800 = vmatpush3.bf16.msra.mxu0 %v5799_v60 }
 0xd88   : > { %5807 = vmatprep.subr.bf16.mxu0 %v6667_v0 }
 0xe55   : > { %v2540_v2 = vpop.f32.mrb[26].mxu0 }
 0xe56   : > { %v5428_v3 = vpop.f32.mrb[27].mxu0  ;;  %5438 = vmatmul.mubr.msk.f32.vlgmr.msra.gmra.mrb[28].mxu0 %vm1106_vm1, %v2540_v2  ;;  %v4906_v2 = vld [vmem:[#allocation16] ss:$0 sm:$0xff] }
 0xe57   : > { %5467 = vmatprep.mubr.msk.f32.mxu0 %vm6668_vm0, %v6669_v1  ;;  %5809 = vmatpush3.bf16.msra.mxu0 %v5808_v43 }
 0xe58   : > { %5810 = vmatprep.subr.bf16.mxu0 %v6667_v0 }
 0xe5b   : > { %5812 = vmatpush3.bf16.msra.mxu0 %v5811_v45  ;;  %v4914_v45 = vld [vmem:[%s8159_s18 + $0x20] sm:$0xff] }
 0xe5c   : > { %5813 = vmatprep.subr.bf16.mxu0 %v6667_v0  ;;  %v5820_v47 = vpack.c.bf16 %v4915_v46, %v4914_v45 }
 0xe5f   : > { %5815 = vmatpush3.bf16.msra.mxu0 %v5814_v49  ;;  %v4916_v49 = vld [vmem:[%s8159_s18 + $0x30] sm:$0xff] }
 0xe60   : > { %5816 = vmatprep.subr.bf16.mxu0 %v6667_v0 }
 0xf29   : > { %v2624_v6 = vpop.f32.mrb[28].mxu0 }
 0xf2a   : > { %v2625_v7 = vadd.f32 %v4904_v5, %v2624_v6  ;;  %v5439_v15 = vpop.f32.mrb[29].mxu0  ;;  %v4907_v5 = vld [vmem:[#allocation17] ss:$0 sm:$0xff] }
 0xf2b   : > { %v2751_v15 = vld [vmem:[%s8183_s3 + $0x30] sm:$0xff] }
 0xf2c   : > { %v2628_v22 = vadd.f32 %v2625_v7, %v7434_v11  ;;  %v2662_v11 = vld [vmem:[%s8181_s16 + $0x10] sm:$0xff] }
 0xf2d   : > { %v5805_v36 = vpack.c.bf16 %v2663_v35, %v2662_v11  ;;  %v4910_v11 = vld [vmem:[#allocation20] ss:$0 sm:$0xff] }
 0xf2e   : > { %v2631_v23 = vsel %vm1106_vm1, %v2628_v22, 0.0  ;;  %v2635_v28 = vmul.f32 %v2628_v22, %v2628_v22 }
 0xf2f   : > { %2632 = vadd.xlane.f32.xlu0 %v2631_v23  ;;  %5806 = vmatpush3.bf16.msra.mxu1 %v5805_v36  ;;  %v2752_v23 = vld [vmem:[%s8183_s3 + $0x38] sm:$0xff] }
 0xf30   : > { %v2636_v31 = vsel %vm1106_vm1, %v2635_v28, 0.0  ;;  %5819 = vmatprep.subr.bf16.mxu1 %v6667_v0  ;;  %v4908_v28 = vld [vmem:[#allocation19] ss:$0 sm:$0xff] }
 0xf33   : > { %2637 = vadd.xlane.f32.xlu0 %v2636_v31 }
 0xfbc   : > { %v2633_v50 = vpop.xlane.xlu0 %2632 }
 0xfbd   : > { %v2634_v51 = vmul.f32 0.03125, %v2633_v50  ;;  %v4917_v50 = vld [vmem:[%s8159_s18 + $0x38] sm:$0xff] }
 0xfbf   : > { %v2640_v53 = vmul.f32 %v2634_v51, %v2634_v51  ;;  %v2642_v59 = vsub.f32 %v2628_v22, %v2634_v51  ;;  %v5817_v22 = vpack.c.bf16 %v2752_v23, %v2751_v15  ;;  %v5823_v51 = vpack.c.bf16 %v4917_v50, %v4916_v49 }
 0xfc0   : > { %v2638_v52 = vpop.xlane.xlu0 %2637 }
 0xfc1   : > { %v2639_v55 = vmul.f32 0.03125, %v2638_v52  ;;  %5818 = vmatpush3.bf16.msra.mxu0 %v5817_v22  ;;  %v4919_v22 = vld [vmem:[%s8161_s4 + $0x1] ss:$0 sm:$0xff] }
 0xfc3   : > { %v2641_v57 = vsub.f32 %v2639_v55, %v2640_v53 }
 0xfc5   : > { %v2643_v58 = vadd.f32 1e-05, %v2641_v57 }
 0xfc7   : > { %6143 = vrsqrt.f32 %v2643_v58 }
 0xfd1   : > { %v6144_v60 = vpop.eup %6143 }
 0xfd2   : > { %v2645_v3 = vmul.f32 %v6144_v60, %v2642_v59 }
 0xfd4   : > { %v2652_v6 = vmul.f32 %v4906_v2, %v2645_v3 }
 0xfd6   : > { %v2659_v7 = vadd.f32 %v4907_v5, %v2652_v6  ;;  %v4912_v5 = vld [vmem:[#allocation22] ss:$0 sm:$0xff] }
 0xfd8   : > { %5449 = vmatmul.mubr.msk.f32.vlgmr.msra.gmra.mrb[24].mxu1 %vm1106_vm1, %v2659_v7 }
 0xfd9   : > { %5478 = vmatprep.mubr.msk.f32.mxu1 %vm6668_vm0, %v6669_v1  ;;  %5821 = vmatpush3.bf16.msra.mxu1 %v5820_v47 }
 0xfda   : > { %5822 = vmatprep.subr.bf16.mxu1 %v6667_v0 }
 0xfdd   : > { %5824 = vmatpush3.bf16.msra.mxu1 %v5823_v51 }
0x10ab   : > { %v2740_v31 = vpop.f32.mrb[24].mxu1 }
0x10ac   : > { %v2741_v32 = vadd.f32 %v4908_v28, %v2740_v31  ;;  %v5450_v33 = vpop.f32.mrb[25].mxu1 }
0x10ae   : > { %v2744_v34 = vmax.f32 %v2741_v32, 0.0 }
0x10b0   : > { %5468 = vmatmul.mubr.msk.f32.vlgmr.msra.gmra.mrb[30].mxu0 %vm2760_vm11, %v2744_v34 }
0x10b1   : > { %5491 = vmatprep.mubr.msk.f32.mxu0 %vm1184_vm2, %v7242_v9 }
0x1183   : > { %v2830_v35 = vpop.f32.mrb[30].mxu0 }
0x1184   : > { %v2831_v36 = vadd.f32 %v4910_v11, %v2830_v35  ;;  %v5469_v37 = vpop.f32.mrb[31].mxu0 }
0x1186   : > { %v2834_v39 = vadd.f32 %v2831_v36, %v2659_v7  ;;  %v4913_v7 = vld [vmem:[#allocation23] ss:$0 sm:$0xff] }
0x1188   : > { %v2837_v41 = vsel %vm1106_vm1, %v2834_v39, 0.0  ;;  %v2841_v43 = vmul.f32 %v2834_v39, %v2834_v39 }
0x1189   : > { %2838 = vadd.xlane.f32.xlu0 %v2837_v41 }
0x118a   : > { %v2842_v44 = vsel %vm1106_vm1, %v2841_v43, 0.0 }
0x118d   : > { %2843 = vadd.xlane.f32.xlu0 %v2842_v44 }
0x1216   : > { %v2839_v52 = vpop.xlane.xlu0 %2838 }
0x1217   : > { %v2840_v53 = vmul.f32 0.03125, %v2839_v52 }
0x1219   : > { %v2846_v57 = vmul.f32 %v2840_v53, %v2840_v53  ;;  %v2848_v2 = vsub.f32 %v2834_v39, %v2840_v53 }
0x121a   : > { %v2844_v55 = vpop.xlane.xlu0 %2843 }
0x121b   : > { %v2845_v58 = vmul.f32 0.03125, %v2844_v55 }
0x121d   : > { %v2847_v59 = vsub.f32 %v2845_v58, %v2846_v57 }
0x121f   : > { %v2849_v60 = vadd.f32 1e-05, %v2847_v59 }
0x1221   : > { %6145 = vrsqrt.f32 %v2849_v60 }
0x122b   : > { %v6146_v3 = vpop.eup %6145 }
0x122c   : > { %v2851_v6 = vmul.f32 %v6146_v3, %v2848_v2  ;;  %v4941_v3 = vld [vmem:[%s8168_s0 + $0x20] sm:$0xff] }
0x122e   : > { %v2858_v15 = vmul.f32 %v4912_v5, %v2851_v6 }
0x1230   : > { %v7673_v23 = vadd.f32 %v4913_v7, %v2858_v15  ;;  %v4943_v15 = vld [vmem:[%s8168_s0 + $0x30] sm:$0xff] }
0x1232   : > { %5479 = vmatmul.mubr.msk.f32.vlgmr.msra.gmra.mrb[26].mxu1 %vm1106_vm1, %v7673_v23 }
0x1233   : > { %5483 = vmatprep.mubr.msk.f32.mxu1 %vm1184_vm2, %v7242_v9 }
0x1305   : > { %v2948_v28 = vpop.f32.mrb[26].mxu1 }
0x1306   : > { %v2949_v31 = vadd.f32 %v4919_v22, %v2948_v28  ;;  %v5480_v32 = vpop.f32.mrb[27].mxu1  ;;  %v4944_v22 = vld [vmem:[%s8168_s0 + $0x38] sm:$0xff] }
0x1307   : > { %v5857_v28 = vpack.c.bf16 %v4944_v22, %v4943_v15  ;;  %v4956_v32 = vld [vmem:[%s8170_s22 + $0x28] sm:$0xff] }
0x1308   : > { %2953 = vrot.lane.b32.xlu1 %v2949_v31, %s8173_s15 }
0x130c   : > { %3045 = vrot.lane.b32.xlu1 %v2949_v31, %s8184_s11 }
0x137a   : > { %v2954_v33 = vpop.permute.xlu1 %2953 }
0x137b   : > { %5481 = vmatprep.subr.mxu1 %v2954_v33 }
0x137c   : > { %5482 = vmatpush3.msra.mxu1 %v2954_v33 }
0x137d   : > { %5484 = vmatmul.mubr.msk.f32.vlgmr.msra.gmra.mrb[28].mxu1 %vm1184_vm2, %v7253_v16  ;;  %5825 = vmatprep.subr.bf16.mxu1 %v6667_v0 }
0x137e   : > { %v3046_v9 = vpop.permute.xlu1 %3045  ;;  %5486 = vmatprep.mubr.msk.f32.mxu1 %vm1184_vm2, %v7255_v17 }
0x137f   : > { %5489 = vmatprep.subr.mxu0 %v3046_v9 }
0x1380   : > { %5490 = vmatpush3.msra.mxu0 %v3046_v9  ;;  %v4957_v9 = vld [vmem:[%s8170_s22 + $0x30] sm:$0xff] }
0x1381   : > { %5487 = vmatmul.mubr.msk.f32.gmra.mrb[30].mxu1 %vm1184_vm2, %v7262_v18  ;;  %5492 = vmatmul.mubr.msk.f32.vlgmr.msra.gmra.mrb[32].mxu0 %vm1184_vm2, %v7253_v16 }
0x1382   : > { %5505 = vmatprep.mubr.msk.f32.mxu1 %vm6668_vm0, %v6669_v1  ;;  %5833 = vmatprep.subr.bf16.mxu0 %v6667_v0 }
0x1383   : > { %5835 = vmatpush3.bf16.msra.mxu0 %v7314_v40  ;;  %5494 = vmatprep.mubr.msk.f32.mxu0 %vm1184_vm2, %v7255_v17 }
0x1384   : > { %5836 = vmatprep.subr.bf16.mxu0 %v6667_v0 }
0x1385   : > { %5495 = vmatmul.mubr.msk.f32.gmra.mrb[34].mxu0 %vm1184_vm2, %v7262_v18 }
0x1386   : > { %5516 = vmatprep.mubr.msk.f32.mxu0 %vm6668_vm0, %v6669_v1 }
0x1387   : > { %5838 = vmatpush3.bf16.msra.mxu0 %v7320_v42 }
0x1388   : > { %5839 = vmatprep.subr.bf16.mxu0 %v6667_v0 }
0x1450   : > { %v5485_v16 = vpop.f32.mrb[28].mxu1 }
0x1451   : > { %v3042_v34 = vmul.f32 %v5485_v16, %v7277_v19  ;;  %v3022_v11 = vpop.f32.mrb[29].mxu1  ;;  %v4958_v16 = vld [vmem:[%s8170_s22 + $0x38] sm:$0xff] }
0x1452   : > { %v3041_v35 = vmul.f32 %v3022_v11, %v7279_v20 }
0x1454   : > { %v5826_v36 = vpack.c.bf16 %v3042_v34, %v3041_v35  ;;  %v5488_v17 = vpop.f32.mrb[30].mxu1  ;;  %v5493_v46 = vpop.f32.mrb[32].mxu0  ;;  %v5869_v34 = vpack.c.bf16 %v4958_v16, %v4957_v9 }
0x1455   : > { %v3044_v37 = vmul.f32 %v5488_v17, %v7283_v25  ;;  %v3032_v39 = vpop.f32.mrb[31].mxu1  ;;  %v3134_v47 = vmul.f32 %v5493_v46, %v7277_v19  ;;  %v3114_v49 = vpop.f32.mrb[33].mxu0 }
0x1456   : > { %5828 = vmatpush3.bf16.xpose.msk.msra.mxu1 %vm7287_vm3, %v5826_v36  ;;  %v3043_v18 = vmul.f32 %v3032_v39, %v7291_v27  ;;  %v3133_v50 = vmul.f32 %v3114_v49, %v7279_v20  ;;  %v4945_v36 = vld [vmem:[#allocation7 + $0x1] ss:$0 sm:$0xff]  ;;  %v4952_v49 = vld [vmem:[%s8172_s6 + $0x38] sm:$0xff] }
0x1457   : > { %5829 = vmatprep.subr.bf16.mxu1 %v6667_v0 }
0x1458   : > { %v5830_v41 = vpack.c.bf16 %v3044_v37, %v3043_v18  ;;  %v5848_v51 = vpack.c.bf16 %v3134_v47, %v3133_v50  ;;  %v5496_v52 = vpop.f32.mrb[34].mxu0  ;;  %v4959_v47 = vld [vmem:[#allocation13 + $0x1] ss:$0 sm:$0xff] }
0x1459   : > { %v3136_v53 = vmul.f32 %v5496_v52, %v7283_v25  ;;  %v3124_v55 = vpop.f32.mrb[35].mxu0 }
0x145a   : > { %v3135_v57 = vmul.f32 %v3124_v55, %v7291_v27 }
0x145c   : > { %v5851_v58 = vpack.c.bf16 %v3136_v53, %v3135_v57 }
0x145e   : > { %5832 = vmatpush3.bf16.xpose.msk.msra.mxu1 %vm7287_vm3, %v5830_v41 }
0x145f   : > { %5847 = vmatprep.subr.bf16.mxu1 %v6667_v0 }
0x1465   : > { %5506 = vmatmul.mubr.msk.f32.vlgmr.msra.gmra.mrb[32].mxu1 %vm1106_vm1, %v2949_v31  ;;  %v4955_v31 = vld [vmem:[%s8170_s22 + $0x20] sm:$0xff] }
0x1466   : > { %5538 = vmatprep.mubr.msk.f32.mxu1 %vm6668_vm0, %v6669_v1  ;;  %5849 = vmatpush3.bf16.msra.mxu1 %v5848_v51  ;;  %v5865_v33 = vpack.c.bf16 %v4956_v32, %v4955_v31 }
0x1467   : > { %5850 = vmatprep.subr.bf16.mxu1 %v6667_v0 }
0x146a   : > { %5852 = vmatpush3.bf16.msra.mxu1 %v5851_v58 }
0x146b   : > { %5853 = vmatprep.subr.bf16.mxu1 %v6667_v0 }
0x1538   : > { %v3217_v43 = vpop.f32.mrb[32].mxu1 }
0x1539   : > { %v5507_v44 = vpop.f32.mrb[33].mxu1  ;;  %v3221_v45 = vsel %vm1106_vm1, %v3217_v43, -inf }
0x153a   : > { %3222 = vmax.xlane.f32.xlu0 %v3221_v45  ;;  %v4950_v44 = vld [vmem:[%s8172_s6 + $0x28] sm:$0xff] }
0x15c7   : > { %v3223_v59 = vpop.xlane.xlu0 %3222 }
0x15c8   : > { %v3224_v60 = vsub.f32 %v3217_v43, %v3223_v59 }
0x15ca   : > { %v3225_v19 = vmul.f32 1.442695, %v3224_v60 }
0x15cc   : > { %6147 = vpow2.f32 %v3225_v19 }
0x15d6   : > { %v6148_v2 = vpop.eup %6147 }
0x15d7   : > { %5517 = vmatmul.mubr.msk.f32.vlgmr.msra.gmra.mrb[36].mxu0 %vm1106_vm1, %v6148_v2 }
0x15d8   : > { %5842 = vmatpush3.bf16.xpose.msk.msra.mxu0 %vm7333_vm5, %v7314_v40  ;;  %5527 = vmatprep.mubr.msk.f32.mxu0 %vm6668_vm0, %v6669_v1 }
0x15d9   : > { %5843 = vmatprep.subr.bf16.mxu0 %v6667_v0 }
0x15e0   : > { %5846 = vmatpush3.bf16.xpose.msk.msra.mxu0 %vm7333_vm5, %v7320_v42  ;;  %v4942_v42 = vld [vmem:[%s8168_s0 + $0x28] sm:$0xff]  ;;  %s8188_s0 = smov %s8187_s5 }
0x15e1   : > { %5859 = vmatprep.subr.bf16.mxu0 %v6667_v0  ;;  %v5854_v6 = vpack.c.bf16 %v4942_v42, %v4941_v3  ;;  %v4947_v3 = vld [vmem:[#allocation8 + $0x1] ss:$0 sm:$0xff] }
0x16aa   : > { %v3296_v20 = vpop.f32.mrb[36].mxu0 }
0x16ab   : > { %v5518_v25 = vpop.f32.mrb[37].mxu0  ;;  %5528 = vmatmul.mubr.msk.f32.vlgmr.msra.gmra.mrb[38].mxu0 %vm1541_vm4, %v3296_v20 }
0x16ac   : > { %5560 = vmatprep.mubr.msk.f32.mxu0 %vm6668_vm0, %v6669_v1 }
0x177e   : > { %v3369_v27 = vpop.f32.mrb[38].mxu0 }
0x177f   : > { %6149 = vrcp.f32 %v3369_v27  ;;  %v5529_v40 = vpop.f32.mrb[39].mxu0 }
0x1789   : > { %v6150_v5 = vpop.eup %6149 }
0x178a   : > { %v3374_v7 = vmul.f32 %v6150_v5, %v6148_v2  ;;  %v4948_v5 = vld [vmem:[#allocation10 + $0x1] ss:$0 sm:$0xff] }
0x178c   : > { %5539 = vmatmul.mubr.msk.f32.vlgmr.msra.gmra.mrb[34].mxu1 %vm1106_vm1, %v3374_v7 }
0x178d   : > { %5855 = vmatpush3.bf16.msra.mxu1 %v5854_v6  ;;  %5549 = vmatprep.mubr.msk.f32.mxu1 %vm6668_vm0, %v6669_v1 }
0x178e   : > { %5856 = vmatprep.subr.bf16.mxu1 %v6667_v0 }
0x1791   : > { %5858 = vmatpush3.bf16.msra.mxu1 %v5857_v28 }
0x1792   : > { %5866 = vmatprep.subr.bf16.mxu1 %v5865_v33 }
0x185f   : > { %v3444_v11 = vpop.f32.mrb[34].mxu1 }
0x1860   : > { %v5540_v35 = vpop.f32.mrb[35].mxu1  ;;  %5550 = vmatmul.mubr.msk.f32.vlgmr.msra.gmra.mrb[36].mxu1 %vm1106_vm1, %v3444_v11 }
0x1861   : > { %5868 = vmatpush3.bf16.msra.mxu1 %v5865_v33  ;;  %5571 = vmatprep.mubr.msk.f32.mxu1 %vm1106_vm1, %v7383_v21 }
0x1862   : > { %5870 = vmatprep.subr.bf16.mxu1 %v5869_v34 }
0x1865   : > { %5872 = vmatpush3.bf16.msra.mxu1 %v5869_v34 }
0x1866   : > { %5877 = vmatprep.subr.bf16.mxu1 %v6667_v0 }
0x1868   : > { %5572 = vmatmul.mubr.msk.f32.vlgmr.msra.gmra.mrb[38].mxu1 %vm1106_vm1, %v7388_v24  ;;  %v4949_v24 = vld [vmem:[%s8172_s6 + $0x20] sm:$0xff] }
0x1869   : > { %5597 = vmatprep.mubr.msk.f32.mxu1 %vm6668_vm0, %v6669_v1  ;;  %v5860_v45 = vpack.c.bf16 %v4950_v44, %v4949_v24  ;;  %v4953_v24 = vld [vmem:[#allocation11 + $0x1] ss:$0 sm:$0xff] }
0x186b   : > { %5861 = vmatpush3.bf16.msra.mxu0 %v5860_v45 }
0x186c   : > { %5862 = vmatprep.subr.bf16.mxu0 %v6667_v0 }
0x1933   : > { %v3530_v17 = vpop.f32.mrb[36].mxu1 }
0x1934   : > { %v3531_v37 = vadd.f32 %v4945_v36, %v3530_v17  ;;  %v5551_v39 = vpop.f32.mrb[37].mxu1 }
0x1936   : > { %v3534_v18 = vadd.f32 %v3531_v37, %v7673_v23  ;;  %v4951_v23 = vld [vmem:[%s8172_s6 + $0x30] sm:$0xff] }
0x1937   : > { %v5863_v52 = vpack.c.bf16 %v4952_v49, %v4951_v23 }
0x1938   : > { %v3539_v41 = vsel %vm1106_vm1, %v3534_v18, 0.0  ;;  %v3543_v43 = vmul.f32 %v3534_v18, %v3534_v18 }
0x1939   : > { %3540 = vadd.xlane.f32.xlu0 %v3539_v41  ;;  %5864 = vmatpush3.bf16.msra.mxu0 %v5863_v52 }
0x193a   : > { %v3544_v21 = vsel %vm1106_vm1, %v3543_v43, 0.0  ;;  %5873 = vmatprep.subr.bf16.mxu0 %v6667_v0 }
0x193b   : > { %3545 = vadd.xlane.f32.xlu1 %v3544_v21  ;;  %v5573_v46 = vpop.f32.mrb[38].mxu1 }
0x193c   : > { %v7792_v50 = vadd.f32 %v5573_v46, %v4959_v47  ;;  %v3733_v51 = vpop.f32.mrb[39].mxu1 }
0x193d   : > { %v7794_v53 = vadd.f32 %v4959_v47, %v3733_v51 }
0x193f   : > { %v6128_v55 = vpack.i.bf16 %v7792_v50, %v7794_v53  ;;  %v5874_v57 = vpack.c.bf16 %v7792_v50, %v7794_v53 }
0x19c6   : > { %v3541_v58 = vpop.xlane.xlu0 %3540 }
0x19c7   : > { %v3542_v59 = vmul.f32 0.03125, %v3541_v58 }
0x19c8   : > { %v3546_v60 = vpop.xlane.xlu1 %3545 }
0x19c9   : > { %v3548_v19 = vmul.f32 %v3542_v59, %v3542_v59  ;;  %v3547_v2 = vmul.f32 0.03125, %v3546_v60  ;;  %v3550_v27 = vsub.f32 %v3534_v18, %v3542_v59 }
0x19cb   : > { %v3549_v20 = vsub.f32 %v3547_v2, %v3548_v19 }
0x19cd   : > { %v3551_v25 = vadd.f32 1e-05, %v3549_v20 }
0x19cf   : > { %6151 = vrsqrt.f32 %v3551_v25  ;;  %v4988_v25 = vld [vmem:[%s8180_s10 + $0x20] sm:$0xff] }
0x19d9   : > { %v6152_v40 = vpop.eup %6151 }
0x19da   : > { %v3553_v42 = vmul.f32 %v6152_v40, %v3550_v27 }
0x19dc   : > { %v3560_v6 = vmul.f32 %v4947_v3, %v3553_v42  ;;  %v4990_v42 = vld [vmem:[%s8180_s10 + $0x30] sm:$0xff] }
0x19de   : > { %v7801_v7 = vadd.f32 %v4948_v5, %v3560_v6  ;;  %v4991_v5 = vld [vmem:[%s8180_s10 + $0x38] sm:$0xff] }
0x19df   : > { %v5913_v6 = vpack.c.bf16 %v4991_v5, %v4990_v42 }
0x19e0   : > { %5561 = vmatmul.mubr.msk.f32.vlgmr.msra.gmra.mrb[40].mxu0 %vm1106_vm1, %v7801_v7 }
0x19e1   : > { %5876 = vmatpush3.bf16.msk.msra.mxu0 %vm7413_vm8, %v5874_v57  ;;  %5578 = vmatprep.mubr.msk.f32.mxu0 %vm6668_vm0, %v6669_v1 }
0x19e2   : > { %5881 = vmatprep.subr.bf16.mxu0 %v6667_v0 }
0x19e4   : > { %5579 = vmatmul.mubr.msk.f32.vlgmr.msra.gmra.mrb[42].mxu0 %vm1995_vm9, %v7423_v4 }
0x19e5   : > { %5581 = vmatprep.mubr.msk.f32.mxu0 %vm6668_vm0, %v6669_v1 }
0x19e8   : > { %5582 = vmatmul.mubr.msk.f32.gmra.mrb[44].mxu0 %vm1995_vm9, %v7432_v10 }
0x19e9   : > { %5584 = vmatprep.mubr.msk.f32.mxu0 %vm6668_vm0, %v6669_v1 }
0x19ec   : > { %5585 = vmatmul.mubr.msk.f32.gmra.mrb[46].mxu0 %vm1995_vm9, %v7449_v12 }
0x19ed   : > { %5587 = vmatprep.mubr.msk.f32.mxu0 %vm6668_vm0, %v6669_v1 }
0x19f0   : > { %5588 = vmatmul.mubr.msk.f32.gmra.mrb[48].mxu0 %vm1995_vm9, %v7463_v13 }
0x19f1   : > { %5590 = vmatprep.mubr.msk.f32.mxu0 %vm6668_vm0, %v6669_v1 }
0x19f4   : > { %5591 = vmatmul.mubr.msk.f32.gmra.mrb[50].mxu0 %vm1995_vm9, %v7476_v14 }
0x19f5   : > { %5622 = vmatprep.mubr.msk.f32.mxu0 %vm6668_vm0, %v6669_v1 }
0x1ab3   : > { %v3650_v15 = vpop.f32.mrb[40].mxu0 }
0x1ab4   : > { %v5562_v22 = vpop.f32.mrb[41].mxu0  ;;  %v3651_v44 = vadd.f32 %v4953_v24, %v3650_v15 }
0x1ab7   : > { %v3811_v28 = vpop.f32.mrb[42].mxu0 }
0x1ab8   : > { %v5580_v31 = vpop.f32.mrb[43].mxu0  ;;  %v3835_v33 = vmul.f32 %v3811_v28, %v7497_v29  ;;  %v4992_v28 = vld [vmem:[#allocation14 + $0x1] ss:$0 sm:$0xff] }
0x1abb   : > { %v3816_v32 = vpop.f32.mrb[44].mxu0 }
0x1abc   : > { %v3836_v9 = vmul.f32 %v3816_v32, %v7502_v30  ;;  %v5583_v16 = vpop.f32.mrb[45].mxu0 }
0x1abe   : > { %v5882_v34 = vpack.c.bf16 %v3836_v9, %v3835_v33 }
0x1abf   : > { %v3821_v11 = vpop.f32.mrb[46].mxu0 }
0x1ac0   : > { %v5586_v35 = vpop.f32.mrb[47].mxu0  ;;  %5884 = vmatpush3.bf16.xpose.msk.msra.mxu0 %vm7287_vm3, %v5882_v34  ;;  %v3837_v17 = vmul.f32 %v3821_v11, %v7511_v38 }
0x1ac1   : > { %5885 = vmatprep.subr.bf16.mxu0 %v6667_v0  ;;  %v4996_v35 = vld [vmem:[%s8181_s16 + $0x20] sm:$0xff] }
0x1ac3   : > { %v3826_v36 = vpop.f32.mrb[48].mxu0 }
0x1ac4   : > { %v3838_v37 = vmul.f32 %v3826_v36, %v7516_v8  ;;  %v5589_v39 = vpop.f32.mrb[49].mxu0 }
0x1ac5   : > { %v5002_v39 = vld [vmem:[%s8183_s3 + $0x40] sm:$0xff] }
0x1ac6   : > { %v5886_v18 = vpack.c.bf16 %v3838_v37, %v3837_v17  ;;  %v4999_v17 = vld [vmem:[%s8181_s16 + $0x38] sm:$0xff] }
0x1ac7   : > { %v3831_v41 = vpop.f32.mrb[50].mxu0 }
0x1ac8   : > { %5888 = vmatpush3.bf16.xpose.msk.msra.mxu0 %vm7287_vm3, %v5886_v18  ;;  %v5592_v43 = vpop.f32.mrb[51].mxu0  ;;  %v3839_v21 = vmul.f32 %v3831_v41, %v7526_v48  ;;  %v5003_v18 = vld [vmem:[%s8183_s3 + $0x48] sm:$0xff]  ;;  %v5004_v41 = vld [vmem:[%s8183_s3 + $0x50] sm:$0xff] }
0x1ac9   : > { %5620 = vmatprep.subr.mxu0 %v6669_v1  ;;  %v5922_v43 = vpack.c.bf16 %v5003_v18, %v5002_v39 }
0x1ad0   : > { %5621 = vmatpush3.xpose.msk.msra.mxu0 %vm1106_vm1, %v3839_v21  ;;  %v5005_v21 = vld [vmem:[%s8183_s3 + $0x58] sm:$0xff] }
0x1ad1   : > { %5895 = vmatprep.subr.bf16.mxu0 %v6667_v0  ;;  %v5925_v24 = vpack.c.bf16 %v5005_v21, %v5004_v41 }
0x1ad3   : > { %5623 = vmatmul.mubr.msk.f32.vlgmr.msra.gmra.mrb[52].mxu0 %vm1106_vm1, %v3651_v44  ;;  %v5006_v44 = vld [vmem:[%s8183_s3 + $0x60] sm:$0xff] }
0x1ad4   : > { %5898 = vmatpush3.bf16.xpose.msk.msra.mxu0 %vm7333_vm5, %v7541_v54  ;;  %5648 = vmatprep.mubr.msk.f32.mxu0 %vm6668_vm0, %v6669_v1 }
0x1ad5   : > { %5899 = vmatprep.subr.bf16.mxu0 %v6667_v0 }
0x1adc   : > { %5902 = vmatpush3.bf16.xpose.msk.msra.mxu0 %vm7333_vm5, %v7556_v61 }
0x1add   : > { %5646 = vmatprep.subr.mxu0 %v6669_v1 }
0x1ae4   : > { %5647 = vmatpush3.xpose.msk.msra.mxu0 %vm1541_vm4, %v7566_v63 }
0x1ae5   : > { %5915 = vmatprep.subr.bf16.mxu0 %v6667_v0 }
0x1ba6   : > { %v4027_v26 = vpop.f32.mrb[52].mxu0 }
0x1ba7   : > { %v5624_v45 = vpop.f32.mrb[53].mxu0  ;;  %v4031_v46 = vsel %vm2301_vm10, %v4027_v26, -inf }
0x1ba8   : > { %4032 = vmax.xlane.f32.xlu0 %v4031_v46 }
0x1bbe   : > { %6129 = vrot.lane.b32.xlu0 %v6128_v55, %s8173_s15  ;;  %s1053_s15 = sand.u32 1, %s8185_s12  }
0x1bbf   : > { %s4843_s7 = sshll.u32 %s1053_s15, 3  ;;  %s4591_s12 = scalar_lea.sflag [#allocation4], %s1053_s15 }
0x1bc0   : > { %s1055_s30 = scalar_lea.vmem [#allocation25], %s4843_s7  ;;  %s6557_s7 = sshll.u32 %s6673_s1, 4  ;;  %s6558_s7 = int_to_ptr.vmem [resolvable:$false] %s6557_s7 }
0x1bc1   : > { %s4604_s29 = sshll.u32 %s1055_s30, 4  ;;  %s6559_s4 = scalar_lea.vmem %s6558_s7, 256  ;;  %s7979_s29 = int_to_ptr.vmem [resolvable:$true] %s4604_s29 }
0x1bc2   : > { %p6560_p2 = scmp.lt.s32.totalorder %s7979_s29, %s6558_s7 }
0x1c35   : > { %v4033_v47 = vpop.xlane.xlu0 %4032 }
0x1c36   : > { %v4034_v52 = vsub.f32 %v4027_v26, %v4033_v47  ;;  %v5007_v26 = vld [vmem:[%s8183_s3 + $0x68] sm:$0xff] }
0x1c37   : > { %v5928_v45 = vpack.c.bf16 %v5007_v26, %v5006_v44 }
0x1c38   : > { %v4035_v50 = vmul.f32 1.442695, %v4034_v52 }
0x1c39   : > { %v6130_v56 = vpop.permute.xlu0 %6129 }
0x1c3a   : > { %v6132_v23 = vunpack.i.h.bf16 %v6130_v56  ;;  %v6131_v49 = vunpack.i.l.bf16 %v6130_v56  ;;  %6153 = vpow2.f32 %v4035_v50 }
0x1c3c   : > { %v5878_v51 = vpack.c.bf16 %v6132_v23, %v6131_v49 }
0x1c3e   : > { %5880 = vmatpush3.bf16.msk.msra.mxu1 %vm7413_vm8, %v5878_v51 }
0x1c3f   : > { %5889 = vmatprep.subr.bf16.mxu1 %v6667_v0 }
0x1c41   : > { %5598 = vmatmul.mubr.msk.f32.vlgmr.msra.gmra.mrb[40].mxu1 %vm1995_vm9, %v7423_v4 }
0x1c42   : > { %5600 = vmatprep.mubr.msk.f32.mxu1 %vm6668_vm0, %v6669_v1  ;;  %5891 = vmatpush3.bf16.msra.mxu1 %v7541_v54 }
0x1c43   : > { %5892 = vmatprep.subr.bf16.mxu1 %v6667_v0 }
0x1c44   : > { %v6154_v62 = vpop.eup %6153 }
0x1c45   : > { %5601 = vmatmul.mubr.msk.f32.gmra.mrb[42].mxu1 %vm1995_vm9, %v7432_v10 }
0x1c46   : > { %5603 = vmatprep.mubr.msk.f32.mxu1 %vm6668_vm0, %v6669_v1  ;;  %5894 = vmatpush3.bf16.msra.mxu1 %v7556_v61 }
0x1c47   : > { %5633 = vmatprep.subr.mxu1 %v6669_v1 }
0x1c49   : > { %5604 = vmatmul.mubr.msk.f32.gmra.mrb[44].mxu1 %vm1995_vm9, %v7449_v12 }
0x1c4a   : > { %5606 = vmatprep.mubr.msk.f32.mxu1 %vm6668_vm0, %v6669_v1  ;;  %5634 = vmatpush3.msra.mxu1 %v7566_v63 }
0x1c4b   : > { %5903 = vmatprep.subr.bf16.mxu1 %v6667_v0 }
0x1c4d   : > { %5607 = vmatmul.mubr.msk.f32.gmra.mrb[46].mxu1 %vm1995_vm9, %v7463_v13 }
0x1c4e   : > { %5609 = vmatprep.mubr.msk.f32.mxu1 %vm6668_vm0, %v6669_v1 }
0x1c51   : > { %5610 = vmatmul.mubr.msk.f32.gmra.mrb[48].mxu1 %vm1995_vm9, %v7476_v14 }
0x1c52   : > { %5635 = vmatprep.mubr.msk.f32.mxu1 %vm6668_vm0, %v6669_v1 }
0x1c55   : > { %5636 = vmatmul.mubr.msk.f32.vlgmr.msra.gmra.mrb[50].mxu1 %vm2301_vm10, %v6154_v62 }
0x1c56   : > { %5661 = vmatprep.mubr.msk.f32.mxu1 %vm6668_vm0, %v6669_v1 }
0x1d14   : > { %v3914_v4 = vpop.f32.mrb[40].mxu1 }
0x1d15   : > { %v5599_v10 = vpop.f32.mrb[41].mxu1  ;;  %v3938_v13 = vmul.f32 %v3914_v4, %v7497_v29  ;;  %v4994_v4 = vld [vmem:[#allocation16 + $0x1] ss:$0 sm:$0xff] }
0x1d18   : > { %v3919_v12 = vpop.f32.mrb[42].mxu1 }
0x1d19   : > { %v3939_v54 = vmul.f32 %v3919_v12, %v7502_v30  ;;  %v5602_v61 = vpop.f32.mrb[43].mxu1  ;;  %v4995_v12 = vld [vmem:[#allocation17 + $0x1] ss:$0 sm:$0xff] }
0x1d1a   : > { %v5009_v61 = vld [vmem:[%s8183_s3 + $0x78] sm:$0xff] }
0x1d1b   : > { %v5904_v63 = vpack.c.bf16 %v3939_v54, %v3938_v13 }
0x1d1c   : > { %v3924_v53 = vpop.f32.mrb[44].mxu1 }
0x1d1d   : > { %5905 = vmatpush3.bf16.msra.mxu1 %v5904_v63  ;;  %v5605_v14 = vpop.f32.mrb[45].mxu1  ;;  %v3940_v57 = vmul.f32 %v3924_v53, %v7511_v38  ;;  %v5000_v53 = vld [vmem:[#allocation19 + $0x1] ss:$0 sm:$0xff] }
0x1d1e   : > { %5906 = vmatprep.subr.bf16.mxu1 %v6667_v0 }
0x1d20   : > { %v3929_v55 = vpop.f32.mrb[46].mxu1 }
0x1d21   : > { %v3941_v58 = vmul.f32 %v3929_v55, %v7516_v8  ;;  %v5608_v59 = vpop.f32.mrb[47].mxu1 }
0x1d22   : > { %v5010_v59 = vld [vmem:[#allocation20 + $0x1] ss:$0 sm:$0xff] }
0x1d23   : > { %v5907_v60 = vpack.c.bf16 %v3941_v58, %v3940_v57 }
0x1d24   : > { %v3934_v19 = vpop.f32.mrb[48].mxu1 }
0x1d25   : > { %5908 = vmatpush3.bf16.msra.mxu1 %v5907_v60  ;;  %v5611_v2 = vpop.f32.mrb[49].mxu1  ;;  %v3942_v29 = vmul.f32 %v3934_v19, %v7526_v48  ;;  %v4989_v48 = vld [vmem:[%s8180_s10 + $0x28] sm:$0xff] }
0x1d26   : > { %5659 = vmatprep.subr.mxu1 %v6669_v1  ;;  %v5910_v40 = vpack.c.bf16 %v4989_v48, %v4988_v25 }
0x1d28   : > { %v4106_v30 = vpop.f32.mrb[50].mxu1 }
0x1d29   : > { %v5637_v20 = vpop.f32.mrb[51].mxu1  ;;  %5649 = vmatmul.mubr.msk.f32.vlgmr.msra.gmra.mrb[54].mxu0 %vm1541_vm4, %v4106_v30  ;;  %5660 = vmatpush3.msra.mxu1 %v3942_v29 }
0x1d2a   : > { %5909 = vmatprep.subr.bf16.mxu1 %v6667_v0  ;;  %5683 = vmatprep.mubr.msk.f32.mxu0 %vm6668_vm0, %v6669_v1 }
0x1dfc   : > { %v4179_v38 = vpop.f32.mrb[54].mxu0 }
0x1dfd   : > { %6155 = vrcp.f32 %v4179_v38  ;;  %v5650_v8 = vpop.f32.mrb[55].mxu0 }
0x1e07   : > { %v6156_v27 = vpop.eup %6155 }
0x1e08   : > { %v4184_v3 = vmul.f32 %v6156_v27, %v6154_v62 }
0x1e0a   : > { %5662 = vmatmul.mubr.msk.f32.vlgmr.msra.gmra.mrb[52].mxu1 %vm2301_vm10, %v4184_v3 }
0x1e0b   : > { %5911 = vmatpush3.bf16.msra.mxu1 %v5910_v40  ;;  %5672 = vmatprep.mubr.msk.f32.mxu1 %vm6668_vm0, %v6669_v1 }
0x1e0c   : > { %5912 = vmatprep.subr.bf16.mxu1 %v6667_v0 }
0x1e0f   : > { %5914 = vmatpush3.bf16.msra.mxu1 %v5913_v6 }
0x1e10   : > { %5921 = vmatprep.subr.bf16.mxu1 %v6667_v0 }
0x1edd   : > { %v4254_v15 = vpop.f32.mrb[52].mxu1 }
0x1ede   : > { %v5663_v22 = vpop.f32.mrb[53].mxu1  ;;  %5673 = vmatmul.mubr.msk.f32.vlgmr.msra.gmra.mrb[54].mxu1 %vm1106_vm1, %v4254_v15  ;;  %v5012_v15 = vld [vmem:[#allocation22 + $0x1] ss:$0 sm:$0xff] }
0x1edf   : > { %5702 = vmatprep.mubr.msk.f32.mxu1 %vm6668_vm0, %v6669_v1  ;;  %v4997_v1 = vld [vmem:[%s8181_s16 + $0x28] sm:$0xff]  ;;  %5923 = vmatpush3.bf16.msra.mxu1 %v5922_v43 }
0x1ee0   : > { %v5916_v36 = vpack.c.bf16 %v4997_v1, %v4996_v35  ;;  %5924 = vmatprep.subr.bf16.mxu1 %v6667_v0 }
0x1ee2   : > { %5917 = vmatpush3.bf16.msra.mxu0 %v5916_v36 }
0x1ee3   : > { %5918 = vmatprep.subr.bf16.mxu0 %v6667_v0  ;;  %5926 = vmatpush3.bf16.msra.mxu1 %v5925_v24 }
0x1ee4   : > { %5927 = vmatprep.subr.bf16.mxu1 %v6667_v0 }
0x1ee7   : > { %5929 = vmatpush3.bf16.msra.mxu1 %v5928_v45 }
0x1ee8   : > { %5930 = vmatprep.subr.bf16.mxu1 %v6667_v0  ;;  %v5008_v0 = vld [vmem:[%s8183_s3 + $0x70] sm:$0xff]  ;;  %s6553_s3 = scalar_lea.vmem %s7979_s29, 128 }
0x1ee9   : > { %v5931_v63 = vpack.c.bf16 %v5009_v61, %v5008_v0  ;;  %p6554_p10 = scmp.ne.s32.totalorder %s7979_s29, %s6553_s3  ;;  %p6561_p3 = scmp.lt.s32.totalorder %s6559_s4, %s6553_s3 }
0x1eeb   : > { %5932 = vmatpush3.bf16.msra.mxu1 %v5931_v63  ;;  %p6555_p12 = pnand %p6554_p10, %p8189_p13  ;;  %p6562_p4 = por %p6561_p3, %p6560_p2 }
0x1eed   : > { %p6556_p1 = pneg %p6555_p12 }
0x1eef   : > { %p6563_p7 = pnand %p6562_p4, %p6556_p1 }
0x1fb1   : > { %v4340_v31 = vpop.f32.mrb[54].mxu1 }
0x1fb2   : > { %v4341_v32 = vadd.f32 %v4992_v28, %v4340_v31  ;;  %v5674_v33 = vpop.f32.mrb[55].mxu1  ;;  %v5013_v28 = vld [vmem:[#allocation23 + $0x1] ss:$0 sm:$0xff] }
0x1fb4   : > { %v4344_v9 = vadd.f32 %v4341_v32, %v7801_v7  ;;  %v4998_v7 = vld [vmem:[%s8181_s16 + $0x30] sm:$0xff] }
0x1fb5   : > { %v5919_v37 = vpack.c.bf16 %v4999_v17, %v4998_v7 }
0x1fb6   : > { %v4349_v16 = vsel %vm1106_vm1, %v4344_v9, 0.0  ;;  %v4353_v34 = vmul.f32 %v4344_v9, %v4344_v9 }
0x1fb7   : > { %4350 = vadd.xlane.f32.xlu0 %v4349_v16  ;;  %5920 = vmatpush3.bf16.msra.mxu0 %v5919_v37 }
0x1fb8   : > { %v4354_v11 = vsel %vm1106_vm1, %v4353_v34, 0.0 }
0x1fb9   : > { %4355 = vadd.xlane.f32.xlu1 %v4354_v11 }
0x2044   : > { %v4351_v46 = vpop.xlane.xlu0 %4350 }
0x2045   : > { %v4352_v47 = vmul.f32 0.03125, %v4351_v46 }
0x2046   : > { %v4356_v56 = vpop.xlane.xlu1 %4355 }
0x2047   : > { %v4358_v23 = vmul.f32 %v4352_v47, %v4352_v47  ;;  %v4357_v49 = vmul.f32 0.03125, %v4356_v56  ;;  %v4360_v50 = vsub.f32 %v4344_v9, %v4352_v47 }
0x2049   : > { %v4359_v51 = vsub.f32 %v4357_v49, %v4358_v23 }
0x204b   : > { %v4361_v52 = vadd.f32 1e-05, %v4359_v51 }
0x204d   : > { %6157 = vrsqrt.f32 %v4361_v52 }
0x2057   : > { %v6158_v62 = vpop.eup %6157 }
0x2058   : > { %v4363_v10 = vmul.f32 %v6158_v62, %v4360_v50 }
0x205a   : > { %v4370_v13 = vmul.f32 %v4994_v4, %v4363_v10 }
0x205c   : > { %v4377_v54 = vadd.f32 %v4995_v12, %v4370_v13 }
0x205e   : > { %5684 = vmatmul.mubr.msk.f32.vlgmr.msra.gmra.mrb[56].mxu0 %vm1106_vm1, %v4377_v54 }
0x2131   : > { %v4460_v14 = vpop.f32.mrb[56].mxu0 }
0x2132   : > { %v4461_v55 = vadd.f32 %v5000_v53, %v4460_v14  ;;  %v5685_v57 = vpop.f32.mrb[57].mxu0 }
0x2134   : > { %v4464_v58 = vmax.f32 %v4461_v55, 0.0 }
0x2136   : > { %5703 = vmatmul.mubr.msk.f32.vlgmr.msra.gmra.mrb[56].mxu1 %vm2760_vm11, %v4464_v58 }
0x2209   : > { %v4551_v60 = vpop.f32.mrb[56].mxu1 }
0x220a   : > { %v4552_v19 = vadd.f32 %v5010_v59, %v4551_v60  ;;  %v5704_v2 = vpop.f32.mrb[57].mxu1 }
0x220c   : > { %v4555_v29 = vadd.f32 %v4552_v19, %v4377_v54 }
0x220e   : > { %v4560_v30 = vsel %vm1106_vm1, %v4555_v29, 0.0  ;;  %v4564_v20 = vmul.f32 %v4555_v29, %v4555_v29 }
0x220f   : > { %4561 = vadd.xlane.f32.xlu1 %v4560_v30 }
0x2210   : > { %v4565_v38 = vsel %vm1106_vm1, %v4564_v20, 0.0 }
0x2213   : > { %4566 = vadd.xlane.f32.xlu1 %v4565_v38 }
0x229c   : > { %v4562_v8 = vpop.xlane.xlu1 %4561 }
0x229d   : > { %v4563_v25 = vmul.f32 0.03125, %v4562_v8 }
0x229f   : > { %v4569_v27 = vmul.f32 %v4563_v25, %v4563_v25  ;;  %v4571_v5 = vsub.f32 %v4555_v29, %v4563_v25 }
0x22a0   : > { %v4567_v48 = vpop.xlane.xlu1 %4566 }
0x22a1   : > { %v4568_v40 = vmul.f32 0.03125, %v4567_v48 }
0x22a3   : > { %v4570_v3 = vsub.f32 %v4568_v40, %v4569_v27 }
0x22a5   : > { %v4572_v42 = vadd.f32 1e-05, %v4570_v3 }
0x22a7   : > { %6159 = vrsqrt.f32 %v4572_v42 }
0x22b1   : > { %v6160_v6 = vpop.eup %6159 }
0x22b2   : > { %v4574_v22 = vmul.f32 %v6160_v6, %v4571_v5 }
0x22b4   : > { %v4581_v31 = vmul.f32 %v5012_v15, %v4574_v22 }
0x22b6   : > { %v4588_v32 = vadd.f32 %v5013_v28, %v4581_v31 }
0x22b8   : > { %4589 = vst.msk [vmem:[%s1055_s30] sm:$0xff] %vm1106_vm1, %v4588_v32 }
0x22b9   : > { %6566 = shalt.err (!%p6563_p7)
}
0x22ba   : > { %s6567_s15 = scalar_lea.hbm %s7977_s9, 128  ;;  %s6571_s11 = scalar_lea.hbm %s8188_s0, 256 }
0x22bb   : > { %p6568_p8 = scmp.ne.s32.totalorder %s7977_s9, %s6567_s15  ;;  %p6572_p0 = scmp.lt.u32.totalorder %s7977_s9, %s8188_s0 }
0x22bc   : > { %p6573_p6 = scmp.lt.u32.totalorder %s6571_s11, %s6567_s15  ;;  %p6575_p10 = scmp.lt.u32.totalorder %s6567_s15, %s7977_s9 }
0x22bd   : > { %p6569_p11 = pnand %p6568_p8, %p8189_p13 }
0x22be   : > { %p6574_p9 = por %p6573_p6, %p6572_p0 }
0x22bf   : > { %p6570_p5 = pneg %p6569_p11 }
0x22c0   : > { %p6576_p12 = por %p6575_p10, %p6574_p9 }
0x22c2   : > { %p6577_p1 = pnand %p6576_p12, %p6570_p5 }
0x22c4   : > { %6580 = shalt.err (!%p6577_p1)
}
0x22c5   : > { %5989 = dma.vmem_to_hbm [thread:$0]  (%p8189_p13), %s7979_s29, 128, %s7977_s9, %s4591_s12  }
0x22c6 PF: > { %s8190_s4 = sld [smem:[#allocation38_spill]]  ;;  %s8191_s3 = sld [smem:[#allocation35_spill]] }
0x22c7   : > { %s8192_s1 = sld [smem:[#allocation43_spill]] }
0x22cc   : > { %p6066_p2 = scmp.ge.s32.totalorder %s8190_s4, 2  ;;  %s4616_s7 = sand.u32 1, %s8191_s3  }
0x22cd   : > { %p8193_p3 = scmp.ne.s32.totalorder %s8192_s1, 0  ;;  %s4617_s8 = scalar_lea.sflag [#allocation4], %s4616_s7 }
0x22cf   : > { %p6035_p4 = pnand %p6066_p2, %p8193_p3 }
0x22d1   : > { %6630 = dma.done.wait (!%p6035_p4), %s4617_s8, 128  }
0x22d2   : > { %6632 = vsyncadd (!%p6035_p4), %s4617_s8, 4294967168  ;;  %s8194_s30 = sld [smem:[#allocation40_spill]]  ;;  %s8195_s8 = sld [smem:[#allocation36_spill]] }
0x22d3   : > { %s8196_s5 = sld [smem:[#allocation37_spill]]  ;;  %s8197_s9 = sld [smem:[#allocation41_spill]] }
0x22d8   : > { %p46_p7 = scmp.ge.s32.totalorder %s8194_s30, 4  }
0x22da   :  { %48 = sbr.rel (!%p46_p7) target bundleno = 33 (0x21), region = 247 }
0x22e1   :  { %4622 = vsyncpa [#allocation3], 1 }
0x22e2   :  { %4624 = vsyncpa [#allocation3 + $0x1], 1 }
0x22e3   :  { %4625 = vsyncpa [#allocation6], 1 }
0x22e4   :  { %4626 = vsyncpa [#allocation9], 1 }
0x22e5   :  { %4627 = vsyncpa [#allocation12], 1 }
0x22e6   :  { %4628 = vsyncpa [#allocation15], 1 }
0x22e7   :  { %4629 = vsyncpa [#allocation18], 1 }
0x22e8   :  { %4630 = vsyncpa [#allocation21], 1 }
0x22e9   :  { %4631 = vsyncpa [#allocation24], 1 }
0x22ea   :  { %4632 = vsyncpa [#allocation4], 1 }
0x22eb   :  { %4634 = vsyncpa [#allocation4 + $0x1], 1 }

</bundles_post_ra>
